<compile_context>
chip_gen: v5e
topology: v5e:2x2
jax: 0.10.0
libtpu: 0.0.40
codegen_flags: <defaults>
</compile_context>

<pallas_src>
import jax
import jax.numpy as jnp
from jax.experimental import pallas as pl
from jax.experimental.pallas import tpu as pltpu

C_IN = 128        # conv1/conv2 in channels
C_OUT = 128       # conv1/conv2 out channels
C_MID = 32        # fc bottleneck channels
K1, P1 = 7, 3     # conv1 kernel / padding
K2, P2 = 25, 12   # conv2 kernel / padding
NP = (K2 + 1) // 2  # number of paired taps (13; last pair zero-padded)

PREC_REF = jax.lax.Precision.HIGHEST  # used only by the pure-JAX reference


def mra_kernel(x_ref, wp_ref, t12_ref, wfc_ref, wfc12_ref, o_ref,
               xx_ref, acc_ref):
    """B_blk batch elements per grid step.

    x_ref    : (B_blk, L, 128)       unpadded input block (channels-last)
    wp_ref   : (NP, 256, 256) bf16   paired, BN-scale-folded conv taps
                                     rows [0:128] -> tap 2j, [128:256] -> tap 2j+1
                                     cols [0:128] -> conv1, [128:256] -> conv2
    t12_ref  : (1, 256)   f32        folded BN shift (+ conv bias) for [ch1|ch2]
    wfc_ref  : (128, 32)  f32        fc  (1x1 conv, no bias)
    wfc12_ref: (32, 256)  f32        fused fc1 | fc2 (1x1 convs, no bias)
    o_ref    : (B_blk, L, 128)       output block
    xx_ref   : (B_blk*Lp, 256) bf16  VMEM scratch: padded + shifted dual slab
    acc_ref  : (M, 256)   f32        VMEM scratch: conv accumulator
    """
    b_blk, L, _ = o_ref.shape
    Lp = L + 2 * P2
    M = b_blk * Lp - 2 * P2
    zdt = xx_ref.dtype

    # ---- build the padded, tap-paired slab; zero only the pad bands --------
    # Per batch segment b (rows [b*Lp, (b+1)*Lp)):
    #   xx[base+i, :128] = x_padded_b[i]     xx[base+i, 128:] = x_padded_b[i+1]
    # The 12-row zero pads also act as the guard band between batch segments.
    for b in range(b_blk):
        base = b * Lp
        head = P2                              # rows base .. base+P2-1
        tail = Lp - (P2 + L - 1)               # rows base+P2+L-1 .. base+Lp-1
        xx_ref[base:base + head, :] = jnp.zeros((head, 2 * C_IN), zdt)
        xx_ref[base + P2 + L - 1:base + Lp, :] = jnp.zeros((tail, 2 * C_IN), zdt)
        xb = x_ref[b].astype(zdt)                                  # (L, 128) bf16
        xx_ref[base + P2:base + P2 + L, :C_IN] = xb                # even-tap half
        xx_ref[base + P2 - 1:base + P2 - 1 + L, C_IN:] = xb        # odd-tap half

    # ---- 13 paired-tap matmuls, (M,256)@(256,256), f32 accumulate in VMEM --
    for j in range(NP):
        part = jnp.dot(xx_ref[2 * j:2 * j + M, :], wp_ref[j],
                       preferred_element_type=jnp.float32)
        if j == 0:
            acc_ref[...] = part
        else:
            acc_ref[...] += part

    # ---- pooled gating head (all B_blk rows batched into single matmuls) ---
    t12 = t12_ref[...]                                             # (1, 256)
    pooled_rows = []
    for b in range(b_blk):
        y = acc_ref[b * Lp:b * Lp + L, :] + t12                    # (L, 256)
        pooled_rows.append(
            jnp.mean(y[:, :C_OUT] + y[:, C_OUT:], axis=0, keepdims=True))
    pooled = jnp.concatenate(pooled_rows, axis=0)                  # (B_blk, 128)

    h = jnp.maximum(
        jnp.dot(pooled, wfc_ref[...], preferred_element_type=jnp.float32), 0.0)
    w12 = jnp.dot(h, wfc12_ref[...], preferred_element_type=jnp.float32)

    # 2-way softmax over (wch1, wch2) == sigmoid of the logit difference;
    # reciprocal on the EUP slot.
    e = jnp.exp(w12[:, C_OUT:] - w12[:, :C_OUT])                   # exp(wch2-wch1)
    a1 = pl.reciprocal(1.0 + e, approx=True)                       # (B_blk, 128)
    a2 = 1.0 - a1

    # ---- re-weight and write out --------------------------------------------
    for b in range(b_blk):
        y = acc_ref[b * Lp:b * Lp + L, :] + t12
        out = y[:, :C_OUT] * a1[b:b + 1, :] + y[:, C_OUT:] * a2[b:b + 1, :]
        o_ref[b] = out.astype(o_ref.dtype)


def prepare_mra_params(params):
    """Fold BN scales into conv weights; build merged/paired bf16 kernel weights."""
    w1, w2, s1, t1, s2, t2, wfc, wfc1, wfc2 = params
    w1s = (w1 * s1.reshape(1, 1, C_OUT)).astype(jnp.float32)   # (K1, Cin, Cout)
    w2s = (w2 * s2.reshape(1, 1, C_OUT)).astype(jnp.float32)   # (K2, Cin, Cout)

    # Merged per-offset weight: cols [0:128] -> conv1 branch, [128:256] -> conv2.
    # conv1's 7 taps sit at padded offsets P2-P1 .. P2-P1+6 (9..15), a strict
    # subset of conv2's 0..24, so one shifted slab feeds both branches.
    wc = jnp.zeros((K2, C_IN, 2 * C_OUT), jnp.float32)
    wc = wc.at[:, :, C_OUT:].set(w2s)
    wc = wc.at[P2 - P1:P2 - P1 + K1, :, :C_OUT].set(w1s)

    # Pair consecutive taps along the contraction axis (K=256 fills the 256-deep
    # MXU on v6e/v7x).  Odd tap count -> last pair's second half is zero.
    wp = jnp.zeros((NP, 2 * C_IN, 2 * C_OUT), jnp.float32)
    wp = wp.at[:, :C_IN, :].set(wc[0::2])
    wp = wp.at[:K2 // 2, C_IN:, :].set(wc[1::2])
    wp = wp.astype(jnp.bfloat16)   # MXU runs bf16 at DEFAULT anyway; halves VMEM/DMA

    wfc12 = jnp.concatenate([wfc1, wfc2], axis=1).astype(jnp.float32)  # (32, 256)
    t12 = jnp.concatenate([t1, t2], axis=1).astype(jnp.float32)        # (1, 256)
    return wp, t12, wfc.astype(jnp.float32), wfc12


def _pick_batch_block(B, L, target_rows):
    """Largest divisor of B with b_blk * L <= target_rows (>= 1)."""
    b_blk = 1
    for d in range(1, B + 1):
        if B % d == 0 and d * L <= target_rows:
            b_blk = d
    return b_blk


def mra_forward_channels_last(x_lc, params, target_rows=512):
    """x_lc: (B, L, 128) float32. Returns (B, L, 128).

    Preferred entry point: avoids NCW<->NLC HBM relayouts if the rest of the
    model keeps a channels-last layout."""
    B, L, C = x_lc.shape
    assert C == C_IN
    wp, t12, wfc, wfc12 = prepare_mra_params(params)

    b_blk = _pick_batch_block(B, L, target_rows)   # grows matmul M for short L
    n_blocks = B // b_blk
    Lp = L + 2 * P2
    M = b_blk * Lp - 2 * P2

    # Constants never change over the grid -> single-buffer them.
    const = lambda *blk: pl.BlockSpec(blk, lambda g: (0,) * len(blk),
                                      pipeline_mode=pl.Buffered(1))

    # Scoped-VMEM budget: constants (1x) + slab + acc + double-buffered in/out.
    itemsize = x_lc.dtype.itemsize
    est = (wp.size * 2 + (t12.size + wfc.size + wfc12.size) * 4
           + b_blk * Lp * 2 * C_IN * 2            # bf16 slab
           + M * 2 * C_OUT * 4                    # f32 accumulator
           + 2 * b_blk * L * (C_IN + C_OUT) * itemsize)
    vmem_limit = int(min(max(3 * est, 32 * 2 ** 20), 64 * 2 ** 20))

    return pl.pallas_call(
        mra_kernel,
        out_shape=jax.ShapeDtypeStruct((B, L, C_OUT), x_lc.dtype),
        grid_spec=pltpu.PrefetchScalarGridSpec(
            num_scalar_prefetch=0,
            grid=(n_blocks,),
            in_specs=[
                pl.BlockSpec((b_blk, L, C_IN), lambda g: (g, 0, 0)),  # x
                const(NP, 2 * C_IN, 2 * C_OUT),   # paired conv taps (~1.7 MiB bf16)
                const(1, 2 * C_OUT),              # fused BN shift
                const(C_IN, C_MID),               # fc
                const(C_MID, 2 * C_OUT),          # fused fc1|fc2
            ],
            out_specs=pl.BlockSpec((b_blk, L, C_OUT), lambda g: (g, 0, 0)),
            scratch_shapes=[
                pltpu.VMEM((b_blk * Lp, 2 * C_IN), jnp.bfloat16),  # padded slab
                pltpu.VMEM((M, 2 * C_OUT), jnp.float32),           # conv accum
            ],
        ),
        compiler_params=pltpu.CompilerParams(
            dimension_semantics=("parallel",),     # shards grid over v7x's 2 TCs
            vmem_limit_bytes=vmem_limit),
    )(x_lc, wp, t12, wfc, wfc12)


def mra_forward(x, params):
    """x: (B, 128, L) float32 in PyTorch NCW layout. Returns (B, 128, L)."""
    B, C, L = x.shape
    assert C == C_IN
    x_lc = jnp.transpose(x, (0, 2, 1))                         # (B, L, C)
    out_lc = mra_forward_channels_last(x_lc, params)
    return jnp.transpose(out_lc, (0, 2, 1))                    # back to (B, C, L)


def make_params(key):
    """Deterministic synthetic parameters (shapes follow MRA.__init__)."""
    ks = jax.random.split(key, 16)
    n = lambda k, shape, s=0.05: (s * jax.random.normal(k, shape)).astype(jnp.float32)

    # Conv weights, stored as per-tap (K, Cin, Cout) matrices.
    w1 = n(ks[0], (K1, C_IN, C_OUT))
    w2 = n(ks[1], (K2, C_IN, C_OUT))
    b1 = n(ks[2], (C_OUT,))
    b2 = n(ks[3], (C_OUT,))

    # BatchNorm1d params / running stats (eval mode), folded with conv bias.
    eps = 1e-5
    g1 = 1.0 + n(ks[4], (C_OUT,))
    be1 = n(ks[5], (C_OUT,))
    mu1 = n(ks[6], (C_OUT,))
    v1 = 1.0 + 0.1 * jax.random.uniform(ks[7], (C_OUT,)).astype(jnp.float32)
    g2 = 1.0 + n(ks[8], (C_OUT,))
    be2 = n(ks[9], (C_OUT,))
    mu2 = n(ks[10], (C_OUT,))
    v2 = 1.0 + 0.1 * jax.random.uniform(ks[11], (C_OUT,)).astype(jnp.float32)

    s1 = (g1 / jnp.sqrt(v1 + eps)).reshape(1, C_OUT)
    t1 = (be1 + (b1 - mu1) * g1 / jnp.sqrt(v1 + eps)).reshape(1, C_OUT)
    s2 = (g2 / jnp.sqrt(v2 + eps)).reshape(1, C_OUT)
    t2 = (be2 + (b2 - mu2) * g2 / jnp.sqrt(v2 + eps)).reshape(1, C_OUT)

    # 1x1 convs (no bias): stored as (Cin, Cout) matrices.
    wfc = n(ks[12], (C_IN, C_MID), 0.1)
    wfc1 = n(ks[13], (C_MID, C_OUT), 0.1)
    wfc2 = n(ks[14], (C_MID, C_OUT), 0.1)
    return (w1, w2, s1, t1, s2, t2, wfc, wfc1, wfc2)


def mra_reference(x, params):
    """Pure-JAX/XLA reference (f32, HIGHEST precision) for correctness checking."""
    w1, w2, s1, t1, s2, t2, wfc, wfc1, wfc2 = params
    dn = ("NCH", "OIH", "NCH")
    w1_oik = jnp.transpose(w1, (2, 1, 0))   # (Cout, Cin, K)
    w2_oik = jnp.transpose(w2, (2, 1, 0))
    c1 = jax.lax.conv_general_dilated(x, w1_oik, (1,), [(P1, P1)],
                                      dimension_numbers=dn, precision=PREC_REF)
    c2 = jax.lax.conv_general_dilated(x, w2_oik, (1,), [(P2, P2)],
                                      dimension_numbers=dn, precision=PREC_REF)
    ch1 = c1 * s1.reshape(1, -1, 1) + t1.reshape(1, -1, 1)
    ch2 = c2 * s2.reshape(1, -1, 1) + t2.reshape(1, -1, 1)
    pooled = jnp.mean(ch1 + ch2, axis=-1)                          # (B, 128)
    h = jnp.maximum(jnp.dot(pooled, wfc, precision=PREC_REF), 0.0)  # (B, 32)
    l1 = jnp.dot(h, wfc1, precision=PREC_REF)                      # (B, 128)
    l2 = jnp.dot(h, wfc2, precision=PREC_REF)
    m = jnp.maximum(l1, l2)
    e1, e2 = jnp.exp(l1 - m), jnp.exp(l2 - m)
    a1 = (e1 / (e1 + e2))[:, :, None]
    a2 = (e2 / (e1 + e2))[:, :, None]
    return ch1 * a1 + ch2 * a2


if __name__ == "__main__":
    key = jax.random.PRNGKey(0)
    kx, kp = jax.random.split(key)
    B, L = 2, 16
    x = jax.random.normal(kx, (B, C_IN, L), dtype=jnp.float32)
    params = make_params(kp)

    out = jax.jit(mra_forward)(x, params)
    out = jax.block_until_ready(out)

    ref = jax.block_until_ready(mra_reference(x, params))
    assert out.shape == (B, C_IN, L)
    # Kernel conv matmuls use bf16 inputs with f32 accumulation; the reference
    # is f32/HIGHEST, so the tolerance reflects bf16 input rounding over a
    # ~3.2k-element contraction plus the approx-reciprocal gating.
    assert jnp.allclose(out, ref, rtol=6e-2, atol=6e-2), (
        float(jnp.max(jnp.abs(out - ref))))

    print("KERNEL_OK")
</pallas_src>

<mosaic_0001>
module attributes {stable_mosaic.version = 11 : i64} {
  func.func @mra_kernel(%arg0: i32, %arg1: memref<2x16x128xf32, #tpu.memory_space<vmem>>, %arg2: memref<13x256x256xbf16, #tpu.memory_space<vmem>>, %arg3: memref<1x256xf32, #tpu.memory_space<vmem>>, %arg4: memref<128x32xf32, #tpu.memory_space<vmem>>, %arg5: memref<32x256xf32, #tpu.memory_space<vmem>>, %arg6: memref<2x16x128xf32, #tpu.memory_space<vmem>>, %arg7: memref<80x256xbf16, #tpu.memory_space<vmem>>, %arg8: memref<56x256xf32, #tpu.memory_space<vmem>>) attributes {dimension_semantics = [#tpu.dimension_semantics<parallel>], iteration_bounds = array<i64: 1>, scalar_prefetch = 0 : i64, scratch_operands = 2 : i64, tpu.core_type = #tpu.core_type<tc>, window_params = [{transform_indices = @transform_0, window_bounds = array<i64: 2, 16, 128>}, {pipeline_mode = #tpu.pipeline_mode<synchronous>, transform_indices = @transform_1, window_bounds = array<i64: 13, 256, 256>}, {pipeline_mode = #tpu.pipeline_mode<synchronous>, transform_indices = @transform_2, window_bounds = array<i64: 1, 256>}, {pipeline_mode = #tpu.pipeline_mode<synchronous>, transform_indices = @transform_3, window_bounds = array<i64: 128, 32>}, {pipeline_mode = #tpu.pipeline_mode<synchronous>, transform_indices = @transform_4, window_bounds = array<i64: 32, 256>}, {transform_indices = @transform_5, window_bounds = array<i64: 2, 16, 128>}]} {
    %cst = arith.constant 0.000000e+00 : bf16
    %0 = vector.broadcast %cst : bf16 to vector<12x256xbf16>
    %c0 = arith.constant 0 : index
    %c0_0 = arith.constant 0 : index
    %1 = vector.load %arg7[%c0, %c0_0] : memref<80x256xbf16, #tpu.memory_space<vmem>>, vector<12x256xbf16>
    tpu.vector_store %arg7[%c0, %c0_0], %0 {strides = array<i32>} : memref<80x256xbf16, #tpu.memory_space<vmem>>, vector<12x256xbf16>,
    %cst_1 = arith.constant 0.000000e+00 : bf16
    %2 = vector.broadcast %cst_1 : bf16 to vector<13x256xbf16>
    %c27 = arith.constant 27 : index
    %c0_2 = arith.constant 0 : index
    %3 = vector.load %arg7[%c27, %c0_2] : memref<80x256xbf16, #tpu.memory_space<vmem>>, vector<13x256xbf16>
    tpu.vector_store %arg7[%c27, %c0_2], %2 {strides = array<i32>} : memref<80x256xbf16, #tpu.memory_space<vmem>>, vector<13x256xbf16>,
    %c0_3 = arith.constant 0 : index
    %c0_4 = arith.constant 0 : index
    %c0_5 = arith.constant 0 : index
    %4 = vector.load %arg1[%c0_3, %c0_4, %c0_5] : memref<2x16x128xf32, #tpu.memory_space<vmem>>, vector<1x16x128xf32>
    %5 = vector.shape_cast %4 : vector<1x16x128xf32> to vector<16x128xf32>
    %6 = arith.truncf %5 : vector<16x128xf32> to vector<16x128xbf16>
    %c12 = arith.constant 12 : index
    %c0_6 = arith.constant 0 : index
    %7 = vector.load %arg7[%c12, %c0_6] : memref<80x256xbf16, #tpu.memory_space<vmem>>, vector<16x128xbf16>
    tpu.vector_store %arg7[%c12, %c0_6], %6 {strides = array<i32>} : memref<80x256xbf16, #tpu.memory_space<vmem>>, vector<16x128xbf16>,
    %c11 = arith.constant 11 : index
    %c128 = arith.constant 128 : index
    %8 = vector.load %arg7[%c11, %c128] : memref<80x256xbf16, #tpu.memory_space<vmem>>, vector<16x128xbf16>
    tpu.vector_store %arg7[%c11, %c128], %6 {strides = array<i32>} : memref<80x256xbf16, #tpu.memory_space<vmem>>, vector<16x128xbf16>,
    %cst_7 = arith.constant 0.000000e+00 : bf16
    %9 = vector.broadcast %cst_7 : bf16 to vector<12x256xbf16>
    %c40 = arith.constant 40 : index
    %c0_8 = arith.constant 0 : index
    %10 = vector.load %arg7[%c40, %c0_8] : memref<80x256xbf16, #tpu.memory_space<vmem>>, vector<12x256xbf16>
    tpu.vector_store %arg7[%c40, %c0_8], %9 {strides = array<i32>} : memref<80x256xbf16, #tpu.memory_space<vmem>>, vector<12x256xbf16>,
    %cst_9 = arith.constant 0.000000e+00 : bf16
    %11 = vector.broadcast %cst_9 : bf16 to vector<13x256xbf16>
    %c67 = arith.constant 67 : index
    %c0_10 = arith.constant 0 : index
    %12 = vector.load %arg7[%c67, %c0_10] : memref<80x256xbf16, #tpu.memory_space<vmem>>, vector<13x256xbf16>
    tpu.vector_store %arg7[%c67, %c0_10], %11 {strides = array<i32>} : memref<80x256xbf16, #tpu.memory_space<vmem>>, vector<13x256xbf16>,
    %c1 = arith.constant 1 : index
    %c0_11 = arith.constant 0 : index
    %c0_12 = arith.constant 0 : index
    %13 = vector.load %arg1[%c1, %c0_11, %c0_12] : memref<2x16x128xf32, #tpu.memory_space<vmem>>, vector<1x16x128xf32>
    %14 = vector.shape_cast %13 : vector<1x16x128xf32> to vector<16x128xf32>
    %15 = arith.truncf %14 : vector<16x128xf32> to vector<16x128xbf16>
    %c52 = arith.constant 52 : index
    %c0_13 = arith.constant 0 : index
    %16 = vector.load %arg7[%c52, %c0_13] : memref<80x256xbf16, #tpu.memory_space<vmem>>, vector<16x128xbf16>
    tpu.vector_store %arg7[%c52, %c0_13], %15 {strides = array<i32>} : memref<80x256xbf16, #tpu.memory_space<vmem>>, vector<16x128xbf16>,
    %c51 = arith.constant 51 : index
    %c128_14 = arith.constant 128 : index
    %17 = vector.load %arg7[%c51, %c128_14] : memref<80x256xbf16, #tpu.memory_space<vmem>>, vector<16x128xbf16>
    tpu.vector_store %arg7[%c51, %c128_14], %15 {strides = array<i32>} : memref<80x256xbf16, #tpu.memory_space<vmem>>, vector<16x128xbf16>,
    %c0_15 = arith.constant 0 : index
    %c0_16 = arith.constant 0 : index
    %18 = vector.load %arg7[%c0_15, %c0_16] : memref<80x256xbf16, #tpu.memory_space<vmem>>, vector<56x256xbf16>
    %c0_17 = arith.constant 0 : index
    %c0_18 = arith.constant 0 : index
    %c0_19 = arith.constant 0 : index
    %19 = vector.load %arg2[%c0_17, %c0_18, %c0_19] : memref<13x256x256xbf16, #tpu.memory_space<vmem>>, vector<1x256x256xbf16>
    %20 = vector.shape_cast %19 : vector<1x256x256xbf16> to vector<256x256xbf16>
    %cst_20 = arith.constant dense<0.000000e+00> : vector<56x256xf32>
    %21 = tpu.matmul %18, %20, %cst_20 {dimension_numbers = #tpu.dot_dimension_numbers<[1], [0], [0], [1], [0, 0, 1, 1], [], []>} : vector<56x256xbf16>, vector<256x256xbf16>, vector<56x256xf32> -> vector<56x256xf32>
    %c0_21 = arith.constant 0 : index
    %c0_22 = arith.constant 0 : index
    %22 = vector.load %arg8[%c0_21, %c0_22] : memref<56x256xf32, #tpu.memory_space<vmem>>, vector<56x256xf32>
    tpu.vector_store %arg8[%c0_21, %c0_22], %21 {strides = array<i32>} : memref<56x256xf32, #tpu.memory_space<vmem>>, vector<56x256xf32>,
    %c2 = arith.constant 2 : index
    %c0_23 = arith.constant 0 : index
    %23 = vector.load %arg7[%c2, %c0_23] : memref<80x256xbf16, #tpu.memory_space<vmem>>, vector<56x256xbf16>
    %c1_24 = arith.constant 1 : index
    %c0_25 = arith.constant 0 : index
    %c0_26 = arith.constant 0 : index
    %24 = vector.load %arg2[%c1_24, %c0_25, %c0_26] : memref<13x256x256xbf16, #tpu.memory_space<vmem>>, vector<1x256x256xbf16>
    %25 = vector.shape_cast %24 : vector<1x256x256xbf16> to vector<256x256xbf16>
    %cst_27 = arith.constant dense<0.000000e+00> : vector<56x256xf32>
    %26 = tpu.matmul %23, %25, %cst_27 {dimension_numbers = #tpu.dot_dimension_numbers<[1], [0], [0], [1], [0, 0, 1, 1], [], []>} : vector<56x256xbf16>, vector<256x256xbf16>, vector<56x256xf32> -> vector<56x256xf32>
    %c0_28 = arith.constant 0 : index
    %c0_29 = arith.constant 0 : index
    %27 = vector.load %arg8[%c0_28, %c0_29] : memref<56x256xf32, #tpu.memory_space<vmem>>, vector<56x256xf32>
    %28 = arith.addf %27, %26 : vector<56x256xf32>
    %c0_30 = arith.constant 0 : index
    %c0_31 = arith.constant 0 : index
    %29 = vector.load %arg8[%c0_30, %c0_31] : memref<56x256xf32, #tpu.memory_space<vmem>>, vector<56x256xf32>
    tpu.vector_store %arg8[%c0_30, %c0_31], %28 {strides = array<i32>} : memref<56x256xf32, #tpu.memory_space<vmem>>, vector<56x256xf32>,
    %c4 = arith.constant 4 : index
    %c0_32 = arith.constant 0 : index
    %30 = vector.load %arg7[%c4, %c0_32] : memref<80x256xbf16, #tpu.memory_space<vmem>>, vector<56x256xbf16>
    %c2_33 = arith.constant 2 : index
    %c0_34 = arith.constant 0 : index
    %c0_35 = arith.constant 0 : index
    %31 = vector.load %arg2[%c2_33, %c0_34, %c0_35] : memref<13x256x256xbf16, #tpu.memory_space<vmem>>, vector<1x256x256xbf16>
    %32 = vector.shape_cast %31 : vector<1x256x256xbf16> to vector<256x256xbf16>
    %cst_36 = arith.constant dense<0.000000e+00> : vector<56x256xf32>
    %33 = tpu.matmul %30, %32, %cst_36 {dimension_numbers = #tpu.dot_dimension_numbers<[1], [0], [0], [1], [0, 0, 1, 1], [], []>} : vector<56x256xbf16>, vector<256x256xbf16>, vector<56x256xf32> -> vector<56x256xf32>
    %c0_37 = arith.constant 0 : index
    %c0_38 = arith.constant 0 : index
    %34 = vector.load %arg8[%c0_37, %c0_38] : memref<56x256xf32, #tpu.memory_space<vmem>>, vector<56x256xf32>
    %35 = arith.addf %34, %33 : vector<56x256xf32>
    %c0_39 = arith.constant 0 : index
    %c0_40 = arith.constant 0 : index
    %36 = vector.load %arg8[%c0_39, %c0_40] : memref<56x256xf32, #tpu.memory_space<vmem>>, vector<56x256xf32>
    tpu.vector_store %arg8[%c0_39, %c0_40], %35 {strides = array<i32>} : memref<56x256xf32, #tpu.memory_space<vmem>>, vector<56x256xf32>,
    %c6 = arith.constant 6 : index
    %c0_41 = arith.constant 0 : index
    %37 = vector.load %arg7[%c6, %c0_41] : memref<80x256xbf16, #tpu.memory_space<vmem>>, vector<56x256xbf16>
    %c3 = arith.constant 3 : index
    %c0_42 = arith.constant 0 : index
    %c0_43 = arith.constant 0 : index
    %38 = vector.load %arg2[%c3, %c0_42, %c0_43] : memref<13x256x256xbf16, #tpu.memory_space<vmem>>, vector<1x256x256xbf16>
    %39 = vector.shape_cast %38 : vector<1x256x256xbf16> to vector<256x256xbf16>
    %cst_44 = arith.constant dense<0.000000e+00> : vector<56x256xf32>
    %40 = tpu.matmul %37, %39, %cst_44 {dimension_numbers = #tpu.dot_dimension_numbers<[1], [0], [0], [1], [0, 0, 1, 1], [], []>} : vector<56x256xbf16>, vector<256x256xbf16>, vector<56x256xf32> -> vector<56x256xf32>
    %c0_45 = arith.constant 0 : index
    %c0_46 = arith.constant 0 : index
    %41 = vector.load %arg8[%c0_45, %c0_46] : memref<56x256xf32, #tpu.memory_space<vmem>>, vector<56x256xf32>
    %42 = arith.addf %41, %40 : vector<56x256xf32>
    %c0_47 = arith.constant 0 : index
    %c0_48 = arith.constant 0 : index
    %43 = vector.load %arg8[%c0_47, %c0_48] : memref<56x256xf32, #tpu.memory_space<vmem>>, vector<56x256xf32>
    tpu.vector_store %arg8[%c0_47, %c0_48], %42 {strides = array<i32>} : memref<56x256xf32, #tpu.memory_space<vmem>>, vector<56x256xf32>,
    %c8 = arith.constant 8 : index
    %c0_49 = arith.constant 0 : index
    %44 = vector.load %arg7[%c8, %c0_49] : memref<80x256xbf16, #tpu.memory_space<vmem>>, vector<56x256xbf16>
    %c4_50 = arith.constant 4 : index
    %c0_51 = arith.constant 0 : index
    %c0_52 = arith.constant 0 : index
    %45 = vector.load %arg2[%c4_50, %c0_51, %c0_52] : memref<13x256x256xbf16, #tpu.memory_space<vmem>>, vector<1x256x256xbf16>
    %46 = vector.shape_cast %45 : vector<1x256x256xbf16> to vector<256x256xbf16>
    %cst_53 = arith.constant dense<0.000000e+00> : vector<56x256xf32>
    %47 = tpu.matmul %44, %46, %cst_53 {dimension_numbers = #tpu.dot_dimension_numbers<[1], [0], [0], [1], [0, 0, 1, 1], [], []>} : vector<56x256xbf16>, vector<256x256xbf16>, vector<56x256xf32> -> vector<56x256xf32>
    %c0_54 = arith.constant 0 : index
    %c0_55 = arith.constant 0 : index
    %48 = vector.load %arg8[%c0_54, %c0_55] : memref<56x256xf32, #tpu.memory_space<vmem>>, vector<56x256xf32>
    %49 = arith.addf %48, %47 : vector<56x256xf32>
    %c0_56 = arith.constant 0 : index
    %c0_57 = arith.constant 0 : index
    %50 = vector.load %arg8[%c0_56, %c0_57] : memref<56x256xf32, #tpu.memory_space<vmem>>, vector<56x256xf32>
    tpu.vector_store %arg8[%c0_56, %c0_57], %49 {strides = array<i32>} : memref<56x256xf32, #tpu.memory_space<vmem>>, vector<56x256xf32>,
    %c10 = arith.constant 10 : index
    %c0_58 = arith.constant 0 : index
    %51 = vector.load %arg7[%c10, %c0_58] : memref<80x256xbf16, #tpu.memory_space<vmem>>, vector<56x256xbf16>
    %c5 = arith.constant 5 : index
    %c0_59 = arith.constant 0 : index
    %c0_60 = arith.constant 0 : index
    %52 = vector.load %arg2[%c5, %c0_59, %c0_60] : memref<13x256x256xbf16, #tpu.memory_space<vmem>>, vector<1x256x256xbf16>
    %53 = vector.shape_cast %52 : vector<1x256x256xbf16> to vector<256x256xbf16>
    %cst_61 = arith.constant dense<0.000000e+00> : vector<56x256xf32>
    %54 = tpu.matmul %51, %53, %cst_61 {dimension_numbers = #tpu.dot_dimension_numbers<[1], [0], [0], [1], [0, 0, 1, 1], [], []>} : vector<56x256xbf16>, vector<256x256xbf16>, vector<56x256xf32> -> vector<56x256xf32>
    %c0_62 = arith.constant 0 : index
    %c0_63 = arith.constant 0 : index
    %55 = vector.load %arg8[%c0_62, %c0_63] : memref<56x256xf32, #tpu.memory_space<vmem>>, vector<56x256xf32>
    %56 = arith.addf %55, %54 : vector<56x256xf32>
    %c0_64 = arith.constant 0 : index
    %c0_65 = arith.constant 0 : index
    %57 = vector.load %arg8[%c0_64, %c0_65] : memref<56x256xf32, #tpu.memory_space<vmem>>, vector<56x256xf32>
    tpu.vector_store %arg8[%c0_64, %c0_65], %56 {strides = array<i32>} : memref<56x256xf32, #tpu.memory_space<vmem>>, vector<56x256xf32>,
    %c12_66 = arith.constant 12 : index
    %c0_67 = arith.constant 0 : index
    %58 = vector.load %arg7[%c12_66, %c0_67] : memref<80x256xbf16, #tpu.memory_space<vmem>>, vector<56x256xbf16>
    %c6_68 = arith.constant 6 : index
    %c0_69 = arith.constant 0 : index
    %c0_70 = arith.constant 0 : index
    %59 = vector.load %arg2[%c6_68, %c0_69, %c0_70] : memref<13x256x256xbf16, #tpu.memory_space<vmem>>, vector<1x256x256xbf16>
    %60 = vector.shape_cast %59 : vector<1x256x256xbf16> to vector<256x256xbf16>
    %cst_71 = arith.constant dense<0.000000e+00> : vector<56x256xf32>
    %61 = tpu.matmul %58, %60, %cst_71 {dimension_numbers = #tpu.dot_dimension_numbers<[1], [0], [0], [1], [0, 0, 1, 1], [], []>} : vector<56x256xbf16>, vector<256x256xbf16>, vector<56x256xf32> -> vector<56x256xf32>
    %c0_72 = arith.constant 0 : index
    %c0_73 = arith.constant 0 : index
    %62 = vector.load %arg8[%c0_72, %c0_73] : memref<56x256xf32, #tpu.memory_space<vmem>>, vector<56x256xf32>
    %63 = arith.addf %62, %61 : vector<56x256xf32>
    %c0_74 = arith.constant 0 : index
    %c0_75 = arith.constant 0 : index
    %64 = vector.load %arg8[%c0_74, %c0_75] : memref<56x256xf32, #tpu.memory_space<vmem>>, vector<56x256xf32>
    tpu.vector_store %arg8[%c0_74, %c0_75], %63 {strides = array<i32>} : memref<56x256xf32, #tpu.memory_space<vmem>>, vector<56x256xf32>,
    %c14 = arith.constant 14 : index
    %c0_76 = arith.constant 0 : index
    %65 = vector.load %arg7[%c14, %c0_76] : memref<80x256xbf16, #tpu.memory_space<vmem>>, vector<56x256xbf16>
    %c7 = arith.constant 7 : index
    %c0_77 = arith.constant 0 : index
    %c0_78 = arith.constant 0 : index
    %66 = vector.load %arg2[%c7, %c0_77, %c0_78] : memref<13x256x256xbf16, #tpu.memory_space<vmem>>, vector<1x256x256xbf16>
    %67 = vector.shape_cast %66 : vector<1x256x256xbf16> to vector<256x256xbf16>
    %cst_79 = arith.constant dense<0.000000e+00> : vector<56x256xf32>
    %68 = tpu.matmul %65, %67, %cst_79 {dimension_numbers = #tpu.dot_dimension_numbers<[1], [0], [0], [1], [0, 0, 1, 1], [], []>} : vector<56x256xbf16>, vector<256x256xbf16>, vector<56x256xf32> -> vector<56x256xf32>
    %c0_80 = arith.constant 0 : index
    %c0_81 = arith.constant 0 : index
    %69 = vector.load %arg8[%c0_80, %c0_81] : memref<56x256xf32, #tpu.memory_space<vmem>>, vector<56x256xf32>
    %70 = arith.addf %69, %68 : vector<56x256xf32>
    %c0_82 = arith.constant 0 : index
    %c0_83 = arith.constant 0 : index
    %71 = vector.load %arg8[%c0_82, %c0_83] : memref<56x256xf32, #tpu.memory_space<vmem>>, vector<56x256xf32>
    tpu.vector_store %arg8[%c0_82, %c0_83], %70 {strides = array<i32>} : memref<56x256xf32, #tpu.memory_space<vmem>>, vector<56x256xf32>,
    %c16 = arith.constant 16 : index
    %c0_84 = arith.constant 0 : index
    %72 = vector.load %arg7[%c16, %c0_84] : memref<80x256xbf16, #tpu.memory_space<vmem>>, vector<56x256xbf16>
    %c8_85 = arith.constant 8 : index
    %c0_86 = arith.constant 0 : index
    %c0_87 = arith.constant 0 : index
    %73 = vector.load %arg2[%c8_85, %c0_86, %c0_87] : memref<13x256x256xbf16, #tpu.memory_space<vmem>>, vector<1x256x256xbf16>
    %74 = vector.shape_cast %73 : vector<1x256x256xbf16> to vector<256x256xbf16>
    %cst_88 = arith.constant dense<0.000000e+00> : vector<56x256xf32>
    %75 = tpu.matmul %72, %74, %cst_88 {dimension_numbers = #tpu.dot_dimension_numbers<[1], [0], [0], [1], [0, 0, 1, 1], [], []>} : vector<56x256xbf16>, vector<256x256xbf16>, vector<56x256xf32> -> vector<56x256xf32>
    %c0_89 = arith.constant 0 : index
    %c0_90 = arith.constant 0 : index
    %76 = vector.load %arg8[%c0_89, %c0_90] : memref<56x256xf32, #tpu.memory_space<vmem>>, vector<56x256xf32>
    %77 = arith.addf %76, %75 : vector<56x256xf32>
    %c0_91 = arith.constant 0 : index
    %c0_92 = arith.constant 0 : index
    %78 = vector.load %arg8[%c0_91, %c0_92] : memref<56x256xf32, #tpu.memory_space<vmem>>, vector<56x256xf32>
    tpu.vector_store %arg8[%c0_91, %c0_92], %77 {strides = array<i32>} : memref<56x256xf32, #tpu.memory_space<vmem>>, vector<56x256xf32>,
    %c18 = arith.constant 18 : index
    %c0_93 = arith.constant 0 : index
    %79 = vector.load %arg7[%c18, %c0_93] : memref<80x256xbf16, #tpu.memory_space<vmem>>, vector<56x256xbf16>
    %c9 = arith.constant 9 : index
    %c0_94 = arith.constant 0 : index
    %c0_95 = arith.constant 0 : index
    %80 = vector.load %arg2[%c9, %c0_94, %c0_95] : memref<13x256x256xbf16, #tpu.memory_space<vmem>>, vector<1x256x256xbf16>
    %81 = vector.shape_cast %80 : vector<1x256x256xbf16> to vector<256x256xbf16>
    %cst_96 = arith.constant dense<0.000000e+00> : vector<56x256xf32>
    %82 = tpu.matmul %79, %81, %cst_96 {dimension_numbers = #tpu.dot_dimension_numbers<[1], [0], [0], [1], [0, 0, 1, 1], [], []>} : vector<56x256xbf16>, vector<256x256xbf16>, vector<56x256xf32> -> vector<56x256xf32>
    %c0_97 = arith.constant 0 : index
    %c0_98 = arith.constant 0 : index
    %83 = vector.load %arg8[%c0_97, %c0_98] : memref<56x256xf32, #tpu.memory_space<vmem>>, vector<56x256xf32>
    %84 = arith.addf %83, %82 : vector<56x256xf32>
    %c0_99 = arith.constant 0 : index
    %c0_100 = arith.constant 0 : index
    %85 = vector.load %arg8[%c0_99, %c0_100] : memref<56x256xf32, #tpu.memory_space<vmem>>, vector<56x256xf32>
    tpu.vector_store %arg8[%c0_99, %c0_100], %84 {strides = array<i32>} : memref<56x256xf32, #tpu.memory_space<vmem>>, vector<56x256xf32>,
    %c20 = arith.constant 20 : index
    %c0_101 = arith.constant 0 : index
    %86 = vector.load %arg7[%c20, %c0_101] : memref<80x256xbf16, #tpu.memory_space<vmem>>, vector<56x256xbf16>
    %c10_102 = arith.constant 10 : index
    %c0_103 = arith.constant 0 : index
    %c0_104 = arith.constant 0 : index
    %87 = vector.load %arg2[%c10_102, %c0_103, %c0_104] : memref<13x256x256xbf16, #tpu.memory_space<vmem>>, vector<1x256x256xbf16>
    %88 = vector.shape_cast %87 : vector<1x256x256xbf16> to vector<256x256xbf16>
    %cst_105 = arith.constant dense<0.000000e+00> : vector<56x256xf32>
    %89 = tpu.matmul %86, %88, %cst_105 {dimension_numbers = #tpu.dot_dimension_numbers<[1], [0], [0], [1], [0, 0, 1, 1], [], []>} : vector<56x256xbf16>, vector<256x256xbf16>, vector<56x256xf32> -> vector<56x256xf32>
    %c0_106 = arith.constant 0 : index
    %c0_107 = arith.constant 0 : index
    %90 = vector.load %arg8[%c0_106, %c0_107] : memref<56x256xf32, #tpu.memory_space<vmem>>, vector<56x256xf32>
    %91 = arith.addf %90, %89 : vector<56x256xf32>
    %c0_108 = arith.constant 0 : index
    %c0_109 = arith.constant 0 : index
    %92 = vector.load %arg8[%c0_108, %c0_109] : memref<56x256xf32, #tpu.memory_space<vmem>>, vector<56x256xf32>
    tpu.vector_store %arg8[%c0_108, %c0_109], %91 {strides = array<i32>} : memref<56x256xf32, #tpu.memory_space<vmem>>, vector<56x256xf32>,
    %c22 = arith.constant 22 : index
    %c0_110 = arith.constant 0 : index
    %93 = vector.load %arg7[%c22, %c0_110] : memref<80x256xbf16, #tpu.memory_space<vmem>>, vector<56x256xbf16>
    %c11_111 = arith.constant 11 : index
    %c0_112 = arith.constant 0 : index
    %c0_113 = arith.constant 0 : index
    %94 = vector.load %arg2[%c11_111, %c0_112, %c0_113] : memref<13x256x256xbf16, #tpu.memory_space<vmem>>, vector<1x256x256xbf16>
    %95 = vector.shape_cast %94 : vector<1x256x256xbf16> to vector<256x256xbf16>
    %cst_114 = arith.constant dense<0.000000e+00> : vector<56x256xf32>
    %96 = tpu.matmul %93, %95, %cst_114 {dimension_numbers = #tpu.dot_dimension_numbers<[1], [0], [0], [1], [0, 0, 1, 1], [], []>} : vector<56x256xbf16>, vector<256x256xbf16>, vector<56x256xf32> -> vector<56x256xf32>
    %c0_115 = arith.constant 0 : index
    %c0_116 = arith.constant 0 : index
    %97 = vector.load %arg8[%c0_115, %c0_116] : memref<56x256xf32, #tpu.memory_space<vmem>>, vector<56x256xf32>
    %98 = arith.addf %97, %96 : vector<56x256xf32>
    %c0_117 = arith.constant 0 : index
    %c0_118 = arith.constant 0 : index
    %99 = vector.load %arg8[%c0_117, %c0_118] : memref<56x256xf32, #tpu.memory_space<vmem>>, vector<56x256xf32>
    tpu.vector_store %arg8[%c0_117, %c0_118], %98 {strides = array<i32>} : memref<56x256xf32, #tpu.memory_space<vmem>>, vector<56x256xf32>,
    %c24 = arith.constant 24 : index
    %c0_119 = arith.constant 0 : index
    %100 = vector.load %arg7[%c24, %c0_119] : memref<80x256xbf16, #tpu.memory_space<vmem>>, vector<56x256xbf16>
    %c12_120 = arith.constant 12 : index
    %c0_121 = arith.constant 0 : index
    %c0_122 = arith.constant 0 : index
    %101 = vector.load %arg2[%c12_120, %c0_121, %c0_122] : memref<13x256x256xbf16, #tpu.memory_space<vmem>>, vector<1x256x256xbf16>
    %102 = vector.shape_cast %101 : vector<1x256x256xbf16> to vector<256x256xbf16>
    %cst_123 = arith.constant dense<0.000000e+00> : vector<56x256xf32>
    %103 = tpu.matmul %100, %102, %cst_123 {dimension_numbers = #tpu.dot_dimension_numbers<[1], [0], [0], [1], [0, 0, 1, 1], [], []>} : vector<56x256xbf16>, vector<256x256xbf16>, vector<56x256xf32> -> vector<56x256xf32>
    %c0_124 = arith.constant 0 : index
    %c0_125 = arith.constant 0 : index
    %104 = vector.load %arg8[%c0_124, %c0_125] : memref<56x256xf32, #tpu.memory_space<vmem>>, vector<56x256xf32>
    %105 = arith.addf %104, %103 : vector<56x256xf32>
    %c0_126 = arith.constant 0 : index
    %c0_127 = arith.constant 0 : index
    %106 = vector.load %arg8[%c0_126, %c0_127] : memref<56x256xf32, #tpu.memory_space<vmem>>, vector<56x256xf32>
    tpu.vector_store %arg8[%c0_126, %c0_127], %105 {strides = array<i32>} : memref<56x256xf32, #tpu.memory_space<vmem>>, vector<56x256xf32>,
    %c0_128 = arith.constant 0 : index
    %c0_129 = arith.constant 0 : index
    %107 = vector.load %arg3[%c0_128, %c0_129] : memref<1x256xf32, #tpu.memory_space<vmem>>, vector<1x256xf32>
    %c0_130 = arith.constant 0 : index
    %c0_131 = arith.constant 0 : index
    %108 = vector.load %arg8[%c0_130, %c0_131] : memref<56x256xf32, #tpu.memory_space<vmem>>, vector<16x256xf32>
    %109 = vector.broadcast %107 : vector<1x256xf32> to vector<16x256xf32>
    %110 = arith.addf %108, %109 : vector<16x256xf32>
    %111 = vector.extract_strided_slice %110 {offsets = [0, 0], sizes = [16, 128], strides = [1, 1]} : vector<16x256xf32> to vector<16x128xf32>
    %112 = vector.extract_strided_slice %110 {offsets = [0, 128], sizes = [16, 128], strides = [1, 1]} : vector<16x256xf32> to vector<16x128xf32>
    %113 = arith.addf %111, %112 : vector<16x128xf32>
    %cst_132 = arith.constant dense<0.000000e+00> : vector<128xf32>
    %114 = vector.multi_reduction <add>, %113, %cst_132 [0] : vector<16x128xf32> to vector<128xf32>
    %115 = vector.shape_cast %114 : vector<128xf32> to vector<1x128xf32>
    %cst_133 = arith.constant 1.600000e+01 : f32
    %116 = vector.broadcast %cst_133 : f32 to vector<1x128xf32>
    %117 = arith.divf %115, %116 : vector<1x128xf32>
    %c40_134 = arith.constant 40 : index
    %c0_135 = arith.constant 0 : index
    %118 = vector.load %arg8[%c40_134, %c0_135] : memref<56x256xf32, #tpu.memory_space<vmem>>, vector<16x256xf32>
    %119 = vector.broadcast %107 : vector<1x256xf32> to vector<16x256xf32>
    %120 = arith.addf %118, %119 : vector<16x256xf32>
    %121 = vector.extract_strided_slice %120 {offsets = [0, 0], sizes = [16, 128], strides = [1, 1]} : vector<16x256xf32> to vector<16x128xf32>
    %122 = vector.extract_strided_slice %120 {offsets = [0, 128], sizes = [16, 128], strides = [1, 1]} : vector<16x256xf32> to vector<16x128xf32>
    %123 = arith.addf %121, %122 : vector<16x128xf32>
    %cst_136 = arith.constant dense<0.000000e+00> : vector<128xf32>
    %124 = vector.multi_reduction <add>, %123, %cst_136 [0] : vector<16x128xf32> to vector<128xf32>
    %125 = vector.shape_cast %124 : vector<128xf32> to vector<1x128xf32>
    %cst_137 = arith.constant 1.600000e+01 : f32
    %126 = vector.broadcast %cst_137 : f32 to vector<1x128xf32>
    %127 = arith.divf %125, %126 : vector<1x128xf32>
    %128 = tpu.concatenate %117, %127 in 0 : vector<1x128xf32>, vector<1x128xf32> -> vector<2x128xf32>
    %c0_138 = arith.constant 0 : index
    %c0_139 = arith.constant 0 : index
    %129 = vector.load %arg4[%c0_138, %c0_139] : memref<128x32xf32, #tpu.memory_space<vmem>>, vector<128x32xf32>
    %cst_140 = arith.constant dense<0.000000e+00> : vector<2x32xf32>
    %130 = tpu.matmul %128, %129, %cst_140 {dimension_numbers = #tpu.dot_dimension_numbers<[1], [0], [0], [1], [0, 0, 1, 1], [], []>} : vector<2x128xf32>, vector<128x32xf32>, vector<2x32xf32> -> vector<2x32xf32>
    %cst_141 = arith.constant 0.000000e+00 : f32
    %131 = vector.broadcast %cst_141 : f32 to vector<2x32xf32>
    %132 = arith.maximumf %130, %131 : vector<2x32xf32>
    %c0_142 = arith.constant 0 : index
    %c0_143 = arith.constant 0 : index
    %133 = vector.load %arg5[%c0_142, %c0_143] : memref<32x256xf32, #tpu.memory_space<vmem>>, vector<32x256xf32>
    %cst_144 = arith.constant dense<0.000000e+00> : vector<2x256xf32>
    %134 = tpu.matmul %132, %133, %cst_144 {dimension_numbers = #tpu.dot_dimension_numbers<[1], [0], [0], [1], [0, 0, 1, 1], [], []>} : vector<2x32xf32>, vector<32x256xf32>, vector<2x256xf32> -> vector<2x256xf32>
    %135 = vector.extract_strided_slice %134 {offsets = [0, 128], sizes = [2, 128], strides = [1, 1]} : vector<2x256xf32> to vector<2x128xf32>
    %136 = vector.extract_strided_slice %134 {offsets = [0, 0], sizes = [2, 128], strides = [1, 1]} : vector<2x256xf32> to vector<2x128xf32>
    %137 = arith.subf %135, %136 : vector<2x128xf32>
    %138 = math.exp %137 : vector<2x128xf32>
    %cst_145 = arith.constant 1.000000e+00 : f32
    %139 = vector.broadcast %cst_145 : f32 to vector<2x128xf32>
    %140 = arith.addf %139, %138 : vector<2x128xf32>
    %141 = tpu.reciprocal %140 {approx = true} : vector<2x128xf32> -> vector<2x128xf32>
    %cst_146 = arith.constant 1.000000e+00 : f32
    %142 = vector.broadcast %cst_146 : f32 to vector<2x128xf32>
    %143 = arith.subf %142, %141 : vector<2x128xf32>
    %c0_147 = arith.constant 0 : index
    %c0_148 = arith.constant 0 : index
    %144 = vector.load %arg8[%c0_147, %c0_148] : memref<56x256xf32, #tpu.memory_space<vmem>>, vector<16x256xf32>
    %145 = vector.broadcast %107 : vector<1x256xf32> to vector<16x256xf32>
    %146 = arith.addf %144, %145 : vector<16x256xf32>
    %147 = vector.extract_strided_slice %146 {offsets = [0, 0], sizes = [16, 128], strides = [1, 1]} : vector<16x256xf32> to vector<16x128xf32>
    %148 = vector.extract_strided_slice %141 {offsets = [0, 0], sizes = [1, 128], strides = [1, 1]} : vector<2x128xf32> to vector<1x128xf32>
    %149 = vector.broadcast %148 : vector<1x128xf32> to vector<16x128xf32>
    %150 = arith.mulf %147, %149 : vector<16x128xf32>
    %151 = vector.extract_strided_slice %146 {offsets = [0, 128], sizes = [16, 128], strides = [1, 1]} : vector<16x256xf32> to vector<16x128xf32>
    %152 = vector.extract_strided_slice %143 {offsets = [0, 0], sizes = [1, 128], strides = [1, 1]} : vector<2x128xf32> to vector<1x128xf32>
    %153 = vector.broadcast %152 : vector<1x128xf32> to vector<16x128xf32>
    %154 = arith.mulf %151, %153 : vector<16x128xf32>
    %155 = arith.addf %150, %154 : vector<16x128xf32>
    %c0_149 = arith.constant 0 : index
    %c0_150 = arith.constant 0 : index
    %c0_151 = arith.constant 0 : index
    %156 = vector.load %arg6[%c0_149, %c0_150, %c0_151] : memref<2x16x128xf32, #tpu.memory_space<vmem>>, vector<1x16x128xf32>
    %157 = vector.shape_cast %156 : vector<1x16x128xf32> to vector<16x128xf32>
    %158 = vector.shape_cast %155 : vector<16x128xf32> to vector<1x16x128xf32>
    tpu.vector_store %arg6[%c0_149, %c0_150, %c0_151], %158 {strides = array<i32>} : memref<2x16x128xf32, #tpu.memory_space<vmem>>, vector<1x16x128xf32>,
    %c40_152 = arith.constant 40 : index
    %c0_153 = arith.constant 0 : index
    %159 = vector.load %arg8[%c40_152, %c0_153] : memref<56x256xf32, #tpu.memory_space<vmem>>, vector<16x256xf32>
    %160 = vector.broadcast %107 : vector<1x256xf32> to vector<16x256xf32>
    %161 = arith.addf %159, %160 : vector<16x256xf32>
    %162 = vector.extract_strided_slice %161 {offsets = [0, 0], sizes = [16, 128], strides = [1, 1]} : vector<16x256xf32> to vector<16x128xf32>
    %163 = vector.extract_strided_slice %141 {offsets = [1, 0], sizes = [1, 128], strides = [1, 1]} : vector<2x128xf32> to vector<1x128xf32>
    %164 = vector.broadcast %163 : vector<1x128xf32> to vector<16x128xf32>
    %165 = arith.mulf %162, %164 : vector<16x128xf32>
    %166 = vector.extract_strided_slice %161 {offsets = [0, 128], sizes = [16, 128], strides = [1, 1]} : vector<16x256xf32> to vector<16x128xf32>
    %167 = vector.extract_strided_slice %143 {offsets = [1, 0], sizes = [1, 128], strides = [1, 1]} : vector<2x128xf32> to vector<1x128xf32>
    %168 = vector.broadcast %167 : vector<1x128xf32> to vector<16x128xf32>
    %169 = arith.mulf %166, %168 : vector<16x128xf32>
    %170 = arith.addf %165, %169 : vector<16x128xf32>
    %c1_154 = arith.constant 1 : index
    %c0_155 = arith.constant 0 : index
    %c0_156 = arith.constant 0 : index
    %171 = vector.load %arg6[%c1_154, %c0_155, %c0_156] : memref<2x16x128xf32, #tpu.memory_space<vmem>>, vector<1x16x128xf32>
    %172 = vector.shape_cast %171 : vector<1x16x128xf32> to vector<16x128xf32>
    %173 = vector.shape_cast %170 : vector<16x128xf32> to vector<1x16x128xf32>
    tpu.vector_store %arg6[%c1_154, %c0_155, %c0_156], %173 {strides = array<i32>} : memref<2x16x128xf32, #tpu.memory_space<vmem>>, vector<1x16x128xf32>,
    return
  }
  func.func @transform_0(%arg0: i32) -> (i32, i32, i32) {
    %c0_i32 = arith.constant 0 : i32
    %c0_i32_0 = arith.constant 0 : i32
    %c0_i32_1 = arith.constant 0 : i32
    return %arg0, %c0_i32, %c0_i32_0 : i32, i32, i32
  }
  func.func @transform_1(%arg0: i32) -> (i32, i32, i32) {
    %c0_i32 = arith.constant 0 : i32
    %c0_i32_0 = arith.constant 0 : i32
    %c0_i32_1 = arith.constant 0 : i32
    %c0_i32_2 = arith.constant 0 : i32
    return %c0_i32, %c0_i32_0, %c0_i32_1 : i32, i32, i32
  }
  func.func @transform_2(%arg0: i32) -> (i32, i32) {
    %c0_i32 = arith.constant 0 : i32
    %c0_i32_0 = arith.constant 0 : i32
    %c0_i32_1 = arith.constant 0 : i32
    return %c0_i32, %c0_i32_0 : i32, i32
  }
  func.func @transform_3(%arg0: i32) -> (i32, i32) {
    %c0_i32 = arith.constant 0 : i32
    %c0_i32_0 = arith.constant 0 : i32
    %c0_i32_1 = arith.constant 0 : i32
    return %c0_i32, %c0_i32_0 : i32, i32
  }
  func.func @transform_4(%arg0: i32) -> (i32, i32) {
    %c0_i32 = arith.constant 0 : i32
    %c0_i32_0 = arith.constant 0 : i32
    %c0_i32_1 = arith.constant 0 : i32
    return %c0_i32, %c0_i32_0 : i32, i32
  }
  func.func @transform_5(%arg0: i32) -> (i32, i32, i32) {
    %c0_i32 = arith.constant 0 : i32
    %c0_i32_0 = arith.constant 0 : i32
    %c0_i32_1 = arith.constant 0 : i32
    return %arg0, %c0_i32, %c0_i32_0 : i32, i32, i32
  }
}

</mosaic_0001>

<bundles_post_ra>
// kernel: mra_forward.1
= control target key start
LH: loop header
LB: loop body
LE: loop exit
PB: predicated region body
PF: predicated region fallthrough
CT: control target
= control target key end

     0   :  { %vm24_vm0 = vcmask 1043457   ;;  %vm25_vm1 = vsmask.f32 7942  ;;  %vm27_vm2 = vcmask 1047557   ;;  %vm41_vm3 = vcmask 1041408   ;;  %s11823_s0 = inlined_call_operand.vmem [shape: f32[2,16,128], index: 0, kind: input, shape index: {}]   ;;  %s11824_s1 = inlined_call_operand.vmem [shape: bf16[13,256,256], index: 1, kind: input, shape index: {}]   ;;  %s11825_s2 = inlined_call_operand.vmem [shape: f32[1,256], index: 2, kind: input, shape index: {}]   ;;  %s11826_s3 = inlined_call_operand.vmem [shape: f32[128,32], index: 3, kind: input, shape index: {}]   ;;  %s11827_s4 = inlined_call_operand.vmem [shape: f32[32,256], index: 4, kind: input, shape index: {}]   ;;  %s11828_s5 = inlined_call_operand.hbm [shape: f32[2,16,128], index: 5, kind: output, shape index: {}]  }
   0x1   :  { %v5637_v0 = vld [vmem:[%s11824_s1 + $0x70] sm:$0xf]  ;;  %v8010_v1 = vld [vmem:[%s11824_s1 + $0x74] sm:$0xf0]  ;;  %v8009_v5 = vld [vmem:[%s11824_s1 + $0x74] sm:$0xf] }
   0x2   :  { %v5701_v2 = vld [vmem:[%s11824_s1 + $0xf0] sm:$0xf]  ;;  %v5638_v3 = vor.u32 %v8010_v1, %v5637_v0  ;;  %v8026_v4 = vld [vmem:[%s11824_s1 + $0xf4] sm:$0xf0]  ;;  %v5639_v6 = vld [vmem:[%s11824_s1 + $0x78] sm:$0xf0] }
   0x3   :  { %v5702_v7 = vor.u32 %v8026_v4, %v5701_v2  ;;  %v5642_v8 = vor.u32 %v8009_v5, %v5639_v6  ;;  %v8025_v9 = vld [vmem:[%s11824_s1 + $0xf4] sm:$0xf]  ;;  %v5703_v10 = vld [vmem:[%s11824_s1 + $0xf8] sm:$0xf0]  ;;  %v5629_v11 = vld [vmem:[%s11824_s1 + $0x60] sm:$0xf] }
   0x4   :  { %377 = vmatpush.bf16.msra.mxu0 %v5638_v3  ;;  %v5706_v12 = vor.u32 %v8025_v9, %v5703_v10  ;;  %v8008_v13 = vld [vmem:[%s11824_s1 + $0x64] sm:$0xf0]  ;;  %v5693_v14 = vld [vmem:[%s11824_s1 + $0xe0] sm:$0xf]  ;;  %v8007_v18 = vld [vmem:[%s11824_s1 + $0x64] sm:$0xf] }
   0x5   :  { %v8024_v15 = vld [vmem:[%s11824_s1 + $0xe4] sm:$0xf0]  ;;  %405 = vmatpush.bf16.msra.mxu1 %v5702_v7  ;;  %433 = vmatpush.bf16.msra.mxu2 %v5642_v8  ;;  %v5630_v16 = vor.u32 %v8008_v13, %v5629_v11  ;;  %v5631_v19 = vld [vmem:[%s11824_s1 + $0x68] sm:$0xf0]  ;;  %v8023_v20 = vld [vmem:[%s11824_s1 + $0xe4] sm:$0xf] }
   0x6   :  { %v5694_v17 = vor.u32 %v8024_v15, %v5693_v14  ;;  %461 = vmatpush.bf16.msra.mxu3 %v5706_v12  ;;  %v5634_v21 = vor.u32 %v8007_v18, %v5631_v19  ;;  %v5695_v22 = vld [vmem:[%s11824_s1 + $0xe8] sm:$0xf0]  ;;  %v5621_v23 = vld [vmem:[%s11824_s1 + $0x50] sm:$0xf]  ;;  %v8006_v24 = vld [vmem:[%s11824_s1 + $0x54] sm:$0xf0] }
   0x7   :  { %v5698_v25 = vor.u32 %v8023_v20, %v5695_v22  ;;  %v5685_v26 = vld [vmem:[%s11824_s1 + $0xd0] sm:$0xf]  ;;  %v8022_v27 = vld [vmem:[%s11824_s1 + $0xd4] sm:$0xf0]  ;;  %v8005_v28 = vld [vmem:[%s11824_s1 + $0x54] sm:$0xf]  ;;  %v5622_v29 = vor.u32 %v8006_v24, %v5621_v23 }
   0x8   :  { %378 = vmatpush.bf16.msra.mxu0 %v5630_v16  ;;  %v5623_v30 = vld [vmem:[%s11824_s1 + $0x58] sm:$0xf0]  ;;  %v8021_v31 = vld [vmem:[%s11824_s1 + $0xd4] sm:$0xf]  ;;  %v5686_v33 = vor.u32 %v8022_v27, %v5685_v26  ;;  %v5613_v35 = vld [vmem:[%s11824_s1 + $0x40] sm:$0xf] }
   0x9   :  { %v5687_v32 = vld [vmem:[%s11824_s1 + $0xd8] sm:$0xf0]  ;;  %406 = vmatpush.bf16.msra.mxu1 %v5694_v17  ;;  %434 = vmatpush.bf16.msra.mxu2 %v5634_v21  ;;  %v5626_v34 = vor.u32 %v8005_v28, %v5623_v30  ;;  %v8004_v36 = vld [vmem:[%s11824_s1 + $0x44] sm:$0xf0]  ;;  %v5677_v37 = vld [vmem:[%s11824_s1 + $0xc0] sm:$0xf] }
   0xa   :  { %462 = vmatpush.bf16.msra.mxu3 %v5698_v25  ;;  %v5690_v38 = vor.u32 %v8021_v31, %v5687_v32  ;;  %v8020_v39 = vld [vmem:[%s11824_s1 + $0xc4] sm:$0xf0]  ;;  %v8003_v40 = vld [vmem:[%s11824_s1 + $0x44] sm:$0xf]  ;;  %v5615_v41 = vld [vmem:[%s11824_s1 + $0x48] sm:$0xf0]  ;;  %v5614_v44 = vor.u32 %v8004_v36, %v5613_v35 }
   0xb   :  { %v8019_v42 = vld [vmem:[%s11824_s1 + $0xc4] sm:$0xf]  ;;  %v5679_v43 = vld [vmem:[%s11824_s1 + $0xc8] sm:$0xf0]  ;;  %v5678_v45 = vor.u32 %v8020_v39, %v5677_v37  ;;  %v5618_v46 = vor.u32 %v8003_v40, %v5615_v41  ;;  %v5605_v47 = vld [vmem:[%s11824_s1 + $0x30] sm:$0xf] }
   0xc   :  { %379 = vmatpush.bf16.msra.mxu0 %v5622_v29  ;;  %v8002_v48 = vld [vmem:[%s11824_s1 + $0x34] sm:$0xf0]  ;;  %v5669_v49 = vld [vmem:[%s11824_s1 + $0xb0] sm:$0xf]  ;;  %v5682_v50 = vor.u32 %v8019_v42, %v5679_v43  ;;  %v8001_v52 = vld [vmem:[%s11824_s1 + $0x34] sm:$0xf] }
   0xd   :  { %407 = vmatpush.bf16.msra.mxu1 %v5686_v33  ;;  %435 = vmatpush.bf16.msra.mxu2 %v5626_v34  ;;  %v8018_v51 = vld [vmem:[%s11824_s1 + $0xb4] sm:$0xf0]  ;;  %v5607_v53 = vld [vmem:[%s11824_s1 + $0x38] sm:$0xf0]  ;;  %v8017_v54 = vld [vmem:[%s11824_s1 + $0xb4] sm:$0xf]  ;;  %v5606_v56 = vor.u32 %v8002_v48, %v5605_v47 }
   0xe   :  { %463 = vmatpush.bf16.msra.mxu3 %v5690_v38  ;;  %v5671_v55 = vld [vmem:[%s11824_s1 + $0xb8] sm:$0xf0]  ;;  %v5670_v57 = vor.u32 %v8018_v51, %v5669_v49  ;;  %v5610_v58 = vor.u32 %v8001_v52, %v5607_v53  ;;  %v5597_v59 = vld [vmem:[%s11824_s1 + $0x20] sm:$0xf]  ;;  %v8000_v60 = vld [vmem:[%s11824_s1 + $0x24] sm:$0xf0] }
   0xf   :  { %v5661_v61 = vld [vmem:[%s11824_s1 + $0xa0] sm:$0xf]  ;;  %v5674_v62 = vor.u32 %v8017_v54, %v5671_v55  ;;  %v8016_v63 = vld [vmem:[%s11824_s1 + $0xa4] sm:$0xf0]  ;;  %v7999_v0 = vld [vmem:[%s11824_s1 + $0x24] sm:$0xf]  ;;  %v5598_v4 = vor.u32 %v8000_v60, %v5597_v59 }
  0x10   :  { %380 = vmatpush.bf16.msra.mxu0 %v5614_v44  ;;  %v5599_v1 = vld [vmem:[%s11824_s1 + $0x28] sm:$0xf0]  ;;  %v8015_v2 = vld [vmem:[%s11824_s1 + $0xa4] sm:$0xf]  ;;  %v5589_v5 = vld [vmem:[%s11824_s1 + $0x10] sm:$0xf]  ;;  %v5662_v8 = vor.u32 %v8016_v63, %v5661_v61 }
  0x11   :  { %408 = vmatpush.bf16.msra.mxu1 %v5678_v45  ;;  %436 = vmatpush.bf16.msra.mxu2 %v5618_v46  ;;  %v5663_v3 = vld [vmem:[%s11824_s1 + $0xa8] sm:$0xf0]  ;;  %v7998_v6 = vld [vmem:[%s11824_s1 + $0x14] sm:$0xf0]  ;;  %v5653_v7 = vld [vmem:[%s11824_s1 + $0x90] sm:$0xf]  ;;  %v5602_v9 = vor.u32 %v7999_v0, %v5599_v1 }
  0x12   :  { %464 = vmatpush.bf16.msra.mxu3 %v5682_v50  ;;  %v8014_v10 = vld [vmem:[%s11824_s1 + $0x94] sm:$0xf0]  ;;  %v7997_v11 = vld [vmem:[%s11824_s1 + $0x14] sm:$0xf]  ;;  %v5591_v12 = vld [vmem:[%s11824_s1 + $0x18] sm:$0xf0]  ;;  %v5666_v13 = vor.u32 %v8015_v2, %v5663_v3  ;;  %v5590_v23 = vor.u32 %v7998_v6, %v5589_v5 }
  0x13   :  { %v8013_v14 = vld [vmem:[%s11824_s1 + $0x94] sm:$0xf]  ;;  %v5655_v15 = vld [vmem:[%s11824_s1 + $0x98] sm:$0xf0]  ;;  %v35_v16 = vld [vmem:[%s11823_s0] sm:$0xff]  ;;  %v8539_v21 = vmov 0   ;;  %v5654_v24 = vor.u32 %v8014_v10, %v5653_v7  ;;  %v5594_v27 = vor.u32 %v7997_v11, %v5591_v12 }
  0x14   :  { %381 = vmatpush.bf16.msra.mxu0 %v5606_v56  ;;  %v8748_v17 = vld [vmem:[%s11824_s1] sm:$0xf]  ;;  %v8753_v18 = vld [vmem:[%s11824_s1 + $0x4] sm:$0xf0]  ;;  %22 = vst [vmem:[#allocation2] sm:$0xff] %v8539_v21  ;;  %v37_v22 = vpack.c.bf16 %v35_v16, %v35_v16  ;;  %v5658_v35 = vor.u32 %v8013_v14, %v5655_v15  ;;  %vm8822_vm4 = vmand %vm24_vm0, %vm25_vm1  ;;  %vm42_vm5 = vcmask 1045508  }
  0x15   :  { %409 = vmatpush.bf16.msra.mxu1 %v5670_v57  ;;  %437 = vmatpush.bf16.msra.mxu2 %v5610_v58  ;;  %v8758_v19 = vld [vmem:[%s11824_s1 + $0x80] sm:$0xf]  ;;  %v8763_v20 = vld [vmem:[%s11824_s1 + $0x84] sm:$0xf0]  ;;  %v8768_v25 = vld [vmem:[%s11824_s1 + $0x4] sm:$0xf]  ;;  %v5582_v43 = vor.u32 %v8753_v18, %v8748_v17 }
  0x16   :  { %465 = vmatpush.bf16.msra.mxu3 %v5674_v62  ;;  %v8773_v26 = vld [vmem:[%s11824_s1 + $0x8] sm:$0xf0]  ;;  %23 = vst [vmem:[#allocation2 + $0x8] sm:$0x33] %v8539_v21  ;;  %v8778_v28 = vld [vmem:[%s11824_s1 + $0x84] sm:$0xf]  ;;  %v5646_v44 = vor.u32 %v8763_v20, %v8758_v19  ;;  %vm8863_vm7 = vmor %vm41_vm3, %vm42_vm5 }
  0x17   :  { %v8783_v29 = vld [vmem:[%s11824_s1 + $0x88] sm:$0xf0]  ;;  %v44_v30 = vrot.slane %v37_v22, 6  ;;  %34 = vst [vmem:[#allocation2 + $0x20] sm:$0xff] %v8539_v21  ;;  %v59_v31 = vshrl.u32 %v37_v22, 16  ;;  %v62_v32 = vshll.u32 %v37_v22, 16  ;;  %v5586_v47 = vor.u32 %v8768_v25, %v8773_v26 }
  0x18   :  { %382 = vmatpush.bf16.msra.mxu0 %v5598_v4  ;;  %v8049_v33 = vld [vmem:[%s11824_s1 + $0x174] sm:$0xf]  ;;  %v5831_v34 = vld [vmem:[%s11824_s1 + $0x178] sm:$0xf0]  ;;  %88 = vst [vmem:[#allocation2 + $0x28] sm:$0xff] %v8539_v21  ;;  %v36_v42 = vld [vmem:[%s11823_s0 + $0x8] sm:$0xff]  ;;  %v5650_v53 = vor.u32 %v8778_v28, %v8783_v29 }
  0x19   :  { %410 = vmatpush.bf16.msra.mxu1 %v5662_v8  ;;  %438 = vmatpush.bf16.msra.mxu2 %v5602_v9  ;;  %v8794_v36 = vld [vmem:[%s11824_s1 + $0x1f4] sm:$0xf]  ;;  %v5895_v37 = vld [vmem:[%s11824_s1 + $0x1f8] sm:$0xf0]  ;;  %v5829_v38 = vld [vmem:[%s11824_s1 + $0x170] sm:$0xf]  ;;  %v5834_v55 = vor.u32 %v8049_v33, %v5831_v34  ;;  %v38_v63 = vpack.c.bf16 %v36_v42, %v36_v42 }
  0x1a   :  { %466 = vmatpush.bf16.msra.mxu3 %v5666_v13  ;;  %v8050_v39 = vld [vmem:[%s11824_s1 + $0x174] sm:$0xf0]  ;;  %52 = vst [vmem:[#allocation2 + $0x8] sm:$0xc] %v44_v30  ;;  %v61_v40 = vrot.slane %v59_v31, 6  ;;  %v64_v41 = vrot.slane %v62_v32, 7  ;;  %v5898_v59 = vor.u32 %v8794_v36, %v5895_v37 }
  0x1b   :  { %89 = vst [vmem:[#allocation2 + $0x30] sm:$0x33] %v8539_v21  ;;  %v5893_v45 = vld [vmem:[%s11824_s1 + $0x1f0] sm:$0xf]  ;;  %v8066_v46 = vld [vmem:[%s11824_s1 + $0x1f4] sm:$0xf0]  ;;  %v5830_v60 = vor.u32 %v8050_v39, %v5829_v38 }
  0x1c   :  { %383 = vmatpush.bf16.msra.mxu0 %v5590_v23  ;;  %v45_v48 = vrot.slane %v44_v30, 4  ;;  %93 = vst [vmem:[#allocation2 + $0x48] sm:$0xff] %v8539_v21  ;;  %v8826_v50 = vor.u32 %v64_v41, %v61_v40  ;;  %v8047_v51 = vld [vmem:[%s11824_s1 + $0x164] sm:$0xf]  ;;  %v5823_v52 = vld [vmem:[%s11824_s1 + $0x168] sm:$0xf0]  ;;  %v5894_v1 = vor.u32 %v8066_v46, %v5893_v45 }
  0x1d   :  { %411 = vmatpush.bf16.msra.mxu1 %v5654_v24  ;;  %439 = vmatpush.bf16.msra.mxu2 %v5594_v27  ;;  %v5557_v54 = vld [vmem:[#allocation2] sm:$0xf]  ;;  %v8063_v56 = vld [vmem:[%s11824_s1 + $0x1e4] sm:$0xf]  ;;  %v5554_v57 = vld [vmem:[%s11823_s0 + $0x18] sm:$0xff]  ;;  %v5826_v5 = vor.u32 %v8047_v51, %v5823_v52  ;;  %v46_v14 = vrot.slane %v38_v63, 6 }
  0x1e   :  { %467 = vmatpush.bf16.msra.mxu3 %v5658_v35  ;;  %v80_v58 = vld [vmem:[#allocation2 + $0xc] sm:$0xe]  ;;  %v5821_v62 = vld [vmem:[%s11824_s1 + $0x160] sm:$0xf]  ;;  %v8048_v2 = vld [vmem:[%s11824_s1 + $0x164] sm:$0xf0]  ;;  %v8867_v9 = vpack.c.bf16 %v5554_v57, %v5554_v57 }
  0x1f   :  { %v5887_v61 = vld [vmem:[%s11824_s1 + $0x1e8] sm:$0xf0]  ;;  %v81_v0 = vsel %vm8822_vm4, %v8826_v50, %v80_v58  ;;  %v5885_v3 = vld [vmem:[%s11824_s1 + $0x1e0] sm:$0xf]  ;;  %v8064_v4 = vld [vmem:[%s11824_s1 + $0x1e4] sm:$0xf0]  ;;  %v5822_v11 = vor.u32 %v8048_v2, %v5821_v62  ;;  %v47_v21 = vsel %vm8863_vm7, %v45_v48, %v46_v14 }
  0x20   :  { %384 = vmatpush.bf16.msra.mxu0 %v5582_v43  ;;  %82 = vst [vmem:[#allocation2 + $0xc] sm:$0xe] %v81_v0  ;;  %v5890_v6 = vor.u32 %v8063_v56, %v5887_v61  ;;  %vm28_vm6 = vsmask.f32 7958  ;;  %v31_v7 = vld [vmem:[#allocation2 + $0x18] sm:$0xee]  ;;  %v5886_v12 = vor.u32 %v8064_v4, %v5885_v3 }
  0x21   :  { %412 = vmatpush.bf16.msra.mxu1 %v5646_v44  ;;  %440 = vmatpush.bf16.msra.mxu2 %v5586_v47  ;;  %v7990_v10 = vld [vmem:[#allocation2 + $0x4] sm:$0xf0]  ;;  %vm8870_vm8 = vmand %vm27_vm2, %vm28_vm6  ;;  %v90_v15 = vld [vmem:[#allocation2 + $0x40] sm:$0xee]  ;;  %v66_v16 = vrot.slane %v8826_v50, 4  ;;  %v68_v18 = vshrl.u32 %v38_v63, 16 }
  0x22   :  { %468 = vmatpush.bf16.msra.mxu3 %v5650_v53  ;;  %v5558_v17 = vor.u32 %v7990_v10, %v5557_v54  ;;  %vm30_vm9 = vmor %vm8870_vm8, %vm8822_vm4  ;;  %vm55_vm10 = vsmask.f32 1280  ;;  %vm56_vm11 = vsmask.f32 5392  ;;  %v7989_v19 = vld [vmem:[#allocation2 + $0x4] sm:$0xf] }
  0x23   :  { %v32_v20 = vsel %vm30_vm9, 0, %v31_v7  ;;  %v48_v22 = vrot.slane %v46_v14, 4  ;;  %v91_v23 = vsel %vm30_vm9, 0, %v90_v15  ;;  %v8045_v24 = vld [vmem:[%s11824_s1 + $0x154] sm:$0xf]  ;;  %v70_v25 = vrot.slane %v68_v18, 6  ;;  %vm8894_vm12 = vmor %vm55_vm10, %vm56_vm11 }
  0x24   :  { %759 = vmatpush.bf16.msrb.mxu0 %v5830_v60  ;;  %441 = vmatmul.bf16.vlgmr.msra.gmra.mxu2 %v5558_v17  ;;  %33 = vst [vmem:[#allocation2 + $0x18] sm:$0xee] %v32_v20  ;;  %v71_v26 = vshll.u32 %v38_v63, 16  ;;  %v122_v27 = vshrl.u32 %v8867_v9, 16  ;;  %v125_v28 = vshll.u32 %v8867_v9, 16  ;;  %vm8900_vm13 = vmand %vm41_vm3, %vm55_vm10  ;;  %v5553_v10 = vld [vmem:[%s11823_s0 + $0x10] sm:$0xff] }
  0x25   :  { %815 = vmatpush.bf16.msrb.mxu2 %v5834_v55  ;;  %787 = vmatpush.bf16.msrb.mxu1 %v5894_v1  ;;  %53 = vst [vmem:[#allocation2 + $0x10] sm:$0xf] %v47_v21  ;;  %v5815_v29 = vld [vmem:[%s11824_s1 + $0x158] sm:$0xf0]  ;;  %v8061_v30 = vld [vmem:[%s11824_s1 + $0x1d4] sm:$0xf] }
  0x26   :  { %843 = vmatpush.bf16.msrb.mxu3 %v5898_v59  ;;  %385 = vmatmul.bf16.vlgmr.msra.gmra.mxu0 %v5558_v17  ;;  %54 = vst [vmem:[#allocation2 + $0x18] sm:$0x3] %v48_v22  ;;  %v73_v32 = vrot.slane %v71_v26, 7  ;;  %v124_v33 = vrot.slane %v122_v27, 6  ;;  %v127_v34 = vrot.slane %v125_v28, 7  ;;  %v5818_v35 = vor.u32 %v8045_v24, %v5815_v29 }
  0x27   :  { %v5559_v36 = vld [vmem:[#allocation2 + $0x8] sm:$0xf0]  ;;  %92 = vst [vmem:[#allocation2 + $0x40] sm:$0xee] %v91_v23  ;;  %v5879_v38 = vld [vmem:[%s11824_s1 + $0x1d8] sm:$0xf0]  ;;  %v8979_v23 = vpack.c.bf16 %v5553_v10, %v5553_v10 }
  0x28   :  { %760 = vmatpush.bf16.msrb.mxu0 %v5822_v11  ;;  %v5562_v39 = vor.u32 %v7989_v19, %v5559_v36  ;;  %v74_v40 = vor.u32 %v73_v32, %v70_v25  ;;  %v8907_v41 = vor.u32 %v127_v34, %v124_v33  ;;  %v5882_v42 = vor.u32 %v8061_v30, %v5879_v38  ;;  %v5813_v43 = vld [vmem:[%s11824_s1 + $0x150] sm:$0xf]  ;;  %v8046_v44 = vld [vmem:[%s11824_s1 + $0x154] sm:$0xf0]  ;;  %v8043_v48 = vld [vmem:[%s11824_s1 + $0x144] sm:$0xf] }
  0x29   :  { %816 = vmatpush.bf16.msrb.mxu2 %v5826_v5  ;;  %788 = vmatpush.bf16.msrb.mxu1 %v5886_v12  ;;  %v5877_v45 = vld [vmem:[%s11824_s1 + $0x1d0] sm:$0xf]  ;;  %v5814_v46 = vor.u32 %v8046_v44, %v5813_v43  ;;  %v8062_v47 = vld [vmem:[%s11824_s1 + $0x1d4] sm:$0xf0]  ;;  %v5807_v50 = vld [vmem:[%s11824_s1 + $0x148] sm:$0xf0] }
  0x2a   :  { %844 = vmatpush.bf16.msrb.mxu3 %v5890_v6  ;;  %413 = vmatmul.bf16.vlgmr.msra.gmra.mxu1 %v5562_v39  ;;  %v75_v51 = vsel %vm8894_vm12, %v66_v16, %v74_v40  ;;  %v76_v52 = vrot.slane %v74_v40, 4  ;;  %v130_v53 = vrot.slane %v8907_v41, 4  ;;  %v5878_v54 = vor.u32 %v8062_v47, %v5877_v45  ;;  %v8059_v55 = vld [vmem:[%s11824_s1 + $0x1c4] sm:$0xf]  ;;  %v5871_v56 = vld [vmem:[%s11824_s1 + $0x1c8] sm:$0xf0] }
  0x2b   :  { %469 = vmatmul.bf16.vlgmr.msra.gmra.mxu3 %v5562_v39  ;;  %83 = vst [vmem:[#allocation2 + $0x14] sm:$0xf] %v75_v51  ;;  %v85_v57 = vld [vmem:[#allocation2 + $0x1c] sm:$0x3]  ;;  %v5810_v58 = vor.u32 %v8043_v48, %v5807_v50  ;;  %v5874_v59 = vor.u32 %v8059_v55, %v5871_v56  ;;  %v5805_v60 = vld [vmem:[%s11824_s1 + $0x140] sm:$0xf] }
  0x2c   :  { %761 = vmatpush.bf16.msrb.mxu0 %v5814_v46  ;;  %v5565_v61 = vld [vmem:[#allocation2 + $0x10] sm:$0xf]  ;;  %v86_v62 = vsel %vm8900_vm13, %v76_v52, %v85_v57  ;;  %v8044_v63 = vld [vmem:[%s11824_s1 + $0x144] sm:$0xf0]  ;;  %v5869_v0 = vld [vmem:[%s11824_s1 + $0x1c0] sm:$0xf] }
  0x2d   :  { %817 = vmatpush.bf16.msrb.mxu2 %v5818_v35  ;;  %789 = vmatpush.bf16.msrb.mxu1 %v5878_v54  ;;  %v7992_v1 = vld [vmem:[#allocation2 + $0x14] sm:$0xf0]  ;;  %87 = vst [vmem:[#allocation2 + $0x1c] sm:$0x3] %v86_v62  ;;  %v5806_v2 = vor.u32 %v8044_v63, %v5805_v60  ;;  %v8060_v3 = vld [vmem:[%s11824_s1 + $0x1c4] sm:$0xf0] }
  0x2e   :  { %845 = vmatpush.bf16.msrb.mxu3 %v5882_v42  ;;  %v138_v4 = vld [vmem:[#allocation2 + $0x44] sm:$0x3]  ;;  %v5870_v5 = vor.u32 %v8060_v3, %v5869_v0  ;;  %v8041_v7 = vld [vmem:[%s11824_s1 + $0x134] sm:$0xf]  ;;  %v5566_v11 = vor.u32 %v7992_v1, %v5565_v61  ;;  %v5799_v12 = vld [vmem:[%s11824_s1 + $0x138] sm:$0xf0] }
  0x2f   :  { %v139_v6 = vsel %vm8900_vm13, %v130_v53, %v138_v4  ;;  %v8057_v13 = vld [vmem:[%s11824_s1 + $0x1b4] sm:$0xf]  ;;  %v5802_v14 = vor.u32 %v8041_v7, %v5799_v12  ;;  %v5863_v15 = vld [vmem:[%s11824_s1 + $0x1b8] sm:$0xf0]  ;;  %v5797_v16 = vld [vmem:[%s11824_s1 + $0x130] sm:$0xf] }
  0x30   :  { %762 = vmatpush.bf16.msrb.mxu0 %v5806_v2  ;;  %140 = vst [vmem:[#allocation2 + $0x44] sm:$0x3] %v139_v6  ;;  %v8042_v17 = vld [vmem:[%s11824_s1 + $0x134] sm:$0xf0]  ;;  %v5866_v19 = vor.u32 %v8057_v13, %v5863_v15  ;;  %v5861_v21 = vld [vmem:[%s11824_s1 + $0x1b0] sm:$0xf] }
  0x31   :  { %818 = vmatpush.bf16.msrb.mxu2 %v5810_v58  ;;  %790 = vmatpush.bf16.msrb.mxu1 %v5870_v5  ;;  %v5798_v20 = vor.u32 %v8042_v17, %v5797_v16  ;;  %v8058_v22 = vld [vmem:[%s11824_s1 + $0x1b4] sm:$0xf0]  ;;  %v8039_v25 = vld [vmem:[%s11824_s1 + $0x124] sm:$0xf]  ;;  %v5791_v26 = vld [vmem:[%s11824_s1 + $0x128] sm:$0xf0] }
  0x32   :  { %846 = vmatpush.bf16.msrb.mxu3 %v5874_v59  ;;  %v7991_v18 = vld [vmem:[#allocation2 + $0x14] sm:$0xf]  ;;  %v5862_v24 = vor.u32 %v8058_v22, %v5861_v21  ;;  %v8055_v27 = vld [vmem:[%s11824_s1 + $0x1a4] sm:$0xf]  ;;  %v5794_v29 = vor.u32 %v8039_v25, %v5791_v26  ;;  %v5855_v30 = vld [vmem:[%s11824_s1 + $0x1a8] sm:$0xf0] }
  0x33   :  { %v5789_v32 = vld [vmem:[%s11824_s1 + $0x120] sm:$0xf]  ;;  %v5858_v33 = vor.u32 %v8055_v27, %v5855_v30  ;;  %v8040_v34 = vld [vmem:[%s11824_s1 + $0x124] sm:$0xf0]  ;;  %v101_v39 = vrot.slane %v8979_v23, 6  ;;  %v113_v40 = vshrl.u32 %v8979_v23, 16 }
  0x34   :  { %v5567_v28 = vld [vmem:[#allocation2 + $0x18] sm:$0xf0]  ;;  %446 = vmatmul.bf16.gmra.mxu2 %v5566_v11  ;;  %763 = vmatpush.bf16.msrb.mxu0 %v5798_v20  ;;  %v5853_v35 = vld [vmem:[%s11824_s1 + $0x1a0] sm:$0xf]  ;;  %v8056_v36 = vld [vmem:[%s11824_s1 + $0x1a4] sm:$0xf0]  ;;  %v5790_v38 = vor.u32 %v8040_v34, %v5789_v32 }
  0x35   :  { %819 = vmatpush.bf16.msrb.mxu2 %v5802_v14  ;;  %v5570_v37 = vor.u32 %v7991_v18, %v5567_v28  ;;  %791 = vmatpush.bf16.msrb.mxu1 %v5862_v24 }
  0x36   :  { %390 = vmatmul.bf16.gmra.mxu0 %v5566_v11  ;;  %847 = vmatpush.bf16.msrb.mxu3 %v5866_v19 }
  0x37   :  { %10 = vsyncpa [#allocation5], 0  ;;  %v5854_v42 = vor.u32 %v8056_v36, %v5853_v35  ;;  %v116_v43 = vshll.u32 %v8979_v23, 16  ;;  %109 = vst [vmem:[#allocation2 + $0x30] sm:$0xc] %v101_v39  ;;  %v115_v44 = vrot.slane %v113_v40, 6 }
  0x38   :  { %764 = vmatpush.bf16.msrb.mxu0 %v5790_v38  ;;  %v134_v46 = vld [vmem:[#allocation2 + $0x34] sm:$0xe]  ;;  %v5783_v48 = vld [vmem:[%s11824_s1 + $0x118] sm:$0xf0]  ;;  %v5573_v51 = vld [vmem:[#allocation2 + $0x20] sm:$0xf] }
  0x39   :  { %820 = vmatpush.bf16.msrb.mxu2 %v5794_v29  ;;  %v118_v45 = vrot.slane %v116_v43, 7  ;;  %v8037_v47 = vld [vmem:[%s11824_s1 + $0x114] sm:$0xf]  ;;  %v7994_v52 = vld [vmem:[#allocation2 + $0x24] sm:$0xf0]  ;;  %792 = vmatpush.bf16.msrb.mxu1 %v5854_v42  ;;  %vm576_vm14 = vcmask 1046528  }
  0x3a   :  { %848 = vmatpush.bf16.msrb.mxu3 %v5858_v33  ;;  %418 = vmatmul.bf16.gmra.mxu1 %v5570_v37  ;;  %v8053_v50 = vld [vmem:[%s11824_s1 + $0x194] sm:$0xf]  ;;  %v5786_v54 = vor.u32 %v8037_v47, %v5783_v48  ;;  %v5847_v55 = vld [vmem:[%s11824_s1 + $0x198] sm:$0xf0]  ;;  %v5781_v56 = vld [vmem:[%s11824_s1 + $0x110] sm:$0xf]  ;;  %v5574_v12 = vor.u32 %v7994_v52, %v5573_v51 }
  0x3b   :  { %474 = vmatmul.bf16.gmra.mxu3 %v5570_v37  ;;  %v9019_v53 = vor.u32 %v118_v45, %v115_v44  ;;  %v8038_v57 = vld [vmem:[%s11824_s1 + $0x114] sm:$0xf0]  ;;  %v5850_v58 = vor.u32 %v8053_v50, %v5847_v55  ;;  %v5845_v60 = vld [vmem:[%s11824_s1 + $0x190] sm:$0xf]  ;;  %v8035_v62 = vld [vmem:[%s11824_s1 + $0x104] sm:$0xf] }
  0x3c   :  { %v5782_v59 = vor.u32 %v8038_v57, %v5781_v56  ;;  %v8054_v61 = vld [vmem:[%s11824_s1 + $0x194] sm:$0xf0]  ;;  %v5775_v1 = vld [vmem:[%s11824_s1 + $0x108] sm:$0xf0]  ;;  %v8051_v2 = vld [vmem:[%s11824_s1 + $0x184] sm:$0xf] }
  0x3d   :  { %v135_v63 = vsel %vm8822_vm4, %v9019_v53, %v134_v46  ;;  %821 = vmatpush.bf16.msrb.mxu2 %v5786_v54  ;;  %v5846_v0 = vor.u32 %v8054_v61, %v5845_v60  ;;  %v5839_v3 = vld [vmem:[%s11824_s1 + $0x188] sm:$0xf0]  ;;  %v5778_v4 = vor.u32 %v8035_v62, %v5775_v1  ;;  %v5773_v5 = vld [vmem:[%s11824_s1 + $0x100] sm:$0xf]  ;;  %v8036_v6 = vld [vmem:[%s11824_s1 + $0x104] sm:$0xf0] }
  0x3e   :  { %136 = vst [vmem:[#allocation2 + $0x34] sm:$0xe] %v135_v63  ;;  %849 = vmatpush.bf16.msrb.mxu3 %v5850_v58  ;;  %765 = vmatpush.bf16.msrb.mxu0 %v5782_v59  ;;  %v5842_v49 = vor.u32 %v8051_v2, %v5839_v3  ;;  %v5774_v7 = vor.u32 %v8036_v6, %v5773_v5  ;;  %v5837_v10 = vld [vmem:[%s11824_s1 + $0x180] sm:$0xf]  ;;  %v8052_v11 = vld [vmem:[%s11824_s1 + $0x184] sm:$0xf0] }
  0x3f   :  { %793 = vmatpush.bf16.msrb.mxu1 %v5846_v0  ;;  %v5838_v13 = vor.u32 %v8052_v11, %v5837_v10  ;;  %v7993_v14 = vld [vmem:[#allocation2 + $0x24] sm:$0xf]  ;;  %v5575_v15 = vld [vmem:[#allocation2 + $0x28] sm:$0xf0]  ;;  %v8089_v18 = vld [vmem:[%s11824_s1 + $0x274] sm:$0xf] }
  0x40   :  { %v5578_v16 = vor.u32 %v7993_v14, %v5575_v15  ;;  %v6023_v19 = vld [vmem:[%s11824_s1 + $0x278] sm:$0xf0]  ;;  %v8105_v20 = vld [vmem:[%s11824_s1 + $0x2f4] sm:$0xf]  ;;  %v6021_v24 = vld [vmem:[%s11824_s1 + $0x270] sm:$0xf] }
  0x41   :  { %822 = vmatpush.bf16.msrb.mxu2 %v5778_v4  ;;  %v6026_v21 = vor.u32 %v8089_v18, %v6023_v19  ;;  %v6087_v22 = vld [vmem:[%s11824_s1 + $0x2f8] sm:$0xf0]  ;;  %v8090_v25 = vld [vmem:[%s11824_s1 + $0x274] sm:$0xf0]  ;;  %v6085_v29 = vld [vmem:[%s11824_s1 + $0x2f0] sm:$0xf] }
  0x42   :  { %850 = vmatpush.bf16.msrb.mxu3 %v5842_v49  ;;  %766 = vmatpush.bf16.msrb.mxu0 %v5774_v7  ;;  %v6090_v27 = vor.u32 %v8105_v20, %v6087_v22  ;;  %v6022_v28 = vor.u32 %v8090_v25, %v6021_v24  ;;  %v8106_v30 = vld [vmem:[%s11824_s1 + $0x2f4] sm:$0xf0]  ;;  %v8087_v32 = vld [vmem:[%s11824_s1 + $0x264] sm:$0xf]  ;;  %v6015_v34 = vld [vmem:[%s11824_s1 + $0x268] sm:$0xf0] }
  0x43   :  { %794 = vmatpush.bf16.msrb.mxu1 %v5838_v13  ;;  %v6086_v33 = vor.u32 %v8106_v30, %v6085_v29  ;;  %v8103_v35 = vld [vmem:[%s11824_s1 + $0x2e4] sm:$0xf]  ;;  %v6079_v36 = vld [vmem:[%s11824_s1 + $0x2e8] sm:$0xf0]  ;;  %v6018_v37 = vor.u32 %v8087_v32, %v6015_v34  ;;  %v6013_v40 = vld [vmem:[%s11824_s1 + $0x260] sm:$0xf] }
  0x44   :  { %451 = vmatmul.bf16.gmra.mxu2 %v5574_v12  ;;  %v6082_v38 = vor.u32 %v8103_v35, %v6079_v36  ;;  %v8088_v42 = vld [vmem:[%s11824_s1 + $0x264] sm:$0xf0]  ;;  %v6077_v43 = vld [vmem:[%s11824_s1 + $0x2e0] sm:$0xf]  ;;  %v5749_v52 = vld [vmem:[#allocation2 + $0x10] sm:$0xf] }
  0x45   :  { %v147_v17 = vld [vmem:[#allocation2 + $0x30] sm:$0xff]  ;;  %1225 = vmatpush.bf16.msra.mxu2 %v6026_v21  ;;  %v6014_v44 = vor.u32 %v8088_v42, %v6013_v40  ;;  %v8104_v45 = vld [vmem:[%s11824_s1 + $0x2e4] sm:$0xf0]  ;;  %v5741_v48 = vld [vmem:[#allocation2] sm:$0xe]  ;;  %v102_v58 = vrot.slane %v101_v39, 4 }
  0x46   :  { %395 = vmatmul.bf16.gmra.mxu0 %v5574_v12  ;;  %v199_v26 = vunpack.c.l.b16 %v147_v17  ;;  %1253 = vmatpush.bf16.msra.mxu3 %v6090_v27  ;;  %v6078_v47 = vor.u32 %v8104_v45, %v6077_v43  ;;  %v200_v50 = vunpack.c.h.b16 %v147_v17  ;;  %v8028_v51 = vld [vmem:[#allocation2 + $0x4] sm:$0xf0]  ;;  %v8030_v54 = vld [vmem:[#allocation2 + $0x14] sm:$0xf0]  ;;  %v8027_v61 = vld [vmem:[#allocation2 + $0x4] sm:$0xe] }
  0x47   :  { %1169 = vmatpush.bf16.msra.mxu0 %v6022_v28  ;;  %1197 = vmatpush.bf16.msra.mxu1 %v6086_v33  ;;  %v5742_v55 = vor.u32 %v8028_v51, %v5741_v48  ;;  %v5750_v56 = vor.u32 %v8030_v54, %v5749_v52  ;;  %v5743_v62 = vld [vmem:[#allocation2 + $0x8] sm:$0xf0]  ;;  %v8029_v63 = vld [vmem:[#allocation2 + $0x14] sm:$0xf]  ;;  %v5751_v0 = vld [vmem:[#allocation2 + $0x18] sm:$0xf0] }
  0x48   :  { %v207_v46 = vpack.c.b16 %v199_v26, %v199_v26  ;;  %v208_v57 = vpack.c.b16 %v200_v50, %v200_v50  ;;  %v8085_v1 = vld [vmem:[%s11824_s1 + $0x254] sm:$0xf]  ;;  %v6007_v2 = vld [vmem:[%s11824_s1 + $0x258] sm:$0xf0]  ;;  %v6005_v4 = vld [vmem:[%s11824_s1 + $0x250] sm:$0xf]  ;;  %v5754_v22 = vor.u32 %v8029_v63, %v5751_v0 }
  0x49   :  { %1226 = vmatpush.bf16.msra.mxu2 %v6018_v37  ;;  %v577_v59 = vrot.slane %v5742_v55, 1  ;;  %v9113_v60 = vrot.slane %v5750_v56, 1  ;;  %v8101_v23 = vld [vmem:[%s11824_s1 + $0x2d4] sm:$0xf]  ;;  %v6010_v39 = vor.u32 %v8085_v1, %v6007_v2  ;;  %v6071_v3 = vld [vmem:[%s11824_s1 + $0x2d8] sm:$0xf0] }
  0x4a   :  { %423 = vmatmul.bf16.gmra.mxu1 %v5578_v16  ;;  %1254 = vmatpush.bf16.msra.mxu3 %v6082_v38  ;;  %v8086_v49 = vld [vmem:[%s11824_s1 + $0x254] sm:$0xf0]  ;;  %v6074_v5 = vor.u32 %v8101_v23, %v6071_v3  ;;  %v6069_v7 = vld [vmem:[%s11824_s1 + $0x2d0] sm:$0xf]  ;;  %v8083_v11 = vld [vmem:[%s11824_s1 + $0x244] sm:$0xf] }
  0x4b   :  { %479 = vmatmul.bf16.gmra.mxu3 %v5578_v16  ;;  %1170 = vmatpush.bf16.msra.mxu0 %v6014_v44  ;;  %v6006_v6 = vor.u32 %v8086_v49, %v6005_v4  ;;  %v8102_v10 = vld [vmem:[%s11824_s1 + $0x2d4] sm:$0xf0]  ;;  %v5999_v13 = vld [vmem:[%s11824_s1 + $0x248] sm:$0xf0]  ;;  %v8099_v14 = vld [vmem:[%s11824_s1 + $0x2c4] sm:$0xf]  ;;  %v5746_v16 = vor.u32 %v8027_v61, %v5743_v62  ;;  %v579_v29 = vsel %vm576_vm14, %v577_v59, %v9113_v60 }
  0x4c   :  { %1198 = vmatpush.bf16.msra.mxu1 %v6078_v47  ;;  %v6070_v12 = vor.u32 %v8102_v10, %v6069_v7  ;;  %v6063_v15 = vld [vmem:[%s11824_s1 + $0x2c8] sm:$0xf0]  ;;  %v6002_v17 = vor.u32 %v8083_v11, %v5999_v13  ;;  %v5997_v19 = vld [vmem:[%s11824_s1 + $0x240] sm:$0xf]  ;;  %v8084_v20 = vld [vmem:[%s11824_s1 + $0x244] sm:$0xf0] }
  0x4d   :  { %1227 = vmatpush.bf16.msra.mxu2 %v6010_v39  ;;  %v6066_v18 = vor.u32 %v8099_v14, %v6063_v15  ;;  %v6061_v21 = vld [vmem:[%s11824_s1 + $0x2c0] sm:$0xf]  ;;  %v5998_v24 = vor.u32 %v8084_v20, %v5997_v19  ;;  %v8100_v25 = vld [vmem:[%s11824_s1 + $0x2c4] sm:$0xf0]  ;;  %v103_v26 = vrot.slane %v8867_v9, 6  ;;  %v120_v27 = vrot.slane %v9019_v53, 4 }
  0x4e   :  { %1255 = vmatpush.bf16.msra.mxu3 %v6074_v5  ;;  %v6062_v28 = vor.u32 %v8100_v25, %v6061_v21  ;;  %v580_v33 = vrot.slane %v5746_v16, 1  ;;  %v581_v34 = vrot.slane %v5754_v22, 1  ;;  %v5757_v53 = vld [vmem:[#allocation2 + $0x20] sm:$0xf]  ;;  %v8032_v35 = vld [vmem:[#allocation2 + $0x24] sm:$0xf0] }
  0x4f   :  { %1171 = vmatpush.bf16.msra.mxu0 %v6006_v6  ;;  %v104_v30 = vsel %vm8863_vm7, %v102_v58, %v103_v26  ;;  %v129_v32 = vsel %vm8894_vm12, %v120_v27, %v8907_v41  ;;  %v5758_v37 = vor.u32 %v8032_v35, %v5757_v53  ;;  %v8031_v8 = vld [vmem:[#allocation2 + $0x24] sm:$0xf]  ;;  %v8081_v31 = vld [vmem:[%s11824_s1 + $0x234] sm:$0xf]  ;;  %v5991_v41 = vld [vmem:[%s11824_s1 + $0x238] sm:$0xf0] }
  0x50   :  { %1199 = vmatpush.bf16.msra.mxu1 %v6070_v12  ;;  %110 = vst [vmem:[#allocation2 + $0x38] sm:$0xf] %v104_v30  ;;  %v582_v36 = vsel %vm576_vm14, %v580_v33, %v581_v34  ;;  %v5994_v38 = vor.u32 %v8081_v31, %v5991_v41  ;;  %v8097_v40 = vld [vmem:[%s11824_s1 + $0x2b4] sm:$0xf]  ;;  %v6055_v42 = vld [vmem:[%s11824_s1 + $0x2b8] sm:$0xf0] }
  0x51   :  { %1228 = vmatpush.bf16.msra.mxu2 %v6002_v17  ;;  %137 = vst [vmem:[#allocation2 + $0x3c] sm:$0xf] %v129_v32  ;;  %v5989_v43 = vld [vmem:[%s11824_s1 + $0x230] sm:$0xf]  ;;  %v5759_v44 = vld [vmem:[#allocation2 + $0x28] sm:$0xf0]  ;;  %v6058_v45 = vor.u32 %v8097_v40, %v6055_v42 }
  0x52   :  { %1256 = vmatpush.bf16.msra.mxu3 %v6066_v18  ;;  %v6053_v47 = vld [vmem:[%s11824_s1 + $0x2b0] sm:$0xf]  ;;  %v583_v48 = vrot.slane %v5758_v37, 1  ;;  %v8098_v51 = vld [vmem:[%s11824_s1 + $0x2b4] sm:$0xf0]  ;;  %v5762_v58 = vor.u32 %v8031_v8, %v5759_v44  ;;  %vm986_vm15 = vcmask 1045504  }
  0x53   :  { %1172 = vmatpush.bf16.msra.mxu0 %v5998_v24  ;;  %v8079_v52 = vld [vmem:[%s11824_s1 + $0x224] sm:$0xf]  ;;  %v6054_v54 = vor.u32 %v8098_v51, %v6053_v47  ;;  %v5983_v55 = vld [vmem:[%s11824_s1 + $0x228] sm:$0xf0]  ;;  %v5981_v62 = vld [vmem:[%s11824_s1 + $0x220] sm:$0xf] }
  0x54   :  { %456 = vmatmul.bf16.gmra.mxu2 %v207_v46  ;;  %1200 = vmatpush.bf16.msra.mxu1 %v6062_v28  ;;  %v8095_v56 = vld [vmem:[%s11824_s1 + $0x2a4] sm:$0xf]  ;;  %v5986_v59 = vor.u32 %v8079_v52, %v5983_v55  ;;  %v8080_v63 = vld [vmem:[%s11824_s1 + $0x224] sm:$0xf0]  ;;  %v6045_v0 = vld [vmem:[%s11824_s1 + $0x2a0] sm:$0xf]  ;;  %v584_v23 = vsel %vm576_vm14, %v9113_v60, %v583_v48 }
  0x55   :  { %1229 = vmatpush.bf16.msra.mxu2 %v5994_v38  ;;  %v5982_v1 = vor.u32 %v8080_v63, %v5981_v62  ;;  %v8096_v2 = vld [vmem:[%s11824_s1 + $0x2a4] sm:$0xf0]  ;;  %v5765_v3 = vld [vmem:[#allocation2 + $0x30] sm:$0xf]  ;;  %v585_v49 = vrot.slane %v5762_v58, 1  ;;  %vm1396_vm0 = vcmask 1044480  }
  0x56   :  { %400 = vmatmul.bf16.gmra.mxu0 %v207_v46  ;;  %v8082_v46 = vld [vmem:[%s11824_s1 + $0x234] sm:$0xf0]  ;;  %1257 = vmatpush.bf16.msra.mxu3 %v6058_v45  ;;  %v6046_v39 = vor.u32 %v8096_v2, %v6045_v0  ;;  %v8033_v10 = vld [vmem:[#allocation2 + $0x34] sm:$0xf]  ;;  %v5975_v12 = vld [vmem:[%s11824_s1 + $0x218] sm:$0xf0] }
  0x57   :  { %v5990_v50 = vor.u32 %v8082_v46, %v5989_v43  ;;  %v8034_v4 = vld [vmem:[#allocation2 + $0x34] sm:$0x10]  ;;  %v586_v6 = vsel %vm576_vm14, %v581_v34, %v585_v49  ;;  %v8077_v60 = vld [vmem:[%s11824_s1 + $0x214] sm:$0xf]  ;;  %v6039_v15 = vld [vmem:[%s11824_s1 + $0x298] sm:$0xf0] }
  0x58   :  { %1201 = vmatpush.bf16.msra.mxu1 %v6054_v54  ;;  %v5766_v5 = vor.u32 %v8034_v4, %v5765_v3  ;;  %v5767_v11 = vld [vmem:[#allocation2 + $0x38] sm:$0x10]  ;;  %v8093_v13 = vld [vmem:[%s11824_s1 + $0x294] sm:$0xf]  ;;  %v5978_v14 = vor.u32 %v8077_v60, %v5975_v12  ;;  %v5973_v16 = vld [vmem:[%s11824_s1 + $0x210] sm:$0xf] }
  0x59   :  { %1173 = vmatpush.bf16.msra.mxu0 %v5990_v50  ;;  %1230 = vmatpush.bf16.msra.mxu2 %v5986_v59  ;;  %v8078_v17 = vld [vmem:[%s11824_s1 + $0x214] sm:$0xf0]  ;;  %v6042_v18 = vor.u32 %v8093_v13, %v6039_v15  ;;  %v6037_v20 = vld [vmem:[%s11824_s1 + $0x290] sm:$0xf]  ;;  %v8075_v22 = vld [vmem:[%s11824_s1 + $0x204] sm:$0xf]  ;;  %v5770_v32 = vor.u32 %v8033_v10, %v5767_v11 }
  0x5a   :  { %428 = vmatmul.bf16.gmra.mxu1 %v208_v57  ;;  %v9226_v7 = vrot.slane %v5766_v5, 1  ;;  %v5974_v19 = vor.u32 %v8078_v17, %v5973_v16  ;;  %v8094_v21 = vld [vmem:[%s11824_s1 + $0x294] sm:$0xf0]  ;;  %v5967_v25 = vld [vmem:[%s11824_s1 + $0x208] sm:$0xf0]  ;;  %vm5409_vm2 = vcmask 1040384  }
  0x5b   :  { %484 = vmatmul.bf16.gmra.mxu3 %v208_v57  ;;  %v6047_v57 = vld [vmem:[%s11824_s1 + $0x2a8] sm:$0xf0]  ;;  %v6038_v24 = vor.u32 %v8094_v21, %v6037_v20  ;;  %v8091_v27 = vld [vmem:[%s11824_s1 + $0x284] sm:$0xf]  ;;  %v589_v34 = vrot.slane %v5770_v32, 1  ;;  %vm5456_vm3 = vcmask 261120  }
  0x5c   :  { %v6050_v61 = vor.u32 %v8095_v56, %v6047_v57  ;;  %1202 = vmatpush.bf16.msra.mxu1 %v6046_v39  ;;  %v6031_v28 = vld [vmem:[%s11824_s1 + $0x288] sm:$0xf0]  ;;  %v588_v33 = vsel %vm576_vm14, %v583_v48, %v9226_v7  ;;  %v5965_v53 = vld [vmem:[%s11824_s1 + $0x200] sm:$0xf]  ;;  %v8076_v35 = vld [vmem:[%s11824_s1 + $0x204] sm:$0xf0] }
  0x5d   :  { %1174 = vmatpush.bf16.msra.mxu0 %v5982_v1  ;;  %1231 = vmatpush.bf16.msra.mxu2 %v5978_v14  ;;  %v6034_v30 = vor.u32 %v8091_v27, %v6031_v28  ;;  %v5966_v37 = vor.u32 %v8076_v35, %v5965_v53  ;;  %v8092_v8 = vld [vmem:[%s11824_s1 + $0x284] sm:$0xf0]  ;;  %v590_v41 = vsel %vm576_vm14, %v585_v49, %v589_v34  ;;  %v8129_v38 = vld [vmem:[%s11824_s1 + $0x374] sm:$0xf]  ;;  %v6215_v40 = vld [vmem:[%s11824_s1 + $0x378] sm:$0xf0] }
  0x5e   :  { %1258 = vmatpush.bf16.msra.mxu3 %v6050_v61  ;;  %v6218_v42 = vor.u32 %v8129_v38, %v6215_v40  ;;  %v8145_v43 = vld [vmem:[%s11824_s1 + $0x3f4] sm:$0xf]  ;;  %v6279_v44 = vld [vmem:[%s11824_s1 + $0x3f8] sm:$0xf0]  ;;  %v6213_v46 = vld [vmem:[%s11824_s1 + $0x370] sm:$0xf] }
  0x5f   :  { %v6282_v45 = vor.u32 %v8145_v43, %v6279_v44  ;;  %v8130_v47 = vld [vmem:[%s11824_s1 + $0x374] sm:$0xf0]  ;;  %v6277_v48 = vld [vmem:[%s11824_s1 + $0x3f0] sm:$0xf]  ;;  %v8127_v52 = vld [vmem:[%s11824_s1 + $0x364] sm:$0xf] }
  0x60   :  { %1203 = vmatpush.bf16.msra.mxu1 %v6038_v24  ;;  %v6214_v50 = vor.u32 %v8130_v47, %v6213_v46  ;;  %v8146_v51 = vld [vmem:[%s11824_s1 + $0x3f4] sm:$0xf0]  ;;  %v6207_v54 = vld [vmem:[%s11824_s1 + $0x368] sm:$0xf0]  ;;  %v8143_v57 = vld [vmem:[%s11824_s1 + $0x3e4] sm:$0xf] }
  0x61   :  { %1175 = vmatpush.bf16.msra.mxu0 %v5974_v19  ;;  %v6278_v55 = vor.u32 %v8146_v51, %v6277_v48  ;;  %v6210_v56 = vor.u32 %v8127_v52, %v6207_v54  ;;  %v6271_v58 = vld [vmem:[%s11824_s1 + $0x3e8] sm:$0xf0]  ;;  %v5933_v61 = vld [vmem:[#allocation2] sm:$0xc]  ;;  %v8068_v62 = vld [vmem:[#allocation2 + $0x4] sm:$0xf0] }
  0x62   :  { %1259 = vmatpush.bf16.msra.mxu3 %v6042_v18  ;;  %v6274_v59 = vor.u32 %v8143_v57, %v6271_v58  ;;  %v5941_v63 = vld [vmem:[#allocation2 + $0x10] sm:$0xf]  ;;  %v8070_v0 = vld [vmem:[#allocation2 + $0x14] sm:$0xf0]  ;;  %v6205_v1 = vld [vmem:[%s11824_s1 + $0x360] sm:$0xf]  ;;  %v5934_v4 = vor.u32 %v8068_v62, %v5933_v61 }
  0x63   :  { %v8128_v2 = vld [vmem:[%s11824_s1 + $0x364] sm:$0xf0]  ;;  %v5942_v49 = vor.u32 %v8070_v0, %v5941_v63  ;;  %v8141_v10 = vld [vmem:[%s11824_s1 + $0x3d4] sm:$0xf]  ;;  %v8067_v11 = vld [vmem:[#allocation2 + $0x4] sm:$0xc] }
  0x64   :  { %823 = vmatmul.bf16.vlgmr.msrb.gmra.mxu2 %v579_v29  ;;  %v6206_v39 = vor.u32 %v8128_v2, %v6205_v1  ;;  %v8144_v3 = vld [vmem:[%s11824_s1 + $0x3e4] sm:$0xf0]  ;;  %v6263_v12 = vld [vmem:[%s11824_s1 + $0x3d8] sm:$0xf0]  ;;  %v5935_v13 = vld [vmem:[#allocation2 + $0x8] sm:$0xf0] }
  0x65   :  { %1176 = vmatpush.bf16.msra.mxu0 %v5966_v37  ;;  %v8069_v14 = vld [vmem:[#allocation2 + $0x14] sm:$0xf]  ;;  %v5943_v15 = vld [vmem:[#allocation2 + $0x18] sm:$0xf0]  ;;  %v6266_v16 = vor.u32 %v8141_v10, %v6263_v12  ;;  %v987_v17 = vrot.slane %v5934_v4, 2  ;;  %v9341_v18 = vrot.slane %v5942_v49, 2  ;;  %v5938_v19 = vor.u32 %v8067_v11, %v5935_v13 }
  0x66   :  { %767 = vmatmul.bf16.vlgmr.msrb.gmra.mxu0 %v579_v29  ;;  %v5970_v29 = vor.u32 %v8075_v22, %v5967_v25  ;;  %1260 = vmatpush.bf16.msra.mxu3 %v6034_v30  ;;  %v5946_v20 = vor.u32 %v8069_v14, %v5943_v15  ;;  %v6197_v21 = vld [vmem:[%s11824_s1 + $0x350] sm:$0xf]  ;;  %v8126_v22 = vld [vmem:[%s11824_s1 + $0x354] sm:$0xf0]  ;;  %v8123_v28 = vld [vmem:[%s11824_s1 + $0x344] sm:$0xf] }
  0x67   :  { %v6261_v24 = vld [vmem:[%s11824_s1 + $0x3d0] sm:$0xf]  ;;  %v6198_v25 = vor.u32 %v8126_v22, %v6197_v21  ;;  %v8142_v27 = vld [vmem:[%s11824_s1 + $0x3d4] sm:$0xf0]  ;;  %v989_v32 = vsel %vm986_vm15, %v987_v17, %v9341_v18  ;;  %v8139_v53 = vld [vmem:[%s11824_s1 + $0x3c4] sm:$0xf] }
  0x68   :  { %1232 = vmatpush.bf16.msra.mxu2 %v5970_v29  ;;  %v6191_v29 = vld [vmem:[%s11824_s1 + $0x348] sm:$0xf0]  ;;  %v990_v37 = vrot.slane %v5938_v19, 2  ;;  %v6189_v43 = vld [vmem:[%s11824_s1 + $0x340] sm:$0xf]  ;;  %s5541_s30 = sshll.u32 %s11828_s5, 4  ;;  %s5542_s30 = int_to_ptr.hbm [resolvable:$true] %s5541_s30 }
  0x69   :  { %1579 = vmatpush.bf16.msrb.mxu0 %v6214_v50  ;;  %v6255_v35 = vld [vmem:[%s11824_s1 + $0x3c8] sm:$0xf0]  ;;  %v8124_v44 = vld [vmem:[%s11824_s1 + $0x344] sm:$0xf0]  ;;  %v8121_v54 = vld [vmem:[%s11824_s1 + $0x334] sm:$0xf] }
  0x6a   :  { %795 = vmatmul.bf16.vlgmr.msrb.gmra.mxu1 %v582_v36  ;;  %v6190_v47 = vor.u32 %v8124_v44, %v6189_v43  ;;  %v8140_v48 = vld [vmem:[%s11824_s1 + $0x3c4] sm:$0xf0]  ;;  %v6247_v58 = vld [vmem:[%s11824_s1 + $0x3b8] sm:$0xf0]  ;;  %v5951_v61 = vld [vmem:[#allocation2 + $0x28] sm:$0xf0] }
  0x6b   :  { %851 = vmatmul.bf16.vlgmr.msrb.gmra.mxu3 %v582_v36  ;;  %v6029_v36 = vld [vmem:[%s11824_s1 + $0x280] sm:$0xf]  ;;  %v6181_v4 = vld [vmem:[%s11824_s1 + $0x330] sm:$0xf]  ;;  %v8122_v49 = vld [vmem:[%s11824_s1 + $0x334] sm:$0xf0] }
  0x6c   :  { %v6030_v31 = vor.u32 %v8092_v8, %v6029_v36  ;;  %1635 = vmatpush.bf16.msrb.mxu2 %v6218_v42  ;;  %1663 = vmatpush.bf16.msrb.mxu3 %v6282_v45  ;;  %v6258_v36 = vor.u32 %v8139_v53, %v6255_v35  ;;  %v9369_v8 = vrot.slane %v5946_v20, 2  ;;  %v6253_v45 = vld [vmem:[%s11824_s1 + $0x3c0] sm:$0xf]  ;;  %v6182_v10 = vor.u32 %v8122_v49, %v6181_v4  ;;  %v8138_v11 = vld [vmem:[%s11824_s1 + $0x3b4] sm:$0xf0]  ;;  %s8542_s6 = smov 128  }
  0x6d   :  { %1580 = vmatpush.bf16.msrb.mxu0 %v6206_v39  ;;  %v6254_v52 = vor.u32 %v8140_v48, %v6253_v45  ;;  %v6175_v12 = vld [vmem:[%s11824_s1 + $0x328] sm:$0xf0]  ;;  %v8135_v15 = vld [vmem:[%s11824_s1 + $0x3a4] sm:$0xf]  ;;  %v5957_v21 = vld [vmem:[#allocation2 + $0x30] sm:$0xf] }
  0x6e   :  { %1204 = vmatpush.bf16.msra.mxu1 %v6030_v31  ;;  %v5949_v31 = vld [vmem:[#allocation2 + $0x20] sm:$0xf]  ;;  %v992_v40 = vsel %vm986_vm15, %v990_v37, %v9369_v8  ;;  %v8074_v22 = vld [vmem:[#allocation2 + $0x34] sm:$0x30]  ;;  %v8136_v53 = vld [vmem:[%s11824_s1 + $0x3a4] sm:$0xf0] }
  0x6f   :  { %v6167_v37 = vld [vmem:[%s11824_s1 + $0x318] sm:$0xf0]  ;;  %v8116_v4 = vld [vmem:[%s11824_s1 + $0x304] sm:$0xf0]  ;;  %v6221_v49 = vld [vmem:[%s11824_s1 + $0x380] sm:$0xf] }
  0x70   :  { %1636 = vmatpush.bf16.msrb.mxu2 %v6210_v56  ;;  %1664 = vmatpush.bf16.msrb.mxu3 %v6274_v59  ;;  %v8137_v56 = vld [vmem:[%s11824_s1 + $0x3b4] sm:$0xf]  ;;  %v8071_v59 = vld [vmem:[#allocation2 + $0x24] sm:$0xf]  ;;  %v6765_v9 = vld [vmem:[%s11824_s1 + $0x650] sm:$0xf] }
  0x71   :  { %1581 = vmatpush.bf16.msrb.mxu0 %v6198_v25  ;;  %v6250_v62 = vor.u32 %v8137_v56, %v6247_v58  ;;  %v5954_v39 = vor.u32 %v8071_v59, %v5951_v61  ;;  %v8115_v56 = vld [vmem:[%s11824_s1 + $0x304] sm:$0xf]  ;;  %s8543_s7 = smov 8  }
  0x72   :  { %1607 = vmatpush.bf16.msrb.mxu1 %v6278_v55  ;;  %v6183_v55 = vld [vmem:[%s11824_s1 + $0x338] sm:$0xf0] }
  0x73   :  { %v6186_v57 = vor.u32 %v8121_v54, %v6183_v55  ;;  %v9432_v17 = vrot.slane %v5954_v39, 2  ;;  %v8134_v55 = vld [vmem:[%s11824_s1 + $0x394] sm:$0xf0] }
  0x74   :  { %828 = vmatmul.bf16.gmra.mxu2 %v584_v23  ;;  %1665 = vmatpush.bf16.msrb.mxu3 %v6266_v16  ;;  %v6239_v16 = vld [vmem:[%s11824_s1 + $0x3a8] sm:$0xf0] }
  0x75   :  { %1582 = vmatpush.bf16.msrb.mxu0 %v6190_v47  ;;  %v996_v25 = vsel %vm986_vm15, %v9369_v8, %v9432_v17  ;;  %v8133_v8 = vld [vmem:[%s11824_s1 + $0x394] sm:$0xf] }
  0x76   :  { %772 = vmatmul.bf16.gmra.mxu0 %v584_v23  ;;  %v6269_v23 = vld [vmem:[%s11824_s1 + $0x3e0] sm:$0xf] }
  0x77   :  { %v6270_v5 = vor.u32 %v8144_v3, %v6269_v23 }
  0x78   :  { %1666 = vmatpush.bf16.msrb.mxu3 %v6258_v36  ;;  %v8117_v36 = vld [vmem:[%s11824_s1 + $0x314] sm:$0xf] }
  0x79   :  { %1608 = vmatpush.bf16.msrb.mxu1 %v6270_v5  ;;  %v6245_v5 = vld [vmem:[%s11824_s1 + $0x3b0] sm:$0xf]  ;;  %1583 = vmatpush.bf16.msrb.mxu0 %v6182_v10 }
  0x7a   :  { %800 = vmatmul.bf16.gmra.mxu1 %v586_v6  ;;  %v6246_v13 = vor.u32 %v8138_v11, %v6245_v5 }
  0x7b   :  { %856 = vmatmul.bf16.gmra.mxu3 %v586_v6  ;;  %v8125_v6 = vld [vmem:[%s11824_s1 + $0x354] sm:$0xf] }
  0x7c   :  { %1667 = vmatpush.bf16.msrb.mxu3 %v6250_v62 }
  0x84   :  { %833 = vmatmul.bf16.gmra.mxu2 %v588_v33 }
  0x86   :  { %777 = vmatmul.bf16.gmra.mxu0 %v588_v33  ;;  %v6262_v33 = vor.u32 %v8142_v27, %v6261_v24 }
  0x88   :  { %1609 = vmatpush.bf16.msrb.mxu1 %v6262_v33  ;;  %v5958_v33 = vor.u32 %v8074_v22, %v5957_v21 }
  0x8a   :  { %805 = vmatmul.bf16.gmra.mxu1 %v590_v41  ;;  %v997_v44 = vrot.slane %v5958_v33, 2  ;;  %v8184_v33 = vld [vmem:[%s11824_s1 + $0x4f4] sm:$0xf0] }
  0x8b   :  { %861 = vmatmul.bf16.gmra.mxu3 %v590_v41  ;;  %v8072_v41 = vld [vmem:[#allocation2 + $0x24] sm:$0xf0] }
  0x8c   :  { %v5950_v51 = vor.u32 %v8072_v41, %v5949_v31  ;;  %1610 = vmatpush.bf16.msrb.mxu1 %v6254_v52  ;;  %v6170_v31 = vor.u32 %v8117_v36, %v6167_v37  ;;  %v6231_v41 = vld [vmem:[%s11824_s1 + $0x398] sm:$0xf0]  ;;  %v6229_v52 = vld [vmem:[%s11824_s1 + $0x390] sm:$0xf]  ;;  %v8181_v37 = vld [vmem:[%s11824_s1 + $0x4e4] sm:$0xf] }
  0x8d   :  { %v6230_v61 = vor.u32 %v8134_v55, %v6229_v52  ;;  %v6453_v52 = vld [vmem:[%s11824_s1 + $0x4e0] sm:$0xf] }
  0x8e   :  { %v9399_v0 = vrot.slane %v5950_v51, 2  ;;  %v8118_v51 = vld [vmem:[%s11824_s1 + $0x314] sm:$0xf0] }
  0x90   :  { %1611 = vmatpush.bf16.msrb.mxu1 %v6246_v13  ;;  %v998_v59 = vsel %vm986_vm15, %v9399_v0, %v997_v44 }
  0x94   :  { %838 = vmatmul.bf16.gmra.mxu2 %v9226_v7 }
  0x96   :  { %782 = vmatmul.bf16.gmra.mxu0 %v9226_v7  ;;  %v6199_v7 = vld [vmem:[%s11824_s1 + $0x358] sm:$0xf0] }
  0x97   :  { %v6202_v60 = vor.u32 %v8125_v6, %v6199_v7  ;;  %v994_v7 = vsel %vm986_vm15, %v9341_v18, %v9399_v0  ;;  %v6242_v18 = vor.u32 %v8135_v15, %v6239_v16  ;;  %v6157_v0 = vld [vmem:[%s11824_s1 + $0x300] sm:$0xf]  ;;  %v6399_v15 = vld [vmem:[%s11824_s1 + $0x478] sm:$0xf0] }
  0x99   :  { %1637 = vmatpush.bf16.msrb.mxu2 %v6202_v60  ;;  %v8119_v60 = vld [vmem:[%s11824_s1 + $0x324] sm:$0xf]  ;;  %1668 = vmatpush.bf16.msrb.mxu3 %v6242_v18  ;;  %v8183_v18 = vld [vmem:[%s11824_s1 + $0x4f4] sm:$0xf] }
  0x9a   :  { %810 = vmatmul.bf16.gmra.mxu1 %v589_v34  ;;  %v6178_v14 = vor.u32 %v8119_v60, %v6175_v12 }
  0x9b   :  { %866 = vmatmul.bf16.gmra.mxu3 %v589_v34  ;;  %v6194_v34 = vor.u32 %v8123_v28, %v6191_v29  ;;  %v6173_v28 = vld [vmem:[%s11824_s1 + $0x320] sm:$0xf]  ;;  %v8120_v29 = vld [vmem:[%s11824_s1 + $0x324] sm:$0xf0] }
  0x9d   :  { %1638 = vmatpush.bf16.msrb.mxu2 %v6194_v34  ;;  %v6174_v34 = vor.u32 %v8120_v29, %v6173_v28  ;;  %v6397_v28 = vld [vmem:[%s11824_s1 + $0x470] sm:$0xf]  ;;  %v8168_v29 = vld [vmem:[%s11824_s1 + $0x474] sm:$0xf0] }
  0x9f   :  { %1584 = vmatpush.bf16.msrb.mxu0 %v6174_v34  ;;  %v8165_v34 = vld [vmem:[%s11824_s1 + $0x464] sm:$0xf] }
  0xa1   :  { %1639 = vmatpush.bf16.msrb.mxu2 %v6186_v57  ;;  %v6159_v57 = vld [vmem:[%s11824_s1 + $0x308] sm:$0xf0] }
  0xa2   :  { %v6162_v62 = vor.u32 %v8115_v56, %v6159_v57 }
  0xa3   :  { %v386_v30 = vpop.f32.mrf.mxu0 }
  0xa4   :  { %1233 = vmatmul.bf16.vlgmr.msra.gmra.mxu2 %v989_v32 }
  0xa5   :  { %1640 = vmatpush.bf16.msrb.mxu2 %v6178_v14  ;;  %v8167_v14 = vld [vmem:[%s11824_s1 + $0x474] sm:$0xf] }
  0xa6   :  { %1177 = vmatmul.bf16.vlgmr.msra.gmra.mxu0 %v989_v32  ;;  %v6402_v16 = vor.u32 %v8167_v14, %v6399_v15  ;;  %v6381_v15 = vld [vmem:[%s11824_s1 + $0x450] sm:$0xf] }
  0xa7   :  { %v414_v38 = vpop.f32.mrf.mxu1  ;;  %v442_v42 = vpop.f32.mrf.mxu2 }
  0xa8   :  { %v9382_v46 = vadd.f32 %v414_v38, %v386_v30  ;;  %v6237_v30 = vld [vmem:[%s11824_s1 + $0x3a0] sm:$0xf]  ;;  %v8073_v38 = vld [vmem:[#allocation2 + $0x34] sm:$0xf] }
  0xa9   :  { %v6238_v35 = vor.u32 %v8136_v53, %v6237_v30  ;;  %1641 = vmatpush.bf16.msrb.mxu2 %v6170_v31  ;;  %v6461_v30 = vld [vmem:[%s11824_s1 + $0x4f0] sm:$0xf]  ;;  %v6391_v53 = vld [vmem:[%s11824_s1 + $0x468] sm:$0xf0] }
  0xaa   :  { %1205 = vmatmul.bf16.vlgmr.msra.gmra.mxu1 %v992_v40  ;;  %v6394_v36 = vor.u32 %v8165_v34, %v6391_v53 }
  0xab   :  { %v388_v50 = vpop.f32.mrf.mxu0  ;;  %1261 = vmatmul.bf16.vlgmr.msra.gmra.mxu3 %v992_v40  ;;  %v5959_v40 = vld [vmem:[#allocation2 + $0x38] sm:$0x30]  ;;  %1612 = vmatpush.bf16.msrb.mxu1 %v6238_v35  ;;  %v6462_v35 = vor.u32 %v8184_v33, %v6461_v30  ;;  %v8177_v30 = vld [vmem:[%s11824_s1 + $0x4c4] sm:$0xf] }
  0xac   :  { %v5962_v48 = vor.u32 %v8073_v38, %v5959_v40 }
  0xad   :  { %1642 = vmatpush.bf16.msrb.mxu2 %v6162_v62  ;;  %v6383_v62 = vld [vmem:[%s11824_s1 + $0x458] sm:$0xf0] }
  0xae   :  { %v470_v63 = vpop.f32.mrf.mxu3  ;;  %v9489_v39 = vrot.slane %v5962_v48, 2 }
  0xaf   :  { %v9401_v1 = vadd.f32 %v470_v63, %v442_v42  ;;  %v416_v2 = vpop.f32.mrf.mxu1  ;;  %v444_v23 = vpop.f32.mrf.mxu2  ;;  %v6234_v42 = vor.u32 %v8133_v8, %v6231_v41  ;;  %v8131_v63 = vld [vmem:[%s11824_s1 + $0x384] sm:$0xf]  ;;  %1613 = vmatpush.bf16.msrb.mxu1 %v6230_v61  ;;  %v6455_v8 = vld [vmem:[%s11824_s1 + $0x4e8] sm:$0xf0]  ;;  %v6125_v41 = vld [vmem:[#allocation2] sm:$0x8] }
  0xb0   :  { %v9403_v3 = vadd.f32 %v416_v2, %v388_v50  ;;  %v6165_v50 = vld [vmem:[%s11824_s1 + $0x310] sm:$0xf]  ;;  %v6223_v2 = vld [vmem:[%s11824_s1 + $0x388] sm:$0xf0]  ;;  %v1000_v60 = vsel %vm986_vm15, %v9432_v17, %v9489_v39  ;;  %v6463_v17 = vld [vmem:[%s11824_s1 + $0x4f8] sm:$0xf0]  ;;  %v6458_v38 = vor.u32 %v8181_v37, %v6455_v8 }
  0xb1   :  { %1669 = vmatpush.bf16.msrb.mxu3 %v6234_v42  ;;  %v6166_v54 = vor.u32 %v8118_v51, %v6165_v50  ;;  %2026 = vmatpush.bf16.msra.mxu2 %v6402_v16  ;;  %v8108_v42 = vld [vmem:[#allocation2 + $0x4] sm:$0xf0]  ;;  %v6389_v50 = vld [vmem:[%s11824_s1 + $0x460] sm:$0xf]  ;;  %v8163_v61 = vld [vmem:[%s11824_s1 + $0x454] sm:$0xf] }
  0xb2   :  { %v8166_v51 = vld [vmem:[%s11824_s1 + $0x464] sm:$0xf0]  ;;  %v6126_v55 = vor.u32 %v8108_v42, %v6125_v41  ;;  %v8164_v16 = vld [vmem:[%s11824_s1 + $0x454] sm:$0xf0] }
  0xb3   :  { %v391_v6 = vpop.f32.mrf.mxu0  ;;  %1585 = vmatpush.bf16.msrb.mxu0 %v6166_v54  ;;  %v6390_v57 = vor.u32 %v8166_v51, %v6389_v50  ;;  %v8112_v37 = vld [vmem:[#allocation2 + $0x24] sm:$0xf0] }
  0xb4   :  { %1238 = vmatmul.bf16.gmra.mxu2 %v994_v7  ;;  %v6158_v6 = vor.u32 %v8116_v4, %v6157_v0  ;;  %v6127_v0 = vld [vmem:[#allocation2 + $0x8] sm:$0xf0]  ;;  %v8109_v4 = vld [vmem:[#allocation2 + $0x14] sm:$0xf]  ;;  %v8162_v42 = vld [vmem:[%s11824_s1 + $0x444] sm:$0xf0] }
  0xb5   :  { %2027 = vmatpush.bf16.msra.mxu2 %v6394_v36  ;;  %v6141_v36 = vld [vmem:[#allocation2 + $0x20] sm:$0xf] }
  0xb6   :  { %1182 = vmatmul.bf16.gmra.mxu0 %v994_v7  ;;  %v472_v19 = vpop.f32.mrf.mxu3  ;;  %v8132_v7 = vld [vmem:[%s11824_s1 + $0x384] sm:$0xf0]  ;;  %v6142_v51 = vor.u32 %v8112_v37, %v6141_v36  ;;  %v8113_v37 = vld [vmem:[#allocation2 + $0x34] sm:$0xf] }
  0xb7   :  { %v9434_v20 = vadd.f32 %v472_v19, %v444_v23  ;;  %v419_v24 = vpop.f32.mrf.mxu1  ;;  %v447_v27 = vpop.f32.mrf.mxu2  ;;  %v6226_v23 = vor.u32 %v8131_v63, %v6223_v2  ;;  %v6222_v10 = vor.u32 %v8132_v7, %v6221_v49  ;;  %1586 = vmatpush.bf16.msrb.mxu0 %v6158_v6  ;;  %v6466_v19 = vor.u32 %v8183_v18, %v6463_v17  ;;  %v8179_v63 = vld [vmem:[%s11824_s1 + $0x4d4] sm:$0xf]  ;;  %v8107_v2 = vld [vmem:[#allocation2 + $0x4] sm:$0x8]  ;;  %v6135_v49 = vld [vmem:[#allocation2 + $0x18] sm:$0xf0] }
  0xb8   :  { %v1397_v7 = vrot.slane %v6126_v55, 3  ;;  %v6138_v14 = vor.u32 %v8109_v4, %v6135_v49  ;;  %v6445_v18 = vld [vmem:[%s11824_s1 + $0x4d0] sm:$0xf]  ;;  %v6382_v17 = vor.u32 %v8164_v16, %v6381_v15  ;;  %v6359_v16 = vld [vmem:[%s11824_s1 + $0x428] sm:$0xf0] }
  0xb9   :  { %1670 = vmatpush.bf16.msrb.mxu3 %v6226_v23  ;;  %1614 = vmatpush.bf16.msrb.mxu1 %v6222_v10  ;;  %v6386_v23 = vor.u32 %v8163_v61, %v6383_v62 }
  0xba   :  { %1210 = vmatmul.bf16.gmra.mxu1 %v996_v25  ;;  %v9604_v53 = vrot.slane %v6138_v14, 3  ;;  %v6429_v14 = vld [vmem:[%s11824_s1 + $0x4b0] sm:$0xf] }
  0xbb   :  { %v393_v32 = vpop.f32.mrf.mxu0  ;;  %1266 = vmatmul.bf16.gmra.mxu3 %v996_v25  ;;  %2028 = vmatpush.bf16.msra.mxu2 %v6386_v23 }
  0xbc   :  { %v6398_v32 = vor.u32 %v8168_v29, %v6397_v28 }
  0xbd   :  { %2054 = vmatpush.bf16.msra.mxu3 %v6466_v19  ;;  %1998 = vmatpush.bf16.msra.mxu1 %v6462_v35  ;;  %v8180_v19 = vld [vmem:[%s11824_s1 + $0x4d4] sm:$0xf0] }
  0xbe   :  { %v475_v43 = vpop.f32.mrf.mxu3  ;;  %1970 = vmatpush.bf16.msra.mxu0 %v6398_v32  ;;  %v6446_v28 = vor.u32 %v8180_v19, %v6445_v18  ;;  %v6439_v32 = vld [vmem:[%s11824_s1 + $0x4c8] sm:$0xf0]  ;;  %v8173_v19 = vld [vmem:[%s11824_s1 + $0x4a4] sm:$0xf] }
  0xbf   :  { %v421_v45 = vpop.f32.mrf.mxu1  ;;  %v449_v47 = vpop.f32.mrf.mxu2  ;;  %v6133_v43 = vld [vmem:[#allocation2 + $0x10] sm:$0xf]  ;;  %v6442_v33 = vor.u32 %v8177_v30, %v6439_v32 }
  0xc0   :  { %v8110_v45 = vld [vmem:[#allocation2 + $0x14] sm:$0xf0] }
  0xc1   :  { %2055 = vmatpush.bf16.msra.mxu3 %v6458_v38  ;;  %v6134_v56 = vor.u32 %v8110_v45, %v6133_v43  ;;  %v6373_v38 = vld [vmem:[%s11824_s1 + $0x440] sm:$0xf] }
  0xc2   :  { %1971 = vmatpush.bf16.msra.mxu0 %v6390_v57  ;;  %v6437_v43 = vld [vmem:[%s11824_s1 + $0x4c0] sm:$0xf]  ;;  %v8159_v57 = vld [vmem:[%s11824_s1 + $0x434] sm:$0xf] }
  0xc3   :  { %v396_v58 = vpop.f32.mrf.mxu0  ;;  %v9574_v10 = vrot.slane %v6134_v56, 3 }
  0xc4   :  { %1243 = vmatmul.bf16.gmra.mxu2 %v998_v59  ;;  %v8182_v58 = vld [vmem:[%s11824_s1 + $0x4e4] sm:$0xf0] }
  0xc6   :  { %1187 = vmatmul.bf16.gmra.mxu0 %v998_v59  ;;  %v477_v5 = vpop.f32.mrf.mxu3  ;;  %v6454_v59 = vor.u32 %v8182_v58, %v6453_v52  ;;  %v8111_v52 = vld [vmem:[#allocation2 + $0x24] sm:$0xf]  ;;  %v6367_v58 = vld [vmem:[%s11824_s1 + $0x438] sm:$0xf0] }
  0xc7   :  { %v424_v11 = vpop.f32.mrf.mxu1  ;;  %v452_v12 = vpop.f32.mrf.mxu2  ;;  %1972 = vmatpush.bf16.msra.mxu0 %v6382_v17  ;;  %v6370_v61 = vor.u32 %v8159_v57, %v6367_v58 }
  0xc8   :  { %1999 = vmatpush.bf16.msra.mxu1 %v6454_v59  ;;  %v8175_v59 = vld [vmem:[%s11824_s1 + $0x4b4] sm:$0xf] }
  0xca   :  { %1215 = vmatmul.bf16.gmra.mxu1 %v1000_v60 }
  0xcb   :  { %v398_v13 = vpop.f32.mrf.mxu0  ;;  %1271 = vmatmul.bf16.gmra.mxu3 %v1000_v60 }
  0xcc   :  { %2000 = vmatpush.bf16.msra.mxu1 %v6446_v28  ;;  %v6149_v28 = vld [vmem:[#allocation2 + $0x30] sm:$0xf] }
  0xce   :  { %v480_v21 = vpop.f32.mrf.mxu3 }
  0xcf   :  { %v426_v22 = vpop.f32.mrf.mxu1  ;;  %v454_v24 = vpop.f32.mrf.mxu2  ;;  %v8161_v21 = vld [vmem:[%s11824_s1 + $0x444] sm:$0xf] }
  0xd0   :  { %v9518_v25 = vadd.f32 %v426_v22, %v398_v13  ;;  %v6130_v13 = vor.u32 %v8107_v2, %v6127_v0  ;;  %v6375_v22 = vld [vmem:[%s11824_s1 + $0x448] sm:$0xf0]  ;;  %v9635_v2 = vrot.slane %v6142_v51, 3 }
  0xd1   :  { %v6378_v29 = vor.u32 %v8161_v21, %v6375_v22  ;;  %v6423_v21 = vld [vmem:[%s11824_s1 + $0x4a8] sm:$0xf0] }
  0xd2   :  { %v1400_v34 = vrot.slane %v6130_v13, 3  ;;  %v6365_v13 = vld [vmem:[%s11824_s1 + $0x430] sm:$0xf] }
  0xd3   :  { %v401_v27 = vpop.f32.mrf.mxu0  ;;  %2029 = vmatpush.bf16.msra.mxu2 %v6378_v29  ;;  %v8114_v29 = vld [vmem:[#allocation2 + $0x34] sm:$0x70] }
  0xd4   :  { %1248 = vmatmul.bf16.gmra.mxu2 %v997_v44  ;;  %v6150_v36 = vor.u32 %v8114_v29, %v6149_v28  ;;  %v6591_v28 = vld [vmem:[%s11824_s1 + $0x578] sm:$0xf0]  ;;  %v8223_v29 = vld [vmem:[%s11824_s1 + $0x5f4] sm:$0xf] }
  0xd6   :  { %1192 = vmatmul.bf16.gmra.mxu0 %v997_v44  ;;  %v482_v31 = vpop.f32.mrf.mxu3 }
  0xd7   :  { %v9544_v40 = vadd.f32 %v482_v31, %v454_v24  ;;  %v429_v44 = vpop.f32.mrf.mxu1  ;;  %v457_v47 = vpop.f32.mrf.mxu2  ;;  %v1402_v31 = vsel %vm1396_vm0, %v1400_v34, %v9604_v53  ;;  %2030 = vmatpush.bf16.msra.mxu2 %v6370_v61  ;;  %v8156_v61 = vld [vmem:[%s11824_s1 + $0x414] sm:$0xf0] }
  0xd8   :  { %v9546_v48 = vadd.f32 %v429_v44, %v401_v27  ;;  %v1399_v27 = vsel %vm1396_vm0, %v1397_v7, %v9574_v10  ;;  %v6374_v44 = vor.u32 %v8162_v42, %v6373_v38  ;;  %v1404_v7 = vsel %vm1396_vm0, %v9574_v10, %v9635_v2  ;;  %v8176_v10 = vld [vmem:[%s11824_s1 + $0x4b4] sm:$0xf0]  ;;  %v8155_v38 = vld [vmem:[%s11824_s1 + $0x414] sm:$0xf]  ;;  %v6351_v42 = vld [vmem:[%s11824_s1 + $0x418] sm:$0xf0] }
  0xd9   :  { %v6430_v18 = vor.u32 %v8176_v10, %v6429_v14  ;;  %v6341_v14 = vld [vmem:[%s11824_s1 + $0x400] sm:$0xf] }
  0xda   :  { %1220 = vmatmul.bf16.gmra.mxu1 %v9489_v39  ;;  %1973 = vmatpush.bf16.msra.mxu0 %v6374_v44  ;;  %v6354_v44 = vor.u32 %v8155_v38, %v6351_v42  ;;  %v6405_v10 = vld [vmem:[%s11824_s1 + $0x480] sm:$0xf]  ;;  %v8224_v42 = vld [vmem:[%s11824_s1 + $0x5f4] sm:$0xf0] }
  0xdb   :  { %v403_v54 = vpop.f32.mrf.mxu0  ;;  %1276 = vmatmul.bf16.gmra.mxu3 %v9489_v39  ;;  %v6447_v39 = vld [vmem:[%s11824_s1 + $0x4d8] sm:$0xf0] }
  0xdc   :  { %v6450_v5 = vor.u32 %v8179_v63, %v6447_v39  ;;  %v6143_v54 = vld [vmem:[#allocation2 + $0x28] sm:$0xf0] }
  0xdd   :  { %v6146_v23 = vor.u32 %v8111_v52, %v6143_v54  ;;  %v9702_v52 = vrot.slane %v6150_v36, 3 }
  0xde   :  { %v485_v6 = vpop.f32.mrf.mxu3  ;;  %2056 = vmatpush.bf16.msra.mxu3 %v6450_v5 }
  0xdf   :  { %v9576_v11 = vadd.f32 %v485_v6, %v457_v47  ;;  %v431_v60 = vpop.f32.mrf.mxu1  ;;  %v459_v12 = vpop.f32.mrf.mxu2  ;;  %v8178_v47 = vld [vmem:[%s11824_s1 + $0x4c4] sm:$0xf0] }
  0xe0   :  { %v6438_v55 = vor.u32 %v8178_v47, %v6437_v43  ;;  %v9643_v60 = vrot.slane %v6146_v23, 3  ;;  %v6151_v43 = vld [vmem:[#allocation2 + $0x38] sm:$0x70]  ;;  %v8171_v47 = vld [vmem:[%s11824_s1 + $0x494] sm:$0xf] }
  0xe1   :  { %v6154_v58 = vor.u32 %v8113_v37, %v6151_v43  ;;  %v6583_v43 = vld [vmem:[%s11824_s1 + $0x568] sm:$0xf0] }
  0xe2   :  { %2057 = vmatpush.bf16.msra.mxu3 %v6442_v33  ;;  %2001 = vmatpush.bf16.msra.mxu1 %v6438_v55  ;;  %v1406_v32 = vsel %vm1396_vm0, %v9604_v53, %v9643_v60  ;;  %v6421_v53 = vld [vmem:[%s11824_s1 + $0x4a0] sm:$0xf] }
  0xe3   :  { %v768_v24 = vpop.f32.mrf.mxu0 }
  0xe4   :  { %1643 = vmatmul.bf16.vlgmr.msrb.gmra.mxu2 %v1399_v27 }
  0xe6   :  { %1587 = vmatmul.bf16.vlgmr.msrb.gmra.mxu0 %v1399_v27  ;;  %v487_v35 = vpop.f32.mrf.mxu3  ;;  %2002 = vmatpush.bf16.msra.mxu1 %v6430_v18  ;;  %v8170_v18 = vld [vmem:[%s11824_s1 + $0x484] sm:$0xf0] }
  0xe7   :  { %v796_v8 = vpop.f32.mrf.mxu1  ;;  %v824_v41 = vpop.f32.mrf.mxu2 }
  0xe8   :  { %v797_v45 = vadd.f32 %v796_v8, %v768_v24  ;;  %v6426_v24 = vor.u32 %v8173_v19, %v6423_v21  ;;  %v6357_v8 = vld [vmem:[%s11824_s1 + $0x420] sm:$0xf] }
  0xea   :  { %v9621_v56 = vadd.f32 %v797_v45, %v9382_v46  ;;  %1615 = vmatmul.bf16.vlgmr.msrb.gmra.mxu1 %v1402_v31  ;;  %v6431_v46 = vld [vmem:[%s11824_s1 + $0x4b8] sm:$0xf0] }
  0xeb   :  { %v770_v50 = vpop.f32.mrf.mxu0  ;;  %1671 = vmatmul.bf16.vlgmr.msrb.gmra.mxu3 %v1402_v31  ;;  %v6434_v62 = vor.u32 %v8175_v59, %v6431_v46  ;;  %v8158_v31 = vld [vmem:[%s11824_s1 + $0x424] sm:$0xf0]  ;;  %v6349_v59 = vld [vmem:[%s11824_s1 + $0x410] sm:$0xf] }
  0xec   :  { %v6413_v46 = vld [vmem:[%s11824_s1 + $0x490] sm:$0xf]  ;;  %v6350_v23 = vor.u32 %v8156_v61, %v6349_v59  ;;  %v6581_v61 = vld [vmem:[%s11824_s1 + $0x560] sm:$0xf] }
  0xed   :  { %2058 = vmatpush.bf16.msra.mxu3 %v6434_v62 }
  0xee   :  { %v852_v63 = vpop.f32.mrf.mxu3 }
  0xef   :  { %v853_v39 = vadd.f32 %v852_v63, %v824_v41  ;;  %v798_v0 = vpop.f32.mrf.mxu1  ;;  %v826_v4 = vpop.f32.mrf.mxu2  ;;  %v6358_v41 = vor.u32 %v8158_v31, %v6357_v8  ;;  %v1408_v63 = vsel %vm1396_vm0, %v9635_v2, %v9702_v52  ;;  %v6407_v2 = vld [vmem:[%s11824_s1 + $0x488] sm:$0xf0] }
  0xf0   :  { %v799_v5 = vadd.f32 %v798_v0, %v770_v50  ;;  %v6415_v50 = vld [vmem:[%s11824_s1 + $0x498] sm:$0xf0]  ;;  %v8153_v0 = vld [vmem:[%s11824_s1 + $0x404] sm:$0xf] }
  0xf1   :  { %v9638_v49 = vadd.f32 %v853_v39, %v9401_v1  ;;  %v8160_v1 = vld [vmem:[%s11824_s1 + $0x434] sm:$0xf0]  ;;  %2059 = vmatpush.bf16.msra.mxu3 %v6426_v24  ;;  %v6418_v54 = vor.u32 %v8171_v47, %v6415_v50  ;;  %v8221_v47 = vld [vmem:[%s11824_s1 + $0x5e4] sm:$0xf]  ;;  %v6647_v50 = vld [vmem:[%s11824_s1 + $0x5e8] sm:$0xf0] }
  0xf2   :  { %v9646_v12 = vadd.f32 %v799_v5, %v9403_v3  ;;  %v6366_v15 = vor.u32 %v8160_v1, %v6365_v13  ;;  %v8157_v3 = vld [vmem:[%s11824_s1 + $0x424] sm:$0xf]  ;;  %v8172_v39 = vld [vmem:[%s11824_s1 + $0x494] sm:$0xf0]  ;;  %v9731_v13 = vrot.slane %v6154_v58, 3 }
  0xf3   :  { %v773_v6 = vpop.f32.mrf.mxu0  ;;  %v6362_v17 = vor.u32 %v8157_v3, %v6359_v16  ;;  %v6414_v5 = vor.u32 %v8172_v39, %v6413_v46  ;;  %v8206_v46 = vld [vmem:[%s11824_s1 + $0x564] sm:$0xf0] }
  0xf4   :  { %1648 = vmatmul.bf16.gmra.mxu2 %v1404_v7  ;;  %1974 = vmatpush.bf16.msra.mxu0 %v6366_v15  ;;  %v8154_v15 = vld [vmem:[%s11824_s1 + $0x404] sm:$0xf0]  ;;  %v1410_v21 = vsel %vm1396_vm0, %v9643_v60, %v9731_v13  ;;  %v6655_v60 = vld [vmem:[%s11824_s1 + $0x5f8] sm:$0xf0] }
  0xf5   :  { %2031 = vmatpush.bf16.msra.mxu2 %v6362_v17  ;;  %2060 = vmatpush.bf16.msra.mxu3 %v6418_v54  ;;  %v6342_v16 = vor.u32 %v8154_v15, %v6341_v14  ;;  %v6406_v17 = vor.u32 %v8170_v18, %v6405_v10  ;;  %v6650_v54 = vor.u32 %v8221_v47, %v6647_v50  ;;  %v8148_v14 = vld [vmem:[#allocation2 + $0xc] sm:$0xf0]  ;;  %v8204_v18 = vld [vmem:[%s11824_s1 + $0x554] sm:$0xf0] }
  0xf6   :  { %1592 = vmatmul.bf16.gmra.mxu0 %v1404_v7  ;;  %v854_v22 = vpop.f32.mrf.mxu3  ;;  %v8169_v7 = vld [vmem:[%s11824_s1 + $0x484] sm:$0xf] }
  0xf7   :  { %v855_v27 = vadd.f32 %v854_v22, %v826_v4  ;;  %v801_v30 = vpop.f32.mrf.mxu1  ;;  %v829_v33 = vpop.f32.mrf.mxu2  ;;  %v6343_v4 = vld [vmem:[%s11824_s1 + $0x408] sm:$0xf0]  ;;  %v6410_v1 = vor.u32 %v8169_v7, %v6407_v2  ;;  %v6639_v7 = vld [vmem:[%s11824_s1 + $0x5d8] sm:$0xf0] }
  0xf8   :  { %1975 = vmatpush.bf16.msra.mxu0 %v6358_v41  ;;  %v6346_v6 = vor.u32 %v8153_v0, %v6343_v4  ;;  %v8208_v41 = vld [vmem:[%s11824_s1 + $0x574] sm:$0xf0]  ;;  %v8203_v4 = vld [vmem:[%s11824_s1 + $0x554] sm:$0xf] }
  0xf9   :  { %v9676_v34 = vadd.f32 %v855_v27, %v9434_v20  ;;  %v8174_v20 = vld [vmem:[%s11824_s1 + $0x4a4] sm:$0xf0]  ;;  %2032 = vmatpush.bf16.msra.mxu2 %v6354_v44  ;;  %2061 = vmatpush.bf16.msra.mxu3 %v6410_v1  ;;  %v8207_v27 = vld [vmem:[%s11824_s1 + $0x574] sm:$0xf] }
  0xfa   :  { %1620 = vmatmul.bf16.gmra.mxu1 %v1406_v32  ;;  %v6422_v45 = vor.u32 %v8174_v20, %v6421_v53  ;;  %v6594_v30 = vor.u32 %v8207_v27, %v6591_v28  ;;  %v6589_v53 = vld [vmem:[%s11824_s1 + $0x570] sm:$0xf]  ;;  %v6317_v1 = vld [vmem:[#allocation2 + $0x8] sm:$0xf]  ;;  %v8201_v27 = vld [vmem:[%s11824_s1 + $0x544] sm:$0xf] }
  0xfb   :  { %v775_v35 = vpop.f32.mrf.mxu0  ;;  %1676 = vmatmul.bf16.gmra.mxu3 %v1406_v32  ;;  %v6658_v32 = vor.u32 %v8223_v29, %v6655_v60  ;;  %v6653_v20 = vld [vmem:[%s11824_s1 + $0x5f0] sm:$0xf]  ;;  %v6590_v38 = vor.u32 %v8208_v41, %v6589_v53  ;;  %v6567_v28 = vld [vmem:[%s11824_s1 + $0x548] sm:$0xf0] }
  0xfc   :  { %2003 = vmatpush.bf16.msra.mxu1 %v6422_v45  ;;  %1976 = vmatpush.bf16.msra.mxu0 %v6350_v23  ;;  %v6654_v45 = vor.u32 %v8224_v42, %v6653_v20  ;;  %v6582_v23 = vor.u32 %v8206_v46, %v6581_v61  ;;  %v6570_v60 = vor.u32 %v8201_v27, %v6567_v28  ;;  %v6565_v20 = vld [vmem:[%s11824_s1 + $0x540] sm:$0xf]  ;;  %v6325_v61 = vld [vmem:[#allocation2 + $0x18] sm:$0xf] }
  0xfd   :  { %2033 = vmatpush.bf16.msra.mxu2 %v6346_v6  ;;  %2463 = vmatpush.bf16.msrb.mxu3 %v6658_v32  ;;  %v8219_v6 = vld [vmem:[%s11824_s1 + $0x5d4] sm:$0xf]  ;;  %v6631_v32 = vld [vmem:[%s11824_s1 + $0x5c8] sm:$0xf0]  ;;  %v6629_v42 = vld [vmem:[%s11824_s1 + $0x5c0] sm:$0xf] }
  0xfe   :  { %v857_v51 = vpop.f32.mrf.mxu3  ;;  %v6642_v2 = vor.u32 %v8219_v6, %v6639_v7  ;;  %v8150_v46 = vld [vmem:[#allocation2 + $0x1c] sm:$0xf0]  ;;  %v8149_v6 = vld [vmem:[#allocation2 + $0x1c] sm:$0xf] }
  0xff   :  { %v803_v55 = vpop.f32.mrf.mxu1  ;;  %v831_v57 = vpop.f32.mrf.mxu2 }
 0x100   :  { %2004 = vmatpush.bf16.msra.mxu1 %v6414_v5  ;;  %1977 = vmatpush.bf16.msra.mxu0 %v6342_v16  ;;  %v6575_v5 = vld [vmem:[%s11824_s1 + $0x558] sm:$0xf0]  ;;  %v6573_v16 = vld [vmem:[%s11824_s1 + $0x550] sm:$0xf] }
 0x101   :  { %2435 = vmatpush.bf16.msrb.mxu2 %v6594_v30  ;;  %2464 = vmatpush.bf16.msrb.mxu3 %v6650_v54  ;;  %v6559_v54 = vld [vmem:[%s11824_s1 + $0x538] sm:$0xf0] }
 0x103   :  { %v778_v62 = vpop.f32.mrf.mxu0 }
 0x104   :  { %1653 = vmatmul.bf16.gmra.mxu2 %v1408_v63  ;;  %2005 = vmatpush.bf16.msra.mxu1 %v6406_v17  ;;  %v6645_v62 = vld [vmem:[%s11824_s1 + $0x5e0] sm:$0xf]  ;;  %v6637_v17 = vld [vmem:[%s11824_s1 + $0x5d0] sm:$0xf] }
 0x105   :  { %2379 = vmatpush.bf16.msrb.mxu0 %v6590_v38  ;;  %2465 = vmatpush.bf16.msrb.mxu3 %v6642_v2  ;;  %v8202_v38 = vld [vmem:[%s11824_s1 + $0x544] sm:$0xf0]  ;;  %v6557_v2 = vld [vmem:[%s11824_s1 + $0x530] sm:$0xf] }
 0x106   :  { %1597 = vmatmul.bf16.gmra.mxu0 %v1408_v63  ;;  %v859_v3 = vpop.f32.mrf.mxu3 }
 0x107   :  { %v806_v19 = vpop.f32.mrf.mxu1  ;;  %v834_v22 = vpop.f32.mrf.mxu2 }
 0x108   :  { %2407 = vmatpush.bf16.msrb.mxu1 %v6654_v45  ;;  %v6574_v22 = vor.u32 %v8204_v18, %v6573_v16  ;;  %v8218_v45 = vld [vmem:[%s11824_s1 + $0x5c4] sm:$0xf0]  ;;  %v8213_v16 = vld [vmem:[%s11824_s1 + $0x5a4] sm:$0xf]  ;;  %v6615_v18 = vld [vmem:[%s11824_s1 + $0x5a8] sm:$0xf0] }
 0x109   :  { %2380 = vmatpush.bf16.msrb.mxu0 %v6582_v23  ;;  %v6630_v47 = vor.u32 %v8218_v45, %v6629_v42  ;;  %v8152_v42 = vld [vmem:[#allocation2 + $0x2c] sm:$0xf0] }
 0x10a   :  { %1625 = vmatmul.bf16.gmra.mxu1 %v1410_v21 }
 0x10b   :  { %v780_v24 = vpop.f32.mrf.mxu0  ;;  %1681 = vmatmul.bf16.gmra.mxu3 %v1410_v21  ;;  %v6318_v21 = vor.u32 %v8148_v14, %v6317_v1  ;;  %v8216_v14 = vld [vmem:[%s11824_s1 + $0x5b4] sm:$0xf0] }
 0x10d   :  { %2381 = vmatpush.bf16.msrb.mxu0 %v6574_v22 }
 0x10e   :  { %v862_v33 = vpop.f32.mrf.mxu3 }
 0x10f   :  { %v808_v35 = vpop.f32.mrf.mxu1  ;;  %v836_v36 = vpop.f32.mrf.mxu2 }
 0x110   :  { %v809_v37 = vadd.f32 %v808_v35, %v780_v24  ;;  %v8220_v24 = vld [vmem:[%s11824_s1 + $0x5d4] sm:$0xf0]  ;;  %v8147_v35 = vld [vmem:[#allocation2 + $0xc] sm:$0xf] }
 0x111   :  { %v6638_v30 = vor.u32 %v8220_v24, %v6637_v17 }
 0x112   :  { %v9761_v31 = vadd.f32 %v809_v37, %v9518_v25  ;;  %v8205_v25 = vld [vmem:[%s11824_s1 + $0x564] sm:$0xf] }
 0x113   :  { %v783_v8 = vpop.f32.mrf.mxu0  ;;  %v6586_v44 = vor.u32 %v8205_v25, %v6583_v43  ;;  %v6566_v43 = vor.u32 %v8202_v38, %v6565_v20  ;;  %v6333_v38 = vld [vmem:[#allocation2 + $0x28] sm:$0xf] }
 0x114   :  { %1658 = vmatmul.bf16.gmra.mxu2 %v9702_v52 }
 0x115   :  { %2436 = vmatpush.bf16.msrb.mxu2 %v6586_v44  ;;  %2382 = vmatpush.bf16.msrb.mxu0 %v6566_v43 }
 0x116   :  { %1602 = vmatmul.bf16.gmra.mxu0 %v9702_v52  ;;  %v864_v51 = vpop.f32.mrf.mxu3 }
 0x117   :  { %v865_v55 = vadd.f32 %v864_v51, %v836_v36  ;;  %v811_v57 = vpop.f32.mrf.mxu1  ;;  %v839_v58 = vpop.f32.mrf.mxu2  ;;  %v6319_v36 = vld [vmem:[#allocation2 + $0x10] sm:$0xf0] }
 0x118   :  { %v812_v59 = vadd.f32 %v811_v57, %v783_v8  ;;  %v6322_v8 = vor.u32 %v8147_v35, %v6319_v36  ;;  %v8199_v51 = vld [vmem:[%s11824_s1 + $0x534] sm:$0xf]  ;;  %v6543_v36 = vld [vmem:[%s11824_s1 + $0x518] sm:$0xf0] }
 0x119   :  { %v9790_v52 = vadd.f32 %v865_v55, %v9544_v40  ;;  %v8222_v40 = vld [vmem:[%s11824_s1 + $0x5e4] sm:$0xf0]  ;;  %v8215_v55 = vld [vmem:[%s11824_s1 + $0x5b4] sm:$0xf]  ;;  %v6562_v57 = vor.u32 %v8199_v51, %v6559_v54  ;;  %v8196_v51 = vld [vmem:[%s11824_s1 + $0x514] sm:$0xf0] }
 0x11a   :  { %v9805_v39 = vadd.f32 %v812_v59, %v9546_v48  ;;  %1630 = vmatmul.bf16.gmra.mxu1 %v9731_v13  ;;  %v6646_v0 = vor.u32 %v8222_v40, %v6645_v62  ;;  %v6578_v48 = vor.u32 %v8203_v4, %v6575_v5  ;;  %v6326_v4 = vor.u32 %v8150_v46, %v6325_v61  ;;  %v8195_v35 = vld [vmem:[%s11824_s1 + $0x514] sm:$0xf]  ;;  %v6605_v54 = vld [vmem:[%s11824_s1 + $0x590] sm:$0xf] }
 0x11b   :  { %v785_v63 = vpop.f32.mrf.mxu0  ;;  %1686 = vmatmul.bf16.gmra.mxu3 %v9731_v13 }
 0x11c   :  { %2408 = vmatpush.bf16.msrb.mxu1 %v6646_v0  ;;  %2437 = vmatpush.bf16.msrb.mxu2 %v6578_v48  ;;  %v6327_v48 = vld [vmem:[#allocation2 + $0x20] sm:$0xf0] }
 0x11d   :  { %v6330_v24 = vor.u32 %v8149_v6, %v6327_v48  ;;  %v8194_v6 = vld [vmem:[%s11824_s1 + $0x504] sm:$0xf0]  ;;  %v6597_v48 = vld [vmem:[%s11824_s1 + $0x580] sm:$0xf] }
 0x11e   :  { %v867_v13 = vpop.f32.mrf.mxu3 }
 0x11f   :  { %v868_v15 = vadd.f32 %v867_v13, %v839_v58  ;;  %v813_v10 = vpop.f32.mrf.mxu1  ;;  %v841_v3 = vpop.f32.mrf.mxu2  ;;  %v8200_v13 = vld [vmem:[%s11824_s1 + $0x534] sm:$0xf0] }
 0x120   :  { %2409 = vmatpush.bf16.msrb.mxu1 %v6638_v30  ;;  %2438 = vmatpush.bf16.msrb.mxu2 %v6570_v60  ;;  %v6558_v1 = vor.u32 %v8200_v13, %v6557_v2  ;;  %v6549_v60 = vld [vmem:[%s11824_s1 + $0x520] sm:$0xf] }
 0x121   :  { %v9831_v19 = vadd.f32 %v868_v15, %v9576_v11  ;;  %v8217_v11 = vld [vmem:[%s11824_s1 + $0x5c4] sm:$0xf]  ;;  %v6551_v15 = vld [vmem:[%s11824_s1 + $0x528] sm:$0xf0] }
 0x122   :  { %v6634_v33 = vor.u32 %v8217_v11, %v6631_v32  ;;  %2383 = vmatpush.bf16.msrb.mxu0 %v6558_v1  ;;  %v8198_v11 = vld [vmem:[%s11824_s1 + $0x524] sm:$0xf0]  ;;  %v6613_v32 = vld [vmem:[%s11824_s1 + $0x5a0] sm:$0xf] }
 0x123   :  { %v1178_v29 = vpop.f32.mrf.mxu0 }
 0x124   :  { %2034 = vmatmul.bf16.vlgmr.msra.gmra.mxu2 %v6318_v21  ;;  %2466 = vmatpush.bf16.msrb.mxu3 %v6634_v33  ;;  %v6550_v33 = vor.u32 %v8198_v11, %v6549_v60 }
 0x125   :  { %2410 = vmatpush.bf16.msrb.mxu1 %v6630_v47  ;;  %2439 = vmatpush.bf16.msrb.mxu2 %v6562_v57  ;;  %v6541_v47 = vld [vmem:[%s11824_s1 + $0x510] sm:$0xf] }
 0x126   :  { %1978 = vmatmul.bf16.vlgmr.msra.gmra.mxu0 %v6318_v21  ;;  %v869_v37 = vpop.f32.mrf.mxu3  ;;  %v6618_v21 = vor.u32 %v8213_v16, %v6615_v18  ;;  %v6542_v57 = vor.u32 %v8196_v51, %v6541_v47  ;;  %v8247_v16 = vld [vmem:[%s11824_s1 + $0x674] sm:$0xf]  ;;  %v6783_v18 = vld [vmem:[%s11824_s1 + $0x678] sm:$0xf0] }
 0x127   :  { %v1206_v53 = vpop.f32.mrf.mxu1  ;;  %v1234_v41 = vpop.f32.mrf.mxu2  ;;  %2384 = vmatpush.bf16.msrb.mxu0 %v6550_v33 }
 0x128   :  { %v1207_v25 = vadd.f32 %v1206_v53, %v1178_v29  ;;  %v8211_v53 = vld [vmem:[%s11824_s1 + $0x594] sm:$0xf] }
 0x12a   :  { %v9861_v50 = vadd.f32 %v1207_v25, %v9621_v56  ;;  %2006 = vmatmul.bf16.vlgmr.msra.gmra.mxu1 %v6322_v8  ;;  %v6623_v56 = vld [vmem:[%s11824_s1 + $0x5b8] sm:$0xf0] }
 0x12b   :  { %v1180_v44 = vpop.f32.mrf.mxu0  ;;  %2062 = vmatmul.bf16.vlgmr.msra.gmra.mxu3 %v6322_v8  ;;  %v6626_v58 = vor.u32 %v8215_v55, %v6623_v56  ;;  %v6546_v8 = vor.u32 %v8195_v35, %v6543_v36  ;;  %v8212_v56 = vld [vmem:[%s11824_s1 + $0x594] sm:$0xf0]  ;;  %2385 = vmatpush.bf16.msrb.mxu0 %v6542_v57  ;;  %v6781_v36 = vld [vmem:[%s11824_s1 + $0x670] sm:$0xf] }
 0x12c   :  { %v6606_v61 = vor.u32 %v8212_v56, %v6605_v54  ;;  %v6509_v57 = vld [vmem:[#allocation2 + $0x18] sm:$0xf]  ;;  %v8188_v56 = vld [vmem:[#allocation2 + $0x1c] sm:$0xf0] }
 0x12d   :  { %2467 = vmatpush.bf16.msrb.mxu3 %v6626_v58  ;;  %v8193_v58 = vld [vmem:[%s11824_s1 + $0x504] sm:$0xf] }
 0x12e   :  { %v1262_v59 = vpop.f32.mrf.mxu3 }
 0x12f   :  { %v1263_v62 = vadd.f32 %v1262_v59, %v1234_v41  ;;  %v1208_v63 = vpop.f32.mrf.mxu1  ;;  %v1236_v23 = vpop.f32.mrf.mxu2  ;;  %v6607_v41 = vld [vmem:[%s11824_s1 + $0x598] sm:$0xf0]  ;;  %v6535_v59 = vld [vmem:[%s11824_s1 + $0x508] sm:$0xf0] }
 0x130   :  { %v1209_v0 = vadd.f32 %v1208_v63, %v1180_v44  ;;  %v6610_v25 = vor.u32 %v8211_v53, %v6607_v41  ;;  %v6334_v44 = vor.u32 %v8152_v42, %v6333_v38  ;;  %v6538_v46 = vor.u32 %v8193_v58, %v6535_v59  ;;  %v6599_v63 = vld [vmem:[%s11824_s1 + $0x588] sm:$0xf0]  ;;  %v8264_v41 = vld [vmem:[%s11824_s1 + $0x6f4] sm:$0xf0] }
 0x131   :  { %v9876_v40 = vadd.f32 %v1263_v62, %v9638_v49  ;;  %v6621_v49 = vld [vmem:[%s11824_s1 + $0x5b0] sm:$0xf]  ;;  %2468 = vmatpush.bf16.msrb.mxu3 %v6618_v21  ;;  %v8209_v62 = vld [vmem:[%s11824_s1 + $0x584] sm:$0xf]  ;;  %v8263_v21 = vld [vmem:[%s11824_s1 + $0x6f4] sm:$0xf] }
 0x132   :  { %v9879_v7 = vadd.f32 %v1209_v0, %v9646_v12  ;;  %v8197_v12 = vld [vmem:[%s11824_s1 + $0x524] sm:$0xf]  ;;  %v6622_v10 = vor.u32 %v8216_v14, %v6621_v49  ;;  %v6335_v0 = vld [vmem:[#allocation2 + $0x30] sm:$0xf0]  ;;  %v8210_v49 = vld [vmem:[%s11824_s1 + $0x584] sm:$0xf0] }
 0x133   :  { %v1183_v5 = vpop.f32.mrf.mxu0  ;;  %v6554_v3 = vor.u32 %v8197_v12, %v6551_v15  ;;  %v6598_v14 = vor.u32 %v8210_v49, %v6597_v48  ;;  %v6767_v49 = vld [vmem:[%s11824_s1 + $0x658] sm:$0xf0] }
 0x134   :  { %2039 = vmatmul.bf16.gmra.mxu2 %v6326_v4  ;;  %2411 = vmatpush.bf16.msrb.mxu1 %v6622_v10  ;;  %v6533_v5 = vld [vmem:[%s11824_s1 + $0x500] sm:$0xf] }
 0x135   :  { %2440 = vmatpush.bf16.msrb.mxu2 %v6554_v3  ;;  %2469 = vmatpush.bf16.msrb.mxu3 %v6610_v25  ;;  %v6534_v13 = vor.u32 %v8194_v6, %v6533_v5  ;;  %v1739_v3 = vld [vmem:[#allocation2 + $0x38] sm:$0xff]  ;;  %v8261_v25 = vld [vmem:[%s11824_s1 + $0x6e4] sm:$0xf]  ;;  %v6510_v5 = vor.u32 %v8188_v56, %v6509_v57  ;;  %v8242_v57 = vld [vmem:[%s11824_s1 + $0x644] sm:$0xf0] }
 0x136   :  { %1983 = vmatmul.bf16.gmra.mxu0 %v6326_v4  ;;  %v1264_v17 = vpop.f32.mrf.mxu3  ;;  %v6602_v4 = vor.u32 %v8209_v62, %v6599_v63  ;;  %v1793_v35 = vunpack.c.h.b16 %v1739_v3  ;;  %v6773_v62 = vld [vmem:[%s11824_s1 + $0x660] sm:$0xf]  ;;  %v8246_v63 = vld [vmem:[%s11824_s1 + $0x664] sm:$0xf0] }
 0x137   :  { %v1265_v22 = vadd.f32 %v1264_v17, %v1236_v23  ;;  %v1211_v27 = vpop.f32.mrf.mxu1  ;;  %v1239_v28 = vpop.f32.mrf.mxu2  ;;  %v8151_v23 = vld [vmem:[#allocation2 + $0x2c] sm:$0xf]  ;;  %2386 = vmatpush.bf16.msrb.mxu0 %v6534_v13  ;;  %v6786_v17 = vor.u32 %v8247_v16, %v6783_v18  ;;  %v6774_v6 = vor.u32 %v8246_v63, %v6773_v62  ;;  %v8243_v13 = vld [vmem:[%s11824_s1 + $0x654] sm:$0xf]  ;;  %v6511_v16 = vld [vmem:[#allocation2 + $0x20] sm:$0xf0] }
 0x138   :  { %v6338_v1 = vor.u32 %v8151_v23, %v6335_v0  ;;  %v1801_v54 = vpack.c.b16 %v1793_v35, %v1793_v35  ;;  %v6837_v23 = vld [vmem:[%s11824_s1 + $0x6e0] sm:$0xf]  ;;  %v8260_v35 = vld [vmem:[%s11824_s1 + $0x6d4] sm:$0xf0] }
 0x139   :  { %v9906_v29 = vadd.f32 %v1265_v22, %v9676_v34  ;;  %v8214_v34 = vld [vmem:[%s11824_s1 + $0x5a4] sm:$0xf0]  ;;  %2441 = vmatpush.bf16.msrb.mxu2 %v6546_v8  ;;  %2470 = vmatpush.bf16.msrb.mxu3 %v6602_v4  ;;  %v6847_v22 = vld [vmem:[%s11824_s1 + $0x6f8] sm:$0xf0]  ;;  %v6845_v8 = vld [vmem:[%s11824_s1 + $0x6f0] sm:$0xf] }
 0x13a   :  { %2011 = vmatmul.bf16.gmra.mxu1 %v6330_v24  ;;  %v6614_v37 = vor.u32 %v8214_v34, %v6613_v32  ;;  %v6850_v27 = vor.u32 %v8263_v21, %v6847_v22  ;;  %v6846_v38 = vor.u32 %v8264_v41, %v6845_v8  ;;  %v10039_v22 = vrot.slane %v6510_v5, 1  ;;  %v6821_v56 = vld [vmem:[%s11824_s1 + $0x6c0] sm:$0xf] }
 0x13b   :  { %v1185_v30 = vpop.f32.mrf.mxu0  ;;  %2067 = vmatmul.bf16.gmra.mxu3 %v6330_v24  ;;  %v1792_v24 = vunpack.c.l.b16 %v1739_v3  ;;  %v8187_v3 = vld [vmem:[#allocation2 + $0x1c] sm:$0xf] }
 0x13c   :  { %2412 = vmatpush.bf16.msrb.mxu1 %v6614_v37  ;;  %v8248_v37 = vld [vmem:[%s11824_s1 + $0x674] sm:$0xf0] }
 0x13d   :  { %2442 = vmatpush.bf16.msrb.mxu2 %v6538_v46  ;;  %2872 = vmatpush.bf16.msra.mxu3 %v6850_v27  ;;  %v1800_v32 = vpack.c.b16 %v1792_v24, %v1792_v24  ;;  %v6782_v53 = vor.u32 %v8248_v37, %v6781_v36  ;;  %v8241_v36 = vld [vmem:[%s11824_s1 + $0x644] sm:$0xf]  ;;  %v6759_v37 = vld [vmem:[%s11824_s1 + $0x648] sm:$0xf0] }
 0x13e   :  { %v1267_v20 = vpop.f32.mrf.mxu3 }
 0x13f   :  { %v1213_v43 = vpop.f32.mrf.mxu1  ;;  %v1241_v45 = vpop.f32.mrf.mxu2  ;;  %v6775_v20 = vld [vmem:[%s11824_s1 + $0x668] sm:$0xf0]  ;;  %2788 = vmatpush.bf16.msra.mxu0 %v6782_v53 }
 0x140   :  { %2413 = vmatpush.bf16.msrb.mxu1 %v6606_v61  ;;  %v6839_v43 = vld [vmem:[%s11824_s1 + $0x6e8] sm:$0xf0] }
 0x141   :  { %2844 = vmatpush.bf16.msra.mxu2 %v6786_v17  ;;  %v6842_v47 = vor.u32 %v8261_v25, %v6839_v43 }
 0x143   :  { %v1188_v55 = vpop.f32.mrf.mxu0  ;;  %2873 = vmatpush.bf16.msra.mxu3 %v6842_v47  ;;  %2789 = vmatpush.bf16.msra.mxu0 %v6774_v6  ;;  %v8239_v6 = vld [vmem:[%s11824_s1 + $0x634] sm:$0xf] }
 0x144   :  { %2044 = vmatmul.bf16.gmra.mxu2 %v6334_v44  ;;  %2414 = vmatpush.bf16.msrb.mxu1 %v6598_v14  ;;  %v8186_v55 = vld [vmem:[#allocation2 + $0xc] sm:$0xf0]  ;;  %v8185_v14 = vld [vmem:[#allocation2 + $0xc] sm:$0xe] }
 0x146   :  { %1988 = vmatmul.bf16.gmra.mxu0 %v6334_v44  ;;  %v1269_v2 = vpop.f32.mrf.mxu3  ;;  %v6501_v44 = vld [vmem:[#allocation2 + $0x8] sm:$0xe] }
 0x147   :  { %v1216_v12 = vpop.f32.mrf.mxu1  ;;  %v1244_v15 = vpop.f32.mrf.mxu2  ;;  %v6502_v4 = vor.u32 %v8186_v55, %v6501_v44  ;;  %v8190_v44 = vld [vmem:[#allocation2 + $0x2c] sm:$0xf0]  ;;  %v6757_v55 = vld [vmem:[%s11824_s1 + $0x640] sm:$0xf] }
 0x148   :  { %2816 = vmatpush.bf16.msra.mxu1 %v6846_v38  ;;  %v6770_v12 = vor.u32 %v8243_v13, %v6767_v49  ;;  %v105_v15 = vrot.slane %v103_v26, 4  ;;  %v8244_v26 = vld [vmem:[%s11824_s1 + $0x654] sm:$0xf0] }
 0x149   :  { %v2197_v21 = vrot.slane %v6502_v4, 1 }
 0x14a   :  { %2016 = vmatmul.bf16.gmra.mxu1 %v6338_v1  ;;  %111 = vst [vmem:[#allocation2 + $0x40] sm:$0x3] %v105_v15 }
 0x14b   :  { %v1190_v10 = vpop.f32.mrf.mxu0  ;;  %2072 = vmatmul.bf16.gmra.mxu3 %v6338_v1  ;;  %v8259_v1 = vld [vmem:[%s11824_s1 + $0x6d4] sm:$0xf]  ;;  %v2199_v53 = vsel %vm576_vm14, %v2197_v21, %v10039_v22 }
 0x14e   :  { %v1272_v28 = vpop.f32.mrf.mxu3 }
 0x14f   :  { %v1218_v30 = vpop.f32.mrf.mxu1  ;;  %v1246_v60 = vpop.f32.mrf.mxu2 }
 0x150   :  { %v1219_v11 = vadd.f32 %v1218_v30, %v1190_v10  ;;  %v6503_v10 = vld [vmem:[#allocation2 + $0x10] sm:$0xf0] }
 0x151   :  { %v6506_v30 = vor.u32 %v8185_v14, %v6503_v10 }
 0x152   :  { %v9981_v34 = vadd.f32 %v1219_v11, %v9761_v31  ;;  %v8245_v31 = vld [vmem:[%s11824_s1 + $0x664] sm:$0xf]  ;;  %v6829_v11 = vld [vmem:[%s11824_s1 + $0x6d0] sm:$0xf] }
 0x153   :  { %v1193_v33 = vpop.f32.mrf.mxu0  ;;  %v6778_v42 = vor.u32 %v8245_v31, %v6775_v20  ;;  %v6830_v41 = vor.u32 %v8260_v35, %v6829_v11  ;;  %v8257_v31 = vld [vmem:[%s11824_s1 + $0x6c4] sm:$0xf]  ;;  %v6823_v20 = vld [vmem:[%s11824_s1 + $0x6c8] sm:$0xf0] }
 0x154   :  { %2049 = vmatmul.bf16.gmra.mxu2 %v1800_v32  ;;  %v6826_v38 = vor.u32 %v8257_v31, %v6823_v20  ;;  %v8253_v11 = vld [vmem:[%s11824_s1 + $0x6a4] sm:$0xf] }
 0x155   :  { %2845 = vmatpush.bf16.msra.mxu2 %v6778_v42  ;;  %v2200_v42 = vrot.slane %v6506_v30, 1 }
 0x156   :  { %1993 = vmatmul.bf16.gmra.mxu0 %v1800_v32  ;;  %v1274_v45 = vpop.f32.mrf.mxu3 }
 0x157   :  { %v1275_v51 = vadd.f32 %v1274_v45, %v1246_v60  ;;  %v1221_v58 = vpop.f32.mrf.mxu1  ;;  %v1249_v59 = vpop.f32.mrf.mxu2  ;;  %v6514_v60 = vor.u32 %v8187_v3, %v6511_v16  ;;  %v6517_v45 = vld [vmem:[#allocation2 + $0x28] sm:$0xf] }
 0x158   :  { %v1222_v46 = vadd.f32 %v1221_v58, %v1193_v33  ;;  %v6766_v33 = vor.u32 %v8244_v26, %v6765_v9  ;;  %v6518_v63 = vor.u32 %v8190_v44, %v6517_v45  ;;  %v6741_v45 = vld [vmem:[%s11824_s1 + $0x620] sm:$0xf]  ;;  %v8238_v44 = vld [vmem:[%s11824_s1 + $0x624] sm:$0xf0] }
 0x159   :  { %v10008_v61 = vadd.f32 %v1275_v51, %v9790_v52  ;;  %v8262_v52 = vld [vmem:[%s11824_s1 + $0x6e4] sm:$0xf0]  ;;  %2846 = vmatpush.bf16.msra.mxu2 %v6770_v12  ;;  %v10070_v25 = vrot.slane %v6514_v60, 1  ;;  %v6743_v60 = vld [vmem:[%s11824_s1 + $0x628] sm:$0xf0] }
 0x15a   :  { %v10023_v48 = vadd.f32 %v1222_v46, %v9805_v39  ;;  %2021 = vmatmul.bf16.gmra.mxu1 %v1801_v54  ;;  %v6838_v2 = vor.u32 %v8262_v52, %v6837_v23  ;;  %v6831_v39 = vld [vmem:[%s11824_s1 + $0x6d8] sm:$0xf0]  ;;  %2790 = vmatpush.bf16.msra.mxu0 %v6766_v33  ;;  %v8258_v46 = vld [vmem:[%s11824_s1 + $0x6c4] sm:$0xf0]  ;;  %v8189_v23 = vld [vmem:[#allocation2 + $0x2c] sm:$0xf] }
 0x15b   :  { %v1195_v0 = vpop.f32.mrf.mxu0  ;;  %2077 = vmatmul.bf16.gmra.mxu3 %v1801_v54  ;;  %v6834_v18 = vor.u32 %v8259_v1, %v6831_v39  ;;  %v2202_v51 = vsel %vm576_vm14, %v2200_v42, %v10070_v25  ;;  %v6822_v4 = vor.u32 %v8258_v46, %v6821_v56  ;;  %v6751_v52 = vld [vmem:[%s11824_s1 + $0x638] sm:$0xf0]  ;;  %v10101_v14 = vrot.slane %v6518_v63, 1  ;;  %v6807_v33 = vld [vmem:[%s11824_s1 + $0x6a8] sm:$0xf0] }
 0x15c   :  { %2817 = vmatpush.bf16.msra.mxu1 %v6838_v2  ;;  %v6519_v0 = vld [vmem:[#allocation2 + $0x30] sm:$0xf0]  ;;  %v6754_v13 = vor.u32 %v8239_v6, %v6751_v52  ;;  %v6733_v6 = vld [vmem:[%s11824_s1 + $0x610] sm:$0xf]  ;;  %v8236_v52 = vld [vmem:[%s11824_s1 + $0x614] sm:$0xf0] }
 0x15d   :  { %2874 = vmatpush.bf16.msra.mxu3 %v6834_v18  ;;  %v8255_v2 = vld [vmem:[%s11824_s1 + $0x6b4] sm:$0xf]  ;;  %v6522_v12 = vor.u32 %v8189_v23, %v6519_v0 }
 0x15e   :  { %v1277_v17 = vpop.f32.mrf.mxu3 }
 0x15f   :  { %v1278_v24 = vadd.f32 %v1277_v17, %v1249_v59  ;;  %v1223_v27 = vpop.f32.mrf.mxu1  ;;  %v1251_v28 = vpop.f32.mrf.mxu2  ;;  %v6758_v59 = vor.u32 %v8242_v57, %v6757_v55  ;;  %v2204_v17 = vsel %vm576_vm14, %v10039_v22, %v10101_v14  ;;  %v10109_v21 = vrot.slane %v6522_v12, 1  ;;  %v8256_v22 = vld [vmem:[%s11824_s1 + $0x6b4] sm:$0xf0]  ;;  %v6527_v55 = vld [vmem:[#allocation2 + $0x40] sm:$0x10] }
 0x160   :  { %2818 = vmatpush.bf16.msra.mxu1 %v6830_v41  ;;  %v6749_v27 = vld [vmem:[%s11824_s1 + $0x630] sm:$0xf]  ;;  %v8233_v12 = vld [vmem:[%s11824_s1 + $0x604] sm:$0xf] }
 0x161   :  { %v10051_v32 = vadd.f32 %v1278_v24, %v9831_v19  ;;  %v6762_v19 = vor.u32 %v8241_v36, %v6759_v37  ;;  %2875 = vmatpush.bf16.msra.mxu3 %v6826_v38  ;;  %2791 = vmatpush.bf16.msra.mxu0 %v6758_v59  ;;  %v6813_v28 = vld [vmem:[%s11824_s1 + $0x6b0] sm:$0xf]  ;;  %v6810_v36 = vor.u32 %v8253_v11, %v6807_v33  ;;  %v6799_v59 = vld [vmem:[%s11824_s1 + $0x698] sm:$0xf0] }
 0x162   :  { %v6814_v9 = vor.u32 %v8256_v22, %v6813_v28  ;;  %v6789_v28 = vld [vmem:[%s11824_s1 + $0x680] sm:$0xf] }
 0x163   :  { %v1588_v8 = vpop.f32.mrf.mxu0  ;;  %2847 = vmatpush.bf16.msra.mxu2 %v6762_v19  ;;  %v2206_v19 = vsel %vm576_vm14, %v10070_v25, %v10109_v21  ;;  %v6805_v25 = vld [vmem:[%s11824_s1 + $0x6a0] sm:$0xf] }
 0x164   :  { %2443 = vmatmul.bf16.vlgmr.msrb.gmra.mxu2 %v2199_v53  ;;  %2819 = vmatpush.bf16.msra.mxu1 %v6822_v4 }
 0x166   :  { %2387 = vmatmul.bf16.vlgmr.msrb.gmra.mxu0 %v2199_v53  ;;  %v1279_v43 = vpop.f32.mrf.mxu3  ;;  %v8192_v53 = vld [vmem:[#allocation2 + $0x3c] sm:$0x10] }
 0x167   :  { %v1616_v47 = vpop.f32.mrf.mxu1  ;;  %v1644_v54 = vpop.f32.mrf.mxu2  ;;  %2848 = vmatpush.bf16.msra.mxu2 %v6754_v13  ;;  %v8191_v43 = vld [vmem:[#allocation2 + $0x3c] sm:$0xf] }
 0x168   :  { %v1617_v58 = vadd.f32 %v1616_v47, %v1588_v8  ;;  %v6525_v8 = vld [vmem:[#allocation2 + $0x38] sm:$0xf]  ;;  %2820 = vmatpush.bf16.msra.mxu1 %v6814_v9  ;;  %v6742_v47 = vor.u32 %v8238_v44, %v6741_v45  ;;  %v6530_v4 = vor.u32 %v8191_v43, %v6527_v55  ;;  %v6973_v45 = vld [vmem:[%s11824_s1 + $0x770] sm:$0xf] }
 0x169   :  { %v6526_v42 = vor.u32 %v8192_v53, %v6525_v8  ;;  %v8303_v8 = vld [vmem:[%s11824_s1 + $0x7f4] sm:$0xf]  ;;  %v8288_v44 = vld [vmem:[%s11824_s1 + $0x774] sm:$0xf0] }
 0x16a   :  { %v10087_v5 = vadd.f32 %v1617_v58, %v9861_v50  ;;  %2415 = vmatmul.bf16.vlgmr.msrb.gmra.mxu1 %v2202_v51  ;;  %v6815_v50 = vld [vmem:[%s11824_s1 + $0x6b8] sm:$0xf0]  ;;  %v8251_v58 = vld [vmem:[%s11824_s1 + $0x694] sm:$0xf] }
 0x16b   :  { %v1590_v62 = vpop.f32.mrf.mxu0  ;;  %2471 = vmatmul.bf16.vlgmr.msrb.gmra.mxu3 %v2202_v51  ;;  %v6818_v49 = vor.u32 %v8255_v2, %v6815_v50  ;;  %v8235_v51 = vld [vmem:[%s11824_s1 + $0x614] sm:$0xf]  ;;  %v6802_v63 = vor.u32 %v8251_v58, %v6799_v59  ;;  %v6797_v2 = vld [vmem:[%s11824_s1 + $0x690] sm:$0xf]  ;;  %v6693_v59 = vld [vmem:[#allocation2 + $0x8] sm:$0xc] }
 0x16d   :  { %2876 = vmatpush.bf16.msra.mxu3 %v6818_v49  ;;  %v6734_v49 = vor.u32 %v8236_v52, %v6733_v6 }
 0x16e   :  { %v1672_v1 = vpop.f32.mrf.mxu3 }
 0x16f   :  { %v1673_v39 = vadd.f32 %v1672_v1, %v1644_v54  ;;  %v1618_v15 = vpop.f32.mrf.mxu1  ;;  %v1646_v10 = vpop.f32.mrf.mxu2  ;;  %v6735_v54 = vld [vmem:[%s11824_s1 + $0x618] sm:$0xf0]  ;;  %v8252_v1 = vld [vmem:[%s11824_s1 + $0x694] sm:$0xf0] }
 0x170   :  { %v1619_v16 = vadd.f32 %v1618_v15, %v1590_v62  ;;  %v6738_v56 = vor.u32 %v8235_v51, %v6735_v54  ;;  %v10168_v62 = vrot.slane %v6526_v42, 1  ;;  %v6798_v15 = vor.u32 %v8252_v1, %v6797_v2  ;;  %v6967_v51 = vld [vmem:[%s11824_s1 + $0x768] sm:$0xf0] }
 0x171   :  { %v10104_v3 = vadd.f32 %v1673_v39, %v9876_v40  ;;  %v8240_v40 = vld [vmem:[%s11824_s1 + $0x634] sm:$0xf0]  ;;  %2877 = vmatpush.bf16.msra.mxu3 %v6810_v36  ;;  %v6727_v39 = vld [vmem:[%s11824_s1 + $0x608] sm:$0xf0]  ;;  %v6975_v36 = vld [vmem:[%s11824_s1 + $0x778] sm:$0xf0] }
 0x172   :  { %v10112_v24 = vadd.f32 %v1619_v16, %v9879_v7  ;;  %v6750_v30 = vor.u32 %v8240_v40, %v6749_v27  ;;  %v8237_v7 = vld [vmem:[%s11824_s1 + $0x624] sm:$0xf]  ;;  %v2208_v50 = vsel %vm576_vm14, %v10101_v14, %v10168_v62  ;;  %v6791_v14 = vld [vmem:[%s11824_s1 + $0x688] sm:$0xf0]  ;;  %v6725_v27 = vld [vmem:[%s11824_s1 + $0x600] sm:$0xf] }
 0x173   :  { %v1593_v18 = vpop.f32.mrf.mxu0  ;;  %v6746_v26 = vor.u32 %v8237_v7, %v6743_v60  ;;  %v8249_v16 = vld [vmem:[%s11824_s1 + $0x684] sm:$0xf]  ;;  %v8234_v40 = vld [vmem:[%s11824_s1 + $0x604] sm:$0xf0] }
 0x174   :  { %2448 = vmatmul.bf16.gmra.mxu2 %v2204_v17  ;;  %2792 = vmatpush.bf16.msra.mxu0 %v6750_v30  ;;  %v10197_v18 = vrot.slane %v6530_v4, 1  ;;  %v6726_v22 = vor.u32 %v8234_v40, %v6725_v27  ;;  %v8250_v7 = vld [vmem:[%s11824_s1 + $0x684] sm:$0xf0]  ;;  %v8228_v4 = vld [vmem:[#allocation2 + $0x1c] sm:$0xf0] }
 0x175   :  { %2849 = vmatpush.bf16.msra.mxu2 %v6746_v26  ;;  %2878 = vmatpush.bf16.msra.mxu3 %v6802_v63  ;;  %v6790_v60 = vor.u32 %v8250_v7, %v6789_v28  ;;  %v8299_v27 = vld [vmem:[%s11824_s1 + $0x7d4] sm:$0xf]  ;;  %v8225_v40 = vld [vmem:[#allocation2 + $0xc] sm:$0xc] }
 0x176   :  { %2392 = vmatmul.bf16.gmra.mxu0 %v2204_v17  ;;  %v1674_v35 = vpop.f32.mrf.mxu3  ;;  %v6794_v17 = vor.u32 %v8249_v16, %v6791_v14  ;;  %v2210_v26 = vsel %vm576_vm14, %v10109_v21, %v10197_v18  ;;  %v7039_v21 = vld [vmem:[%s11824_s1 + $0x7f8] sm:$0xf0]  ;;  %v8283_v14 = vld [vmem:[%s11824_s1 + $0x754] sm:$0xf] }
 0x177   :  { %v1675_v37 = vadd.f32 %v1674_v35, %v1646_v10  ;;  %v1621_v41 = vpop.f32.mrf.mxu1  ;;  %v1649_v31 = vpop.f32.mrf.mxu2  ;;  %v6730_v10 = vor.u32 %v8233_v12, %v6727_v39  ;;  %v8287_v35 = vld [vmem:[%s11824_s1 + $0x774] sm:$0xf]  ;;  %v7042_v53 = vor.u32 %v8303_v8, %v7039_v21  ;;  %v6957_v8 = vld [vmem:[%s11824_s1 + $0x750] sm:$0xf]  ;;  %v8284_v21 = vld [vmem:[%s11824_s1 + $0x754] sm:$0xf0] }
 0x178   :  { %2793 = vmatpush.bf16.msra.mxu0 %v6742_v47  ;;  %v6974_v47 = vor.u32 %v8288_v44, %v6973_v45  ;;  %v6695_v28 = vld [vmem:[#allocation2 + $0x10] sm:$0xf0] }
 0x179   :  { %v10142_v20 = vadd.f32 %v1675_v37, %v9906_v29  ;;  %v8254_v29 = vld [vmem:[%s11824_s1 + $0x6a4] sm:$0xf0]  ;;  %2850 = vmatpush.bf16.msra.mxu2 %v6738_v56  ;;  %2879 = vmatpush.bf16.msra.mxu3 %v6794_v17  ;;  %v6978_v37 = vor.u32 %v8287_v35, %v6975_v36  ;;  %v7031_v56 = vld [vmem:[%s11824_s1 + $0x7e8] sm:$0xf0]  ;;  %v6959_v17 = vld [vmem:[%s11824_s1 + $0x758] sm:$0xf0]  ;;  %v6698_v36 = vor.u32 %v8225_v40, %v6695_v28 }
 0x17a   :  { %2420 = vmatmul.bf16.gmra.mxu1 %v2206_v19  ;;  %v6806_v57 = vor.u32 %v8254_v29, %v6805_v25  ;;  %v7037_v25 = vld [vmem:[%s11824_s1 + $0x7f0] sm:$0xf]  ;;  %v8304_v29 = vld [vmem:[%s11824_s1 + $0x7f4] sm:$0xf0] }
 0x17b   :  { %v1595_v38 = vpop.f32.mrf.mxu0  ;;  %2476 = vmatmul.bf16.gmra.mxu3 %v2206_v19  ;;  %v7038_v54 = vor.u32 %v8304_v29, %v7037_v25  ;;  %v7015_v29 = vld [vmem:[%s11824_s1 + $0x7c8] sm:$0xf0] }
 0x17c   :  { %2821 = vmatpush.bf16.msra.mxu1 %v6806_v57  ;;  %2794 = vmatpush.bf16.msra.mxu0 %v6734_v49  ;;  %v8301_v57 = vld [vmem:[%s11824_s1 + $0x7e4] sm:$0xf]  ;;  %v7029_v49 = vld [vmem:[%s11824_s1 + $0x7e0] sm:$0xf] }
 0x17d   :  { %2851 = vmatpush.bf16.msra.mxu2 %v6730_v10  ;;  %3281 = vmatpush.bf16.msrb.mxu3 %v7042_v53  ;;  %v7021_v53 = vld [vmem:[%s11824_s1 + $0x7d0] sm:$0xf] }
 0x17e   :  { %v1677_v46 = vpop.f32.mrf.mxu3 }
 0x17f   :  { %v1623_v23 = vpop.f32.mrf.mxu1  ;;  %v1651_v0 = vpop.f32.mrf.mxu2  ;;  %v7034_v46 = vor.u32 %v8301_v57, %v7031_v56  ;;  %v6709_v57 = vld [vmem:[#allocation2 + $0x28] sm:$0xf]  ;;  %v8230_v56 = vld [vmem:[#allocation2 + $0x2c] sm:$0xf0] }
 0x180   :  { %2822 = vmatpush.bf16.msra.mxu1 %v6798_v15  ;;  %2795 = vmatpush.bf16.msra.mxu0 %v6726_v22  ;;  %v8226_v23 = vld [vmem:[#allocation2 + $0xc] sm:$0xf0]  ;;  %v6701_v0 = vld [vmem:[#allocation2 + $0x18] sm:$0xf]  ;;  %v6703_v22 = vld [vmem:[#allocation2 + $0x20] sm:$0xf0] }
 0x181   :  { %3253 = vmatpush.bf16.msrb.mxu2 %v6978_v37  ;;  %3282 = vmatpush.bf16.msrb.mxu3 %v7034_v46  ;;  %v6694_v12 = vor.u32 %v8226_v23, %v6693_v59  ;;  %v6702_v39 = vor.u32 %v8228_v4, %v6701_v0  ;;  %v8282_v23 = vld [vmem:[%s11824_s1 + $0x744] sm:$0xf0]  ;;  %v7013_v0 = vld [vmem:[%s11824_s1 + $0x7c0] sm:$0xf] }
 0x183   :  { %v1598_v13 = vpop.f32.mrf.mxu0 }
 0x184   :  { %2453 = vmatmul.bf16.gmra.mxu2 %v2208_v50  ;;  %2823 = vmatpush.bf16.msra.mxu1 %v6790_v60  ;;  %v6965_v13 = vld [vmem:[%s11824_s1 + $0x760] sm:$0xf] }
 0x185   :  { %3197 = vmatpush.bf16.msrb.mxu0 %v6974_v47  ;;  %v8297_v47 = vld [vmem:[%s11824_s1 + $0x7c4] sm:$0xf] }
 0x186   :  { %2397 = vmatmul.bf16.gmra.mxu0 %v2208_v50  ;;  %v1679_v30 = vpop.f32.mrf.mxu3  ;;  %v8286_v50 = vld [vmem:[%s11824_s1 + $0x764] sm:$0xf0] }
 0x187   :  { %v1626_v9 = vpop.f32.mrf.mxu1  ;;  %v1654_v11 = vpop.f32.mrf.mxu2  ;;  %v6966_v15 = vor.u32 %v8286_v50, %v6965_v13  ;;  %v8227_v30 = vld [vmem:[#allocation2 + $0x1c] sm:$0xf]  ;;  %v6710_v13 = vor.u32 %v8230_v56, %v6709_v57  ;;  %v8229_v50 = vld [vmem:[#allocation2 + $0x2c] sm:$0xf]  ;;  %v6933_v57 = vld [vmem:[%s11824_s1 + $0x720] sm:$0xf] }
 0x188   :  { %3225 = vmatpush.bf16.msrb.mxu1 %v7038_v54  ;;  %v2606_v9 = vrot.slane %v6694_v12, 2  ;;  %v6706_v37 = vor.u32 %v8227_v30, %v6703_v22  ;;  %v8278_v56 = vld [vmem:[%s11824_s1 + $0x724] sm:$0xf0] }
 0x189   :  { %3198 = vmatpush.bf16.msrb.mxu0 %v6966_v15  ;;  %v6943_v15 = vld [vmem:[%s11824_s1 + $0x738] sm:$0xf0] }
 0x18a   :  { %2425 = vmatmul.bf16.gmra.mxu1 %v2210_v26  ;;  %v10318_v54 = vrot.slane %v6706_v37, 2  ;;  %v6935_v37 = vld [vmem:[%s11824_s1 + $0x728] sm:$0xf0] }
 0x18b   :  { %v1600_v33 = vpop.f32.mrf.mxu0  ;;  %2481 = vmatmul.bf16.gmra.mxu3 %v2210_v26  ;;  %v10287_v26 = vrot.slane %v6702_v39, 2  ;;  %v8279_v39 = vld [vmem:[%s11824_s1 + $0x734] sm:$0xf] }
 0x18d   :  { %v2608_v44 = vsel %vm986_vm15, %v2606_v9, %v10287_v26 }
 0x18e   :  { %v1682_v41 = vpop.f32.mrf.mxu3 }
 0x18f   :  { %v1628_v19 = vpop.f32.mrf.mxu1  ;;  %v1656_v31 = vpop.f32.mrf.mxu2 }
 0x190   :  { %v1629_v38 = vadd.f32 %v1628_v19, %v1600_v33  ;;  %v6958_v19 = vor.u32 %v8284_v21, %v6957_v8 }
 0x192   :  { %v10227_v43 = vadd.f32 %v1629_v38, %v9981_v34  ;;  %v8285_v34 = vld [vmem:[%s11824_s1 + $0x764] sm:$0xf]  ;;  %3199 = vmatpush.bf16.msrb.mxu0 %v6958_v19  ;;  %v6999_v19 = vld [vmem:[%s11824_s1 + $0x7a8] sm:$0xf0] }
 0x193   :  { %v1603_v42 = vpop.f32.mrf.mxu0  ;;  %v6970_v55 = vor.u32 %v8285_v34, %v6967_v51  ;;  %v8281_v38 = vld [vmem:[%s11824_s1 + $0x744] sm:$0xf]  ;;  %v7018_v34 = vor.u32 %v8297_v47, %v7015_v29  ;;  %v2609_v51 = vrot.slane %v6698_v36, 2 }
 0x194   :  { %2458 = vmatmul.bf16.gmra.mxu2 %v10168_v62 }
 0x195   :  { %3254 = vmatpush.bf16.msrb.mxu2 %v6970_v55  ;;  %v2611_v59 = vsel %vm986_vm15, %v2609_v51, %v10318_v54 }
 0x196   :  { %2402 = vmatmul.bf16.gmra.mxu0 %v10168_v62  ;;  %v1684_v58 = vpop.f32.mrf.mxu3 }
 0x197   :  { %v1685_v63 = vadd.f32 %v1684_v58, %v1656_v31  ;;  %v1631_v62 = vpop.f32.mrf.mxu1  ;;  %v1659_v6 = vpop.f32.mrf.mxu2  ;;  %v8300_v31 = vld [vmem:[%s11824_s1 + $0x7d4] sm:$0xf0] }
 0x198   :  { %v1632_v2 = vadd.f32 %v1631_v62, %v1603_v42  ;;  %v6951_v42 = vld [vmem:[%s11824_s1 + $0x748] sm:$0xf0]  ;;  %v7022_v25 = vor.u32 %v8300_v31, %v7021_v53  ;;  %v8293_v53 = vld [vmem:[%s11824_s1 + $0x7a4] sm:$0xf] }
 0x199   :  { %v10256_v52 = vadd.f32 %v1685_v63, %v10008_v61  ;;  %v8302_v61 = vld [vmem:[%s11824_s1 + $0x7e4] sm:$0xf0]  ;;  %v6949_v63 = vld [vmem:[%s11824_s1 + $0x740] sm:$0xf] }
 0x19a   :  { %v10271_v10 = vadd.f32 %v1632_v2, %v10023_v48  ;;  %2430 = vmatmul.bf16.gmra.mxu1 %v10197_v18  ;;  %v7030_v16 = vor.u32 %v8302_v61, %v7029_v49  ;;  %v6962_v48 = vor.u32 %v8283_v14, %v6959_v17  ;;  %v6950_v62 = vor.u32 %v8282_v23, %v6949_v63  ;;  %v6711_v49 = vld [vmem:[#allocation2 + $0x30] sm:$0xf0]  ;;  %v6719_v63 = vld [vmem:[#allocation2 + $0x40] sm:$0x30] }
 0x19b   :  { %v1605_v1 = vpop.f32.mrf.mxu0  ;;  %2486 = vmatmul.bf16.gmra.mxu3 %v10197_v18  ;;  %v7023_v18 = vld [vmem:[%s11824_s1 + $0x7d8] sm:$0xf0]  ;;  %v8295_v61 = vld [vmem:[%s11824_s1 + $0x7b4] sm:$0xf]  ;;  %v6714_v40 = vor.u32 %v8229_v50, %v6711_v49 }
 0x19c   :  { %3226 = vmatpush.bf16.msrb.mxu1 %v7030_v16  ;;  %v7026_v7 = vor.u32 %v8299_v27, %v7023_v18  ;;  %3255 = vmatpush.bf16.msrb.mxu2 %v6962_v48  ;;  %v6946_v16 = vor.u32 %v8279_v39, %v6943_v15  ;;  %v10349_v27 = vrot.slane %v6710_v13, 2  ;;  %v6925_v39 = vld [vmem:[%s11824_s1 + $0x710] sm:$0xf]  ;;  %v8276_v15 = vld [vmem:[%s11824_s1 + $0x714] sm:$0xf0] }
 0x19d   :  { %3200 = vmatpush.bf16.msrb.mxu0 %v6950_v62  ;;  %v10357_v9 = vrot.slane %v6714_v40, 2  ;;  %v6991_v62 = vld [vmem:[%s11824_s1 + $0x798] sm:$0xf0]  ;;  %v8273_v40 = vld [vmem:[%s11824_s1 + $0x704] sm:$0xf] }
 0x19e   :  { %v1687_v60 = vpop.f32.mrf.mxu3  ;;  %3283 = vmatpush.bf16.msrb.mxu3 %v7026_v7 }
 0x19f   :  { %v1688_v11 = vadd.f32 %v1687_v60, %v1659_v6  ;;  %v1633_v33 = vpop.f32.mrf.mxu1  ;;  %v1661_v35 = vpop.f32.mrf.mxu2  ;;  %v8298_v6 = vld [vmem:[%s11824_s1 + $0x7c4] sm:$0xf0]  ;;  %v2613_v60 = vsel %vm986_vm15, %v10287_v26, %v10349_v27  ;;  %v8296_v26 = vld [vmem:[%s11824_s1 + $0x7b4] sm:$0xf0] }
 0x1a0   :  { %3227 = vmatpush.bf16.msrb.mxu1 %v7022_v25  ;;  %v7014_v1 = vor.u32 %v8298_v6, %v7013_v0  ;;  %v6941_v33 = vld [vmem:[%s11824_s1 + $0x730] sm:$0xf] }
 0x1a1   :  { %v10299_v41 = vadd.f32 %v1688_v11, %v10051_v32  ;;  %v6954_v32 = vor.u32 %v8281_v38, %v6951_v42  ;;  %v7005_v35 = vld [vmem:[%s11824_s1 + $0x7b0] sm:$0xf]  ;;  %v7002_v38 = vor.u32 %v8293_v53, %v6999_v19 }
 0x1a2   :  { %3284 = vmatpush.bf16.msrb.mxu3 %v7018_v34  ;;  %v7006_v8 = vor.u32 %v8296_v26, %v7005_v35  ;;  %v6981_v35 = vld [vmem:[%s11824_s1 + $0x780] sm:$0xf] }
 0x1a3   :  { %v1979_v45 = vpop.f32.mrf.mxu0  ;;  %3256 = vmatpush.bf16.msrb.mxu2 %v6954_v32  ;;  %v2615_v32 = vsel %vm986_vm15, %v10318_v54, %v10357_v9  ;;  %v6997_v54 = vld [vmem:[%s11824_s1 + $0x7a0] sm:$0xf] }
 0x1a4   :  { %2852 = vmatmul.bf16.vlgmr.msra.gmra.mxu2 %v2608_v44  ;;  %3228 = vmatpush.bf16.msrb.mxu1 %v7014_v1 }
 0x1a6   :  { %2796 = vmatmul.bf16.vlgmr.msra.gmra.mxu0 %v2608_v44  ;;  %v1689_v55 = vpop.f32.mrf.mxu3  ;;  %v8232_v44 = vld [vmem:[#allocation2 + $0x3c] sm:$0x30] }
 0x1a7   :  { %v2007_v58 = vpop.f32.mrf.mxu1  ;;  %v2035_v46 = vpop.f32.mrf.mxu2  ;;  %3257 = vmatpush.bf16.msrb.mxu2 %v6946_v16  ;;  %v8231_v55 = vld [vmem:[#allocation2 + $0x3c] sm:$0xf] }
 0x1a8   :  { %v2008_v4 = vadd.f32 %v2007_v58, %v1979_v45  ;;  %v6717_v45 = vld [vmem:[#allocation2 + $0x38] sm:$0xf]  ;;  %3229 = vmatpush.bf16.msrb.mxu1 %v7006_v8  ;;  %v6934_v58 = vor.u32 %v8278_v56, %v6933_v57  ;;  %v6722_v1 = vor.u32 %v8231_v55, %v6719_v63  ;;  %v7157_v57 = vld [vmem:[%s11824_s1 + $0x870] sm:$0xf] }
 0x1a9   :  { %v6718_v51 = vor.u32 %v8232_v44, %v6717_v45  ;;  %v8341_v45 = vld [vmem:[%s11824_s1 + $0x8f4] sm:$0xf]  ;;  %v8326_v56 = vld [vmem:[%s11824_s1 + $0x874] sm:$0xf0] }
 0x1aa   :  { %v10335_v12 = vadd.f32 %v2008_v4, %v10087_v5  ;;  %2824 = vmatmul.bf16.vlgmr.msra.gmra.mxu1 %v2611_v59  ;;  %v7007_v5 = vld [vmem:[%s11824_s1 + $0x7b8] sm:$0xf0]  ;;  %v8291_v4 = vld [vmem:[%s11824_s1 + $0x794] sm:$0xf] }
 0x1ab   :  { %v1981_v2 = vpop.f32.mrf.mxu0  ;;  %2880 = vmatmul.bf16.vlgmr.msra.gmra.mxu3 %v2611_v59  ;;  %v7010_v14 = vor.u32 %v8295_v61, %v7007_v5  ;;  %v8275_v59 = vld [vmem:[%s11824_s1 + $0x714] sm:$0xf]  ;;  %v6994_v13 = vor.u32 %v8291_v4, %v6991_v62  ;;  %v6989_v61 = vld [vmem:[%s11824_s1 + $0x790] sm:$0xf]  ;;  %v6885_v62 = vld [vmem:[#allocation2 + $0x8] sm:$0x8] }
 0x1ad   :  { %3285 = vmatpush.bf16.msrb.mxu3 %v7010_v14  ;;  %v6926_v14 = vor.u32 %v8276_v15, %v6925_v39 }
 0x1ae   :  { %v2063_v17 = vpop.f32.mrf.mxu3 }
 0x1af   :  { %v2064_v48 = vadd.f32 %v2063_v17, %v2035_v46  ;;  %v2009_v18 = vpop.f32.mrf.mxu1  ;;  %v2037_v28 = vpop.f32.mrf.mxu2  ;;  %v6927_v46 = vld [vmem:[%s11824_s1 + $0x718] sm:$0xf0]  ;;  %v8292_v17 = vld [vmem:[%s11824_s1 + $0x794] sm:$0xf0] }
 0x1b0   :  { %v2010_v22 = vadd.f32 %v2009_v18, %v1981_v2  ;;  %v6930_v0 = vor.u32 %v8275_v59, %v6927_v46  ;;  %v10416_v2 = vrot.slane %v6718_v51, 2  ;;  %v6990_v18 = vor.u32 %v8292_v17, %v6989_v61  ;;  %v7151_v59 = vld [vmem:[%s11824_s1 + $0x868] sm:$0xf0] }
 0x1b1   :  { %v10352_v30 = vadd.f32 %v2064_v48, %v10104_v3  ;;  %v8280_v3 = vld [vmem:[%s11824_s1 + $0x734] sm:$0xf0]  ;;  %3286 = vmatpush.bf16.msrb.mxu3 %v7002_v38  ;;  %v6919_v48 = vld [vmem:[%s11824_s1 + $0x708] sm:$0xf0]  ;;  %v7159_v38 = vld [vmem:[%s11824_s1 + $0x878] sm:$0xf0] }
 0x1b2   :  { %v10360_v11 = vadd.f32 %v2010_v22, %v10112_v24  ;;  %v6942_v36 = vor.u32 %v8280_v3, %v6941_v33  ;;  %v8277_v24 = vld [vmem:[%s11824_s1 + $0x724] sm:$0xf]  ;;  %v2617_v5 = vsel %vm986_vm15, %v10349_v27, %v10416_v2  ;;  %v6983_v27 = vld [vmem:[%s11824_s1 + $0x788] sm:$0xf0]  ;;  %v6917_v33 = vld [vmem:[%s11824_s1 + $0x700] sm:$0xf] }
 0x1b3   :  { %v1984_v7 = vpop.f32.mrf.mxu0  ;;  %v6938_v21 = vor.u32 %v8277_v24, %v6935_v37  ;;  %v8289_v22 = vld [vmem:[%s11824_s1 + $0x784] sm:$0xf]  ;;  %v8274_v3 = vld [vmem:[%s11824_s1 + $0x704] sm:$0xf0] }
 0x1b4   :  { %2857 = vmatmul.bf16.gmra.mxu2 %v2613_v60  ;;  %3201 = vmatpush.bf16.msrb.mxu0 %v6942_v36  ;;  %v10445_v7 = vrot.slane %v6722_v1, 2  ;;  %v6918_v26 = vor.u32 %v8274_v3, %v6917_v33  ;;  %v8290_v24 = vld [vmem:[%s11824_s1 + $0x784] sm:$0xf0]  ;;  %v8268_v1 = vld [vmem:[#allocation2 + $0x1c] sm:$0xf0] }
 0x1b5   :  { %3258 = vmatpush.bf16.msrb.mxu2 %v6938_v21  ;;  %3287 = vmatpush.bf16.msrb.mxu3 %v6994_v13  ;;  %v6982_v37 = vor.u32 %v8290_v24, %v6981_v35  ;;  %v8337_v33 = vld [vmem:[%s11824_s1 + $0x8d4] sm:$0xf]  ;;  %v8265_v3 = vld [vmem:[#allocation2 + $0xc] sm:$0x8] }
 0x1b6   :  { %2801 = vmatmul.bf16.gmra.mxu0 %v2613_v60  ;;  %v2065_v31 = vpop.f32.mrf.mxu3  ;;  %v6986_v60 = vor.u32 %v8289_v22, %v6983_v27  ;;  %v2619_v21 = vsel %vm986_vm15, %v10357_v9, %v10445_v7  ;;  %v7223_v9 = vld [vmem:[%s11824_s1 + $0x8f8] sm:$0xf0]  ;;  %v8321_v27 = vld [vmem:[%s11824_s1 + $0x854] sm:$0xf] }
 0x1b7   :  { %v2066_v42 = vadd.f32 %v2065_v31, %v2037_v28  ;;  %v2012_v25 = vpop.f32.mrf.mxu1  ;;  %v2040_v47 = vpop.f32.mrf.mxu2  ;;  %v6922_v28 = vor.u32 %v8273_v40, %v6919_v48  ;;  %v8325_v31 = vld [vmem:[%s11824_s1 + $0x874] sm:$0xf]  ;;  %v7226_v44 = vor.u32 %v8341_v45, %v7223_v9  ;;  %v7141_v45 = vld [vmem:[%s11824_s1 + $0x850] sm:$0xf]  ;;  %v8322_v9 = vld [vmem:[%s11824_s1 + $0x854] sm:$0xf0] }
 0x1b8   :  { %3202 = vmatpush.bf16.msrb.mxu0 %v6934_v58  ;;  %v7158_v58 = vor.u32 %v8326_v56, %v7157_v57  ;;  %v6887_v35 = vld [vmem:[#allocation2 + $0x10] sm:$0xf0] }
 0x1b9   :  { %v10390_v29 = vadd.f32 %v2066_v42, %v10142_v20  ;;  %v8294_v20 = vld [vmem:[%s11824_s1 + $0x7a4] sm:$0xf0]  ;;  %3259 = vmatpush.bf16.msrb.mxu2 %v6930_v0  ;;  %3288 = vmatpush.bf16.msrb.mxu3 %v6986_v60  ;;  %v7162_v42 = vor.u32 %v8325_v31, %v7159_v38  ;;  %v7215_v0 = vld [vmem:[%s11824_s1 + $0x8e8] sm:$0xf0]  ;;  %v7143_v60 = vld [vmem:[%s11824_s1 + $0x858] sm:$0xf0]  ;;  %v6890_v38 = vor.u32 %v8265_v3, %v6887_v35 }
 0x1ba   :  { %2829 = vmatmul.bf16.gmra.mxu1 %v2615_v32  ;;  %v6998_v23 = vor.u32 %v8294_v20, %v6997_v54  ;;  %v7221_v54 = vld [vmem:[%s11824_s1 + $0x8f0] sm:$0xf]  ;;  %v8342_v20 = vld [vmem:[%s11824_s1 + $0x8f4] sm:$0xf0] }
 0x1bb   :  { %v1986_v34 = vpop.f32.mrf.mxu0  ;;  %2885 = vmatmul.bf16.gmra.mxu3 %v2615_v32  ;;  %v7222_v46 = vor.u32 %v8342_v20, %v7221_v54  ;;  %v7199_v20 = vld [vmem:[%s11824_s1 + $0x8c8] sm:$0xf0] }
 0x1bc   :  { %3230 = vmatpush.bf16.msrb.mxu1 %v6998_v23  ;;  %3203 = vmatpush.bf16.msrb.mxu0 %v6926_v14  ;;  %v8339_v23 = vld [vmem:[%s11824_s1 + $0x8e4] sm:$0xf]  ;;  %v7213_v14 = vld [vmem:[%s11824_s1 + $0x8e0] sm:$0xf] }
 0x1bd   :  { %3260 = vmatpush.bf16.msrb.mxu2 %v6922_v28  ;;  %3672 = vmatpush.bf16.msra.mxu3 %v7226_v44  ;;  %v7205_v44 = vld [vmem:[%s11824_s1 + $0x8d0] sm:$0xf] }
 0x1be   :  { %v2068_v6 = vpop.f32.mrf.mxu3 }
 0x1bf   :  { %v2014_v50 = vpop.f32.mrf.mxu1  ;;  %v2042_v49 = vpop.f32.mrf.mxu2  ;;  %v7218_v6 = vor.u32 %v8339_v23, %v7215_v0  ;;  %v6901_v23 = vld [vmem:[#allocation2 + $0x28] sm:$0xf]  ;;  %v8270_v0 = vld [vmem:[#allocation2 + $0x2c] sm:$0xf0] }
 0x1c0   :  { %3231 = vmatpush.bf16.msrb.mxu1 %v6990_v18  ;;  %3204 = vmatpush.bf16.msrb.mxu0 %v6918_v26  ;;  %v8266_v50 = vld [vmem:[#allocation2 + $0xc] sm:$0xf0]  ;;  %v6893_v49 = vld [vmem:[#allocation2 + $0x18] sm:$0xf]  ;;  %v6895_v26 = vld [vmem:[#allocation2 + $0x20] sm:$0xf0] }
 0x1c1   :  { %3644 = vmatpush.bf16.msra.mxu2 %v7162_v42  ;;  %3673 = vmatpush.bf16.msra.mxu3 %v7218_v6  ;;  %v6886_v40 = vor.u32 %v8266_v50, %v6885_v62  ;;  %v6894_v48 = vor.u32 %v8268_v1, %v6893_v49  ;;  %v8320_v50 = vld [vmem:[%s11824_s1 + $0x844] sm:$0xf0]  ;;  %v7197_v49 = vld [vmem:[%s11824_s1 + $0x8c0] sm:$0xf] }
 0x1c3   :  { %v1989_v16 = vpop.f32.mrf.mxu0 }
 0x1c4   :  { %2862 = vmatmul.bf16.gmra.mxu2 %v2617_v5  ;;  %3232 = vmatpush.bf16.msrb.mxu1 %v6982_v37  ;;  %v7149_v16 = vld [vmem:[%s11824_s1 + $0x860] sm:$0xf] }
 0x1c5   :  { %3588 = vmatpush.bf16.msra.mxu0 %v7158_v58  ;;  %v8335_v58 = vld [vmem:[%s11824_s1 + $0x8c4] sm:$0xf] }
 0x1c6   :  { %2806 = vmatmul.bf16.gmra.mxu0 %v2617_v5  ;;  %v2070_v36 = vpop.f32.mrf.mxu3  ;;  %v8324_v5 = vld [vmem:[%s11824_s1 + $0x864] sm:$0xf0] }
 0x1c7   :  { %v2017_v8 = vpop.f32.mrf.mxu1  ;;  %v2045_v53 = vpop.f32.mrf.mxu2  ;;  %v7150_v18 = vor.u32 %v8324_v5, %v7149_v16  ;;  %v8267_v36 = vld [vmem:[#allocation2 + $0x1c] sm:$0xf]  ;;  %v6902_v16 = vor.u32 %v8270_v0, %v6901_v23  ;;  %v8269_v5 = vld [vmem:[#allocation2 + $0x2c] sm:$0xf]  ;;  %v7117_v23 = vld [vmem:[%s11824_s1 + $0x820] sm:$0xf] }
 0x1c8   :  { %3616 = vmatpush.bf16.msra.mxu1 %v7222_v46  ;;  %v3015_v8 = vrot.slane %v6886_v40, 3  ;;  %v6898_v42 = vor.u32 %v8267_v36, %v6895_v26  ;;  %v8316_v0 = vld [vmem:[%s11824_s1 + $0x824] sm:$0xf0] }
 0x1c9   :  { %3589 = vmatpush.bf16.msra.mxu0 %v7150_v18  ;;  %v7127_v18 = vld [vmem:[%s11824_s1 + $0x838] sm:$0xf0] }
 0x1ca   :  { %2834 = vmatmul.bf16.gmra.mxu1 %v2619_v21  ;;  %v10566_v46 = vrot.slane %v6898_v42, 3  ;;  %v7119_v42 = vld [vmem:[%s11824_s1 + $0x828] sm:$0xf0] }
 0x1cb   :  { %v1991_v19 = vpop.f32.mrf.mxu0  ;;  %2890 = vmatmul.bf16.gmra.mxu3 %v2619_v21  ;;  %v10535_v21 = vrot.slane %v6894_v48, 3  ;;  %v8317_v48 = vld [vmem:[%s11824_s1 + $0x834] sm:$0xf] }
 0x1cd   :  { %v3017_v56 = vsel %vm1396_vm0, %v3015_v8, %v10535_v21 }
 0x1ce   :  { %v2073_v25 = vpop.f32.mrf.mxu3 }
 0x1cf   :  { %v2019_v32 = vpop.f32.mrf.mxu1  ;;  %v2047_v47 = vpop.f32.mrf.mxu2 }
 0x1d0   :  { %v2020_v34 = vadd.f32 %v2019_v32, %v1991_v19  ;;  %v7142_v32 = vor.u32 %v8322_v9, %v7141_v45 }
 0x1d2   :  { %v10475_v55 = vadd.f32 %v2020_v34, %v10227_v43  ;;  %v8323_v43 = vld [vmem:[%s11824_s1 + $0x864] sm:$0xf]  ;;  %3590 = vmatpush.bf16.msra.mxu0 %v7142_v32  ;;  %v7183_v32 = vld [vmem:[%s11824_s1 + $0x8a8] sm:$0xf0] }
 0x1d3   :  { %v1994_v51 = vpop.f32.mrf.mxu0  ;;  %v7154_v63 = vor.u32 %v8323_v43, %v7151_v59  ;;  %v8319_v34 = vld [vmem:[%s11824_s1 + $0x844] sm:$0xf]  ;;  %v7202_v43 = vor.u32 %v8335_v58, %v7199_v20  ;;  %v3018_v59 = vrot.slane %v6890_v38, 3 }
 0x1d4   :  { %2867 = vmatmul.bf16.gmra.mxu2 %v10416_v2 }
 0x1d5   :  { %3645 = vmatpush.bf16.msra.mxu2 %v7154_v63  ;;  %v3020_v62 = vsel %vm1396_vm0, %v3018_v59, %v10566_v46 }
 0x1d6   :  { %2811 = vmatmul.bf16.gmra.mxu0 %v10416_v2  ;;  %v2075_v4 = vpop.f32.mrf.mxu3 }
 0x1d7   :  { %v2076_v13 = vadd.f32 %v2075_v4, %v2047_v47  ;;  %v2022_v2 = vpop.f32.mrf.mxu1  ;;  %v2050_v39 = vpop.f32.mrf.mxu2  ;;  %v8338_v47 = vld [vmem:[%s11824_s1 + $0x8d4] sm:$0xf0] }
 0x1d8   :  { %v2023_v61 = vadd.f32 %v2022_v2, %v1994_v51  ;;  %v7135_v51 = vld [vmem:[%s11824_s1 + $0x848] sm:$0xf0]  ;;  %v7206_v54 = vor.u32 %v8338_v47, %v7205_v44  ;;  %v8331_v44 = vld [vmem:[%s11824_s1 + $0x8a4] sm:$0xf] }
 0x1d9   :  { %v10504_v15 = vadd.f32 %v2076_v13, %v10256_v52  ;;  %v8340_v52 = vld [vmem:[%s11824_s1 + $0x8e4] sm:$0xf0]  ;;  %v7133_v13 = vld [vmem:[%s11824_s1 + $0x840] sm:$0xf] }
 0x1da   :  { %v10519_v28 = vadd.f32 %v2023_v61, %v10271_v10  ;;  %2839 = vmatmul.bf16.gmra.mxu1 %v10445_v7  ;;  %v7214_v22 = vor.u32 %v8340_v52, %v7213_v14  ;;  %v7146_v10 = vor.u32 %v8321_v27, %v7143_v60  ;;  %v7134_v2 = vor.u32 %v8320_v50, %v7133_v13  ;;  %v6903_v14 = vld [vmem:[#allocation2 + $0x30] sm:$0xf0]  ;;  %v6911_v13 = vld [vmem:[#allocation2 + $0x40] sm:$0x70] }
 0x1db   :  { %v1996_v17 = vpop.f32.mrf.mxu0  ;;  %2895 = vmatmul.bf16.gmra.mxu3 %v10445_v7  ;;  %v7207_v7 = vld [vmem:[%s11824_s1 + $0x8d8] sm:$0xf0]  ;;  %v8333_v52 = vld [vmem:[%s11824_s1 + $0x8b4] sm:$0xf]  ;;  %v6906_v3 = vor.u32 %v8269_v5, %v6903_v14 }
 0x1dc   :  { %3617 = vmatpush.bf16.msra.mxu1 %v7214_v22  ;;  %v7210_v24 = vor.u32 %v8337_v33, %v7207_v7  ;;  %3646 = vmatpush.bf16.msra.mxu2 %v7146_v10  ;;  %v7130_v22 = vor.u32 %v8317_v48, %v7127_v18  ;;  %v10597_v33 = vrot.slane %v6902_v16, 3  ;;  %v7109_v48 = vld [vmem:[%s11824_s1 + $0x810] sm:$0xf]  ;;  %v8314_v18 = vld [vmem:[%s11824_s1 + $0x814] sm:$0xf0] }
 0x1dd   :  { %3591 = vmatpush.bf16.msra.mxu0 %v7134_v2  ;;  %v10605_v8 = vrot.slane %v6906_v3, 3  ;;  %v7175_v2 = vld [vmem:[%s11824_s1 + $0x898] sm:$0xf0]  ;;  %v8311_v3 = vld [vmem:[%s11824_s1 + $0x804] sm:$0xf] }
 0x1de   :  { %v2078_v37 = vpop.f32.mrf.mxu3  ;;  %3674 = vmatpush.bf16.msra.mxu3 %v7210_v24 }
 0x1df   :  { %v2079_v53 = vadd.f32 %v2078_v37, %v2050_v39  ;;  %v2024_v19 = vpop.f32.mrf.mxu1  ;;  %v2052_v31 = vpop.f32.mrf.mxu2  ;;  %v8336_v39 = vld [vmem:[%s11824_s1 + $0x8c4] sm:$0xf0]  ;;  %v3022_v37 = vsel %vm1396_vm0, %v10535_v21, %v10597_v33  ;;  %v8334_v21 = vld [vmem:[%s11824_s1 + $0x8b4] sm:$0xf0] }
 0x1e0   :  { %3618 = vmatpush.bf16.msra.mxu1 %v7206_v54  ;;  %v7198_v17 = vor.u32 %v8336_v39, %v7197_v49  ;;  %v7125_v19 = vld [vmem:[%s11824_s1 + $0x830] sm:$0xf] }
 0x1e1   :  { %v10547_v25 = vadd.f32 %v2079_v53, %v10299_v41  ;;  %v7138_v41 = vor.u32 %v8319_v34, %v7135_v51  ;;  %v7189_v31 = vld [vmem:[%s11824_s1 + $0x8b0] sm:$0xf]  ;;  %v7186_v34 = vor.u32 %v8331_v44, %v7183_v32 }
 0x1e2   :  { %3675 = vmatpush.bf16.msra.mxu3 %v7202_v43  ;;  %v7190_v45 = vor.u32 %v8334_v21, %v7189_v31  ;;  %v7165_v31 = vld [vmem:[%s11824_s1 + $0x880] sm:$0xf] }
 0x1e3   :  { %v2388_v57 = vpop.f32.mrf.mxu0  ;;  %3647 = vmatpush.bf16.msra.mxu2 %v7138_v41  ;;  %v3024_v41 = vsel %vm1396_vm0, %v10566_v46, %v10605_v8  ;;  %v7181_v46 = vld [vmem:[%s11824_s1 + $0x8a0] sm:$0xf] }
 0x1e4   :  { %3261 = vmatmul.bf16.vlgmr.msrb.gmra.mxu2 %v3017_v56  ;;  %3619 = vmatpush.bf16.msra.mxu1 %v7198_v17 }
 0x1e6   :  { %3205 = vmatmul.bf16.vlgmr.msrb.gmra.mxu0 %v3017_v56  ;;  %v2080_v63 = vpop.f32.mrf.mxu3  ;;  %v8272_v56 = vld [vmem:[#allocation2 + $0x3c] sm:$0x70] }
 0x1e7   :  { %v2416_v4 = vpop.f32.mrf.mxu1  ;;  %v2444_v6 = vpop.f32.mrf.mxu2  ;;  %3648 = vmatpush.bf16.msra.mxu2 %v7130_v22  ;;  %v8271_v63 = vld [vmem:[#allocation2 + $0x3c] sm:$0xf] }
 0x1e8   :  { %v2417_v1 = vadd.f32 %v2416_v4, %v2388_v57  ;;  %v6909_v57 = vld [vmem:[#allocation2 + $0x38] sm:$0xf]  ;;  %3620 = vmatpush.bf16.msra.mxu1 %v7190_v45  ;;  %v7118_v4 = vor.u32 %v8316_v0, %v7117_v23  ;;  %v6914_v17 = vor.u32 %v8271_v63, %v6911_v13  ;;  %v7349_v23 = vld [vmem:[%s11824_s1 + $0x970] sm:$0xf] }
 0x1e9   :  { %v6910_v59 = vor.u32 %v8272_v56, %v6909_v57  ;;  %v8366_v0 = vld [vmem:[%s11824_s1 + $0x974] sm:$0xf0] }
 0x1ea   :  { %v10583_v40 = vadd.f32 %v2417_v1, %v10335_v12  ;;  %3233 = vmatmul.bf16.vlgmr.msrb.gmra.mxu1 %v3020_v62  ;;  %v7191_v12 = vld [vmem:[%s11824_s1 + $0x8b8] sm:$0xf0]  ;;  %v8329_v1 = vld [vmem:[%s11824_s1 + $0x894] sm:$0xf] }
 0x1eb   :  { %v2390_v61 = vpop.f32.mrf.mxu0  ;;  %3289 = vmatmul.bf16.vlgmr.msrb.gmra.mxu3 %v3020_v62  ;;  %v7194_v27 = vor.u32 %v8333_v52, %v7191_v12  ;;  %v8313_v62 = vld [vmem:[%s11824_s1 + $0x814] sm:$0xf]  ;;  %v7178_v16 = vor.u32 %v8329_v1, %v7175_v2  ;;  %v7173_v52 = vld [vmem:[%s11824_s1 + $0x890] sm:$0xf] }
 0x1ed   :  { %3676 = vmatpush.bf16.msra.mxu3 %v7194_v27  ;;  %v7110_v27 = vor.u32 %v8314_v18, %v7109_v48  ;;  %v8364_v48 = vld [vmem:[%s11824_s1 + $0x964] sm:$0xf0]  ;;  %v7405_v18 = vld [vmem:[%s11824_s1 + $0x9e0] sm:$0xf] }
 0x1ee   :  { %v2472_v60 = vpop.f32.mrf.mxu3 }
 0x1ef   :  { %v2473_v10 = vadd.f32 %v2472_v60, %v2444_v6  ;;  %v2418_v7 = vpop.f32.mrf.mxu1  ;;  %v2446_v35 = vpop.f32.mrf.mxu2  ;;  %v7111_v6 = vld [vmem:[%s11824_s1 + $0x818] sm:$0xf0]  ;;  %v8330_v60 = vld [vmem:[%s11824_s1 + $0x894] sm:$0xf0] }
 0x1f0   :  { %v2419_v26 = vadd.f32 %v2418_v7, %v2390_v61  ;;  %v7114_v49 = vor.u32 %v8313_v62, %v7111_v6  ;;  %v10664_v61 = vrot.slane %v6910_v59, 3  ;;  %v7174_v7 = vor.u32 %v8330_v60, %v7173_v52  ;;  %v7343_v62 = vld [vmem:[%s11824_s1 + $0x968] sm:$0xf0]  ;;  %v8361_v60 = vld [vmem:[%s11824_s1 + $0x954] sm:$0xf] }
 0x1f1   :  { %v10600_v36 = vadd.f32 %v2473_v10, %v10352_v30  ;;  %v8318_v30 = vld [vmem:[%s11824_s1 + $0x834] sm:$0xf0]  ;;  %3677 = vmatpush.bf16.msra.mxu3 %v7186_v34  ;;  %v7103_v10 = vld [vmem:[%s11824_s1 + $0x808] sm:$0xf0]  ;;  %v7351_v34 = vld [vmem:[%s11824_s1 + $0x978] sm:$0xf0] }
 0x1f2   :  { %v10608_v53 = vadd.f32 %v2419_v26, %v10360_v11  ;;  %v7126_v38 = vor.u32 %v8318_v30, %v7125_v19  ;;  %v8315_v11 = vld [vmem:[%s11824_s1 + $0x824] sm:$0xf]  ;;  %v3026_v12 = vsel %vm1396_vm0, %v10597_v33, %v10664_v61  ;;  %v7167_v33 = vld [vmem:[%s11824_s1 + $0x888] sm:$0xf0]  ;;  %v7101_v19 = vld [vmem:[%s11824_s1 + $0x800] sm:$0xf] }
 0x1f3   :  { %v2393_v24 = vpop.f32.mrf.mxu0  ;;  %v7122_v9 = vor.u32 %v8315_v11, %v7119_v42  ;;  %v8327_v26 = vld [vmem:[%s11824_s1 + $0x884] sm:$0xf]  ;;  %v8312_v30 = vld [vmem:[%s11824_s1 + $0x804] sm:$0xf0] }
 0x1f4   :  { %3266 = vmatmul.bf16.gmra.mxu2 %v3022_v37  ;;  %3592 = vmatpush.bf16.msra.mxu0 %v7126_v38  ;;  %v10693_v24 = vrot.slane %v6914_v17, 3  ;;  %v7102_v21 = vor.u32 %v8312_v30, %v7101_v19  ;;  %v8328_v11 = vld [vmem:[%s11824_s1 + $0x884] sm:$0xf0]  ;;  %v7341_v17 = vld [vmem:[%s11824_s1 + $0x960] sm:$0xf] }
 0x1f5   :  { %3649 = vmatpush.bf16.msra.mxu2 %v7122_v9  ;;  %3678 = vmatpush.bf16.msra.mxu3 %v7178_v16  ;;  %v7166_v42 = vor.u32 %v8328_v11, %v7165_v31  ;;  %v7333_v31 = vld [vmem:[%s11824_s1 + $0x950] sm:$0xf] }
 0x1f6   :  { %3210 = vmatmul.bf16.gmra.mxu0 %v3022_v37  ;;  %v2474_v47 = vpop.f32.mrf.mxu3  ;;  %v7170_v37 = vor.u32 %v8327_v26, %v7167_v33  ;;  %v3028_v9 = vsel %vm1396_vm0, %v10605_v8, %v10693_v24  ;;  %v7415_v8 = vld [vmem:[%s11824_s1 + $0x9f8] sm:$0xf0]  ;;  %v7077_v33 = vld [vmem:[#allocation2 + $0x10] sm:$0xf] }
 0x1f7   :  { %v2475_v51 = vadd.f32 %v2474_v47, %v2446_v35  ;;  %v2421_v54 = vpop.f32.mrf.mxu1  ;;  %v2449_v58 = vpop.f32.mrf.mxu2  ;;  %v7106_v35 = vor.u32 %v8311_v3, %v7103_v10  ;;  %v8365_v47 = vld [vmem:[%s11824_s1 + $0x974] sm:$0xf]  ;;  %v7335_v3 = vld [vmem:[%s11824_s1 + $0x958] sm:$0xf0] }
 0x1f8   :  { %3593 = vmatpush.bf16.msra.mxu0 %v7118_v4  ;;  %v7354_v57 = vor.u32 %v8365_v47, %v7351_v34  ;;  %v7350_v4 = vor.u32 %v8366_v0, %v7349_v23  ;;  %v8377_v10 = vld [vmem:[%s11824_s1 + $0x9d4] sm:$0xf]  ;;  %v7325_v23 = vld [vmem:[%s11824_s1 + $0x940] sm:$0xf]  ;;  %v8360_v0 = vld [vmem:[%s11824_s1 + $0x944] sm:$0xf0] }
 0x1f9   :  { %v10638_v20 = vadd.f32 %v2475_v51, %v10390_v29  ;;  %v8332_v29 = vld [vmem:[%s11824_s1 + $0x8a4] sm:$0xf0]  ;;  %3650 = vmatpush.bf16.msra.mxu2 %v7114_v49  ;;  %3679 = vmatpush.bf16.msra.mxu3 %v7170_v37  ;;  %v8381_v51 = vld [vmem:[%s11824_s1 + $0x9f4] sm:$0xf]  ;;  %v7407_v49 = vld [vmem:[%s11824_s1 + $0x9e8] sm:$0xf0] }
 0x1fa   :  { %3238 = vmatmul.bf16.gmra.mxu1 %v3024_v41  ;;  %v7182_v50 = vor.u32 %v8332_v29, %v7181_v46  ;;  %v7418_v56 = vor.u32 %v8381_v51, %v7415_v8  ;;  %v7413_v46 = vld [vmem:[%s11824_s1 + $0x9f0] sm:$0xf]  ;;  %v8382_v29 = vld [vmem:[%s11824_s1 + $0x9f4] sm:$0xf0] }
 0x1fb   :  { %v2395_v43 = vpop.f32.mrf.mxu0  ;;  %3294 = vmatmul.bf16.gmra.mxu3 %v3024_v41  ;;  %v7414_v6 = vor.u32 %v8382_v29, %v7413_v46  ;;  %v7389_v46 = vld [vmem:[%s11824_s1 + $0x9c0] sm:$0xf]  ;;  %v7326_v29 = vor.u32 %v8360_v0, %v7325_v23  ;;  %v8310_v23 = vld [vmem:[#allocation2 + $0x34] sm:$0xf0] }
 0x1fc   :  { %3621 = vmatpush.bf16.msra.mxu1 %v7182_v50  ;;  %3594 = vmatpush.bf16.msra.mxu0 %v7110_v27  ;;  %v8379_v50 = vld [vmem:[%s11824_s1 + $0x9e4] sm:$0xf] }
 0x1fd   :  { %3651 = vmatpush.bf16.msra.mxu2 %v7106_v35  ;;  %4081 = vmatpush.bf16.msrb.mxu3 %v7418_v56  ;;  %v7410_v2 = vor.u32 %v8379_v50, %v7407_v49  ;;  %v8305_v56 = vld [vmem:[#allocation2 + $0x14] sm:$0xf]  ;;  %v7319_v49 = vld [vmem:[%s11824_s1 + $0x938] sm:$0xf0] }
 0x1fe   :  { %v2477_v39 = vpop.f32.mrf.mxu3  ;;  %v8357_v50 = vld [vmem:[%s11824_s1 + $0x934] sm:$0xf] }
 0x1ff   :  { %v2423_v5 = vpop.f32.mrf.mxu1  ;;  %v2451_v14 = vpop.f32.mrf.mxu2 }
 0x200   :  { %3622 = vmatpush.bf16.msra.mxu1 %v7174_v7  ;;  %3595 = vmatpush.bf16.msra.mxu0 %v7102_v21  ;;  %v7399_v7 = vld [vmem:[%s11824_s1 + $0x9d8] sm:$0xf0]  ;;  %v7397_v21 = vld [vmem:[%s11824_s1 + $0x9d0] sm:$0xf] }
 0x201   :  { %4053 = vmatpush.bf16.msrb.mxu2 %v7354_v57  ;;  %4082 = vmatpush.bf16.msrb.mxu3 %v7410_v2  ;;  %v7402_v35 = vor.u32 %v8377_v10, %v7399_v7  ;;  %v7391_v57 = vld [vmem:[%s11824_s1 + $0x9c8] sm:$0xf0]  ;;  %v7322_v2 = vor.u32 %v8357_v50, %v7319_v49  ;;  %v8358_v7 = vld [vmem:[%s11824_s1 + $0x934] sm:$0xf0] }
 0x203   :  { %v2398_v22 = vpop.f32.mrf.mxu0 }
 0x204   :  { %3271 = vmatmul.bf16.gmra.mxu2 %v3026_v12  ;;  %3623 = vmatpush.bf16.msra.mxu1 %v7166_v42  ;;  %v7342_v22 = vor.u32 %v8364_v48, %v7341_v17 }
 0x205   :  { %3997 = vmatpush.bf16.msrb.mxu0 %v7350_v4  ;;  %4083 = vmatpush.bf16.msrb.mxu3 %v7402_v35 }
 0x206   :  { %3215 = vmatmul.bf16.gmra.mxu0 %v3026_v12  ;;  %v2479_v38 = vpop.f32.mrf.mxu3 }
 0x207   :  { %v2426_v45 = vpop.f32.mrf.mxu1  ;;  %v2454_v44 = vpop.f32.mrf.mxu2  ;;  %v8362_v38 = vld [vmem:[%s11824_s1 + $0x954] sm:$0xf0] }
 0x208   :  { %4025 = vmatpush.bf16.msrb.mxu1 %v7414_v6  ;;  %v7334_v45 = vor.u32 %v8362_v38, %v7333_v31  ;;  %v8359_v44 = vld [vmem:[%s11824_s1 + $0x944] sm:$0xf] }
 0x209   :  { %3998 = vmatpush.bf16.msrb.mxu0 %v7342_v22 }
 0x20a   :  { %3243 = vmatmul.bf16.gmra.mxu1 %v3028_v9 }
 0x20b   :  { %v2400_v32 = vpop.f32.mrf.mxu0  ;;  %3299 = vmatmul.bf16.gmra.mxu3 %v3028_v9  ;;  %v8378_v9 = vld [vmem:[%s11824_s1 + $0x9d4] sm:$0xf0] }
 0x20c   :  { %v7398_v34 = vor.u32 %v8378_v9, %v7397_v21 }
 0x20d   :  { %3999 = vmatpush.bf16.msrb.mxu0 %v7334_v45 }
 0x20e   :  { %v2482_v54 = vpop.f32.mrf.mxu3 }
 0x20f   :  { %v2428_v41 = vpop.f32.mrf.mxu1  ;;  %v2456_v58 = vpop.f32.mrf.mxu2  ;;  %v7079_v54 = vld [vmem:[#allocation2 + $0x18] sm:$0xf0] }
 0x210   :  { %v2429_v43 = vadd.f32 %v2428_v41, %v2400_v32  ;;  %v7327_v32 = vld [vmem:[%s11824_s1 + $0x948] sm:$0xf0] }
 0x211   :  { %v7330_v51 = vor.u32 %v8359_v44, %v7327_v32  ;;  %4000 = vmatpush.bf16.msrb.mxu0 %v7326_v29 }
 0x212   :  { %v10723_v63 = vadd.f32 %v2429_v43, %v10475_v55  ;;  %v8363_v55 = vld [vmem:[%s11824_s1 + $0x964] sm:$0xf] }
 0x213   :  { %v2403_v59 = vpop.f32.mrf.mxu0  ;;  %v7346_v13 = vor.u32 %v8363_v55, %v7343_v62  ;;  %v8376_v55 = vld [vmem:[%s11824_s1 + $0x9c4] sm:$0xf0] }
 0x214   :  { %3276 = vmatmul.bf16.gmra.mxu2 %v10664_v61  ;;  %v7390_v6 = vor.u32 %v8376_v55, %v7389_v46  ;;  %v7301_v55 = vld [vmem:[%s11824_s1 + $0x910] sm:$0xf] }
 0x215   :  { %4054 = vmatpush.bf16.msrb.mxu2 %v7346_v13 }
 0x216   :  { %3220 = vmatmul.bf16.gmra.mxu0 %v10664_v61  ;;  %v2484_v1 = vpop.f32.mrf.mxu3 }
 0x217   :  { %v2485_v39 = vadd.f32 %v2484_v1, %v2456_v58  ;;  %v2431_v16 = vpop.f32.mrf.mxu1  ;;  %v2459_v5 = vpop.f32.mrf.mxu2  ;;  %v7082_v58 = vor.u32 %v8305_v56, %v7079_v54  ;;  %v8373_v1 = vld [vmem:[%s11824_s1 + $0x9b4] sm:$0xf] }
 0x218   :  { %v2432_v14 = vadd.f32 %v2431_v16, %v2403_v59 }
 0x219   :  { %v10752_v61 = vadd.f32 %v2485_v39, %v10504_v15  ;;  %v8380_v15 = vld [vmem:[%s11824_s1 + $0x9e4] sm:$0xf0] }
 0x21a   :  { %v10767_v12 = vadd.f32 %v2432_v14, %v10519_v28  ;;  %3248 = vmatmul.bf16.gmra.mxu1 %v10693_v24  ;;  %v7406_v27 = vor.u32 %v8380_v15, %v7405_v18  ;;  %v7338_v28 = vor.u32 %v8361_v60, %v7335_v3  ;;  %v8308_v14 = vld [vmem:[#allocation2 + $0x24] sm:$0xf0]  ;;  %v8307_v60 = vld [vmem:[#allocation2 + $0x24] sm:$0xf]  ;;  %v7087_v3 = vld [vmem:[#allocation2 + $0x28] sm:$0xf0] }
 0x21b   :  { %v2405_v52 = vpop.f32.mrf.mxu0  ;;  %3304 = vmatmul.bf16.gmra.mxu3 %v10693_v24  ;;  %v8306_v24 = vld [vmem:[#allocation2 + $0x14] sm:$0xf0] }
 0x21c   :  { %4026 = vmatpush.bf16.msrb.mxu1 %v7406_v27  ;;  %4055 = vmatpush.bf16.msrb.mxu2 %v7338_v28  ;;  %v7078_v42 = vor.u32 %v8306_v24, %v7077_v33  ;;  %v7317_v28 = vld [vmem:[%s11824_s1 + $0x930] sm:$0xf]  ;;  %v7311_v33 = vld [vmem:[%s11824_s1 + $0x928] sm:$0xf0] }
 0x21d   :  { %v7318_v35 = vor.u32 %v8358_v7, %v7317_v28  ;;  %v8368_v28 = vld [vmem:[%s11824_s1 + $0x984] sm:$0xf0] }
 0x21e   :  { %v2487_v26 = vpop.f32.mrf.mxu3 }
 0x21f   :  { %v2488_v37 = vadd.f32 %v2487_v26, %v2459_v5  ;;  %v2433_v19 = vpop.f32.mrf.mxu1  ;;  %v2461_v30 = vpop.f32.mrf.mxu2  ;;  %v7085_v5 = vld [vmem:[#allocation2 + $0x20] sm:$0xf]  ;;  %v8374_v26 = vld [vmem:[%s11824_s1 + $0x9b4] sm:$0xf0]  ;;  %4001 = vmatpush.bf16.msrb.mxu0 %v7318_v35 }
 0x220   :  { %4027 = vmatpush.bf16.msrb.mxu1 %v7398_v34  ;;  %4056 = vmatpush.bf16.msrb.mxu2 %v7330_v51  ;;  %v7086_v15 = vor.u32 %v8308_v14, %v7085_v5  ;;  %v8371_v19 = vld [vmem:[%s11824_s1 + $0x9a4] sm:$0xf]  ;;  %v7375_v30 = vld [vmem:[%s11824_s1 + $0x9a8] sm:$0xf0]  ;;  %v8356_v34 = vld [vmem:[%s11824_s1 + $0x924] sm:$0xf0] }
 0x221   :  { %v10793_v11 = vadd.f32 %v2488_v37, %v10547_v25  ;;  %v8375_v25 = vld [vmem:[%s11824_s1 + $0x9c4] sm:$0xf]  ;;  %v7378_v38 = vor.u32 %v8371_v19, %v7375_v30  ;;  %v7373_v51 = vld [vmem:[%s11824_s1 + $0x9a0] sm:$0xf]  ;;  %v7359_v14 = vld [vmem:[%s11824_s1 + $0x988] sm:$0xf0] }
 0x222   :  { %v7394_v8 = vor.u32 %v8375_v25, %v7391_v57  ;;  %v8353_v57 = vld [vmem:[%s11824_s1 + $0x914] sm:$0xf]  ;;  %v8367_v5 = vld [vmem:[%s11824_s1 + $0x984] sm:$0xf] }
 0x223   :  { %v2797_v47 = vpop.f32.mrf.mxu0  ;;  %v8421_v30 = vld [vmem:[%s11824_s1 + $0xaf4] sm:$0xf] }
 0x224   :  { %3652 = vmatmul.bf16.vlgmr.msra.gmra.mxu2 %v7078_v42  ;;  %4084 = vmatpush.bf16.msrb.mxu3 %v7394_v8  ;;  %v7303_v8 = vld [vmem:[%s11824_s1 + $0x918] sm:$0xf0] }
 0x225   :  { %4028 = vmatpush.bf16.msrb.mxu1 %v7390_v6  ;;  %4057 = vmatpush.bf16.msrb.mxu2 %v7322_v2  ;;  %v7306_v54 = vor.u32 %v8353_v57, %v7303_v8  ;;  %v7365_v6 = vld [vmem:[%s11824_s1 + $0x990] sm:$0xf]  ;;  %v8351_v2 = vld [vmem:[%s11824_s1 + $0x904] sm:$0xf]  ;;  %v8406_v57 = vld [vmem:[%s11824_s1 + $0xa74] sm:$0xf0] }
 0x226   :  { %3596 = vmatmul.bf16.vlgmr.msra.gmra.mxu0 %v7078_v42  ;;  %v2489_v41 = vpop.f32.mrf.mxu3  ;;  %v7090_v42 = vor.u32 %v8307_v60, %v7087_v3  ;;  %v7605_v8 = vld [vmem:[%s11824_s1 + $0xaf0] sm:$0xf] }
 0x227   :  { %v2825_v43 = vpop.f32.mrf.mxu1  ;;  %v2853_v59 = vpop.f32.mrf.mxu2  ;;  %v8369_v41 = vld [vmem:[%s11824_s1 + $0x994] sm:$0xf] }
 0x228   :  { %v2826_v4 = vadd.f32 %v2825_v43, %v2797_v47  ;;  %v7309_v47 = vld [vmem:[%s11824_s1 + $0x920] sm:$0xf] }
 0x229   :  { %v7310_v25 = vor.u32 %v8356_v34, %v7309_v47 }
 0x22a   :  { %v10823_v13 = vadd.f32 %v2826_v4, %v10583_v40  ;;  %3624 = vmatmul.bf16.vlgmr.msra.gmra.mxu1 %v7082_v58  ;;  %v7383_v40 = vld [vmem:[%s11824_s1 + $0x9b8] sm:$0xf0] }
 0x22b   :  { %v2799_v62 = vpop.f32.mrf.mxu0  ;;  %3680 = vmatmul.bf16.vlgmr.msra.gmra.mxu3 %v7082_v58  ;;  %v7386_v39 = vor.u32 %v8373_v1, %v7383_v40  ;;  %v7367_v58 = vld [vmem:[%s11824_s1 + $0x998] sm:$0xf0]  ;;  %4002 = vmatpush.bf16.msrb.mxu0 %v7310_v25  ;;  %v8370_v1 = vld [vmem:[%s11824_s1 + $0x994] sm:$0xf0]  ;;  %v7295_v40 = vld [vmem:[%s11824_s1 + $0x908] sm:$0xf0] }
 0x22c   :  { %v7370_v0 = vor.u32 %v8369_v41, %v7367_v58  ;;  %v7535_v41 = vld [vmem:[%s11824_s1 + $0xa68] sm:$0xf0] }
 0x22d   :  { %4085 = vmatpush.bf16.msrb.mxu3 %v7386_v39  ;;  %v7366_v39 = vor.u32 %v8370_v1, %v7365_v6  ;;  %v7269_v6 = vld [vmem:[#allocation2 + $0x20] sm:$0xf] }
 0x22e   :  { %v2881_v16 = vpop.f32.mrf.mxu3 }
 0x22f   :  { %v2882_v17 = vadd.f32 %v2881_v16, %v2853_v59  ;;  %v2827_v48 = vpop.f32.mrf.mxu1  ;;  %v2855_v18 = vpop.f32.mrf.mxu2  ;;  %v7093_v59 = vld [vmem:[#allocation2 + $0x30] sm:$0xf]  ;;  %v7298_v16 = vor.u32 %v8351_v2, %v7295_v40 }
 0x230   :  { %v2828_v22 = vadd.f32 %v2827_v48, %v2799_v62  ;;  %v7094_v29 = vor.u32 %v8310_v23, %v7093_v59  ;;  %v8354_v62 = vld [vmem:[%s11824_s1 + $0x914] sm:$0xf0]  ;;  %v7095_v48 = vld [vmem:[#allocation2 + $0x38] sm:$0xf0]  ;;  %v8419_v59 = vld [vmem:[%s11824_s1 + $0xae4] sm:$0xf] }
 0x231   :  { %v10838_v52 = vadd.f32 %v2882_v17, %v10600_v36  ;;  %v7381_v36 = vld [vmem:[%s11824_s1 + $0x9b0] sm:$0xf]  ;;  %4086 = vmatpush.bf16.msrb.mxu3 %v7378_v38  ;;  %v7302_v49 = vor.u32 %v8354_v62, %v7301_v55  ;;  %v8309_v17 = vld [vmem:[#allocation2 + $0x34] sm:$0xf]  ;;  %v7599_v23 = vld [vmem:[%s11824_s1 + $0xae8] sm:$0xf0] }
 0x232   :  { %v10841_v10 = vadd.f32 %v2828_v22, %v10608_v53  ;;  %v8355_v53 = vld [vmem:[%s11824_s1 + $0x924] sm:$0xf]  ;;  %v7382_v24 = vor.u32 %v8374_v26, %v7381_v36  ;;  %v7293_v22 = vld [vmem:[%s11824_s1 + $0x900] sm:$0xf]  ;;  %v7098_v7 = vor.u32 %v8309_v17, %v7095_v48  ;;  %v8344_v62 = vld [vmem:[#allocation2 + $0x14] sm:$0xf0] }
 0x233   :  { %v2802_v27 = vpop.f32.mrf.mxu0  ;;  %v7314_v37 = vor.u32 %v8355_v53, %v7311_v33  ;;  %4003 = vmatpush.bf16.msrb.mxu0 %v7302_v49  ;;  %v3357_v33 = vld [vmem:[#allocation2 + $0x40] sm:$0xff] }
 0x234   :  { %3657 = vmatmul.bf16.gmra.mxu2 %v7086_v15  ;;  %4029 = vmatpush.bf16.msrb.mxu1 %v7382_v24  ;;  %v7357_v27 = vld [vmem:[%s11824_s1 + $0x980] sm:$0xf]  ;;  %v8405_v24 = vld [vmem:[%s11824_s1 + $0xa74] sm:$0xf]  ;;  %v3410_v38 = vunpack.c.l.b16 %v3357_v33  ;;  %v3411_v25 = vunpack.c.h.b16 %v3357_v33 }
 0x235   :  { %4058 = vmatpush.bf16.msrb.mxu2 %v7314_v37  ;;  %4087 = vmatpush.bf16.msrb.mxu3 %v7370_v0  ;;  %v7358_v36 = vor.u32 %v8368_v28, %v7357_v27  ;;  %v7543_v37 = vld [vmem:[%s11824_s1 + $0xa78] sm:$0xf0]  ;;  %v8401_v27 = vld [vmem:[%s11824_s1 + $0xa54] sm:$0xf] }
 0x236   :  { %3601 = vmatmul.bf16.gmra.mxu0 %v7086_v15  ;;  %v2883_v31 = vpop.f32.mrf.mxu3  ;;  %v8352_v15 = vld [vmem:[%s11824_s1 + $0x904] sm:$0xf0]  ;;  %v7546_v19 = vor.u32 %v8405_v24, %v7543_v37  ;;  %v3418_v47 = vpack.c.b16 %v3410_v38, %v3410_v38  ;;  %v3419_v55 = vpack.c.b16 %v3411_v25, %v3411_v25  ;;  %v8343_v28 = vld [vmem:[#allocation2 + $0x14] sm:$0xe]  ;;  %v8399_v25 = vld [vmem:[%s11824_s1 + $0xa44] sm:$0xf] }
 0x237   :  { %v2884_v21 = vadd.f32 %v2883_v31, %v2855_v18  ;;  %v2830_v45 = vpop.f32.mrf.mxu1  ;;  %v2858_v9 = vpop.f32.mrf.mxu2  ;;  %v7362_v18 = vor.u32 %v8367_v5, %v7359_v14  ;;  %v7294_v3 = vor.u32 %v8352_v15, %v7293_v22  ;;  %v7607_v31 = vld [vmem:[%s11824_s1 + $0xaf8] sm:$0xf0]  ;;  %v7597_v5 = vld [vmem:[%s11824_s1 + $0xae0] sm:$0xf] }
 0x239   :  { %v10868_v44 = vadd.f32 %v2884_v21, %v10638_v20  ;;  %v8372_v20 = vld [vmem:[%s11824_s1 + $0x9a4] sm:$0xf0]  ;;  %4059 = vmatpush.bf16.msrb.mxu2 %v7306_v54  ;;  %4088 = vmatpush.bf16.msrb.mxu3 %v7362_v18  ;;  %v7610_v21 = vor.u32 %v8421_v30, %v7607_v31  ;;  %v8422_v54 = vld [vmem:[%s11824_s1 + $0xaf4] sm:$0xf0] }
 0x23a   :  { %3629 = vmatmul.bf16.gmra.mxu1 %v7090_v42  ;;  %v7374_v56 = vor.u32 %v8372_v20, %v7373_v51  ;;  %4004 = vmatpush.bf16.msrb.mxu0 %v7294_v3  ;;  %v7541_v20 = vld [vmem:[%s11824_s1 + $0xa70] sm:$0xf]  ;;  %v7606_v58 = vor.u32 %v8422_v54, %v7605_v8  ;;  %v8417_v3 = vld [vmem:[%s11824_s1 + $0xad4] sm:$0xf]  ;;  %v8415_v54 = vld [vmem:[%s11824_s1 + $0xac4] sm:$0xf] }
 0x23b   :  { %v2804_v32 = vpop.f32.mrf.mxu0  ;;  %3685 = vmatmul.bf16.gmra.mxu3 %v7090_v42 }
 0x23c   :  { %4030 = vmatpush.bf16.msrb.mxu1 %v7374_v56  ;;  %v7542_v56 = vor.u32 %v8406_v57, %v7541_v20  ;;  %v7519_v20 = vld [vmem:[%s11824_s1 + $0xa48] sm:$0xf0] }
 0x23d   :  { %4060 = vmatpush.bf16.msrb.mxu2 %v7298_v16  ;;  %4490 = vmatpush.bf16.msra.mxu3 %v7610_v21  ;;  %v8404_v16 = vld [vmem:[%s11824_s1 + $0xa64] sm:$0xf0] }
 0x23e   :  { %v2886_v43 = vpop.f32.mrf.mxu3  ;;  %4406 = vmatpush.bf16.msra.mxu0 %v7542_v56 }
 0x23f   :  { %v2832_v46 = vpop.f32.mrf.mxu1  ;;  %v2860_v4 = vpop.f32.mrf.mxu2 }
 0x240   :  { %4031 = vmatpush.bf16.msrb.mxu1 %v7366_v39  ;;  %v7261_v46 = vld [vmem:[#allocation2 + $0x10] sm:$0xe]  ;;  %v7602_v4 = vor.u32 %v8419_v59, %v7599_v23  ;;  %v7533_v39 = vld [vmem:[%s11824_s1 + $0xa60] sm:$0xf] }
 0x241   :  { %4462 = vmatpush.bf16.msra.mxu2 %v7546_v19  ;;  %v7262_v17 = vor.u32 %v8344_v62, %v7261_v46  ;;  %v7534_v18 = vor.u32 %v8404_v16, %v7533_v39  ;;  %v7277_v23 = vld [vmem:[#allocation2 + $0x30] sm:$0xf]  ;;  %v8400_v62 = vld [vmem:[%s11824_s1 + $0xa44] sm:$0xf0]  ;;  %v8347_v16 = vld [vmem:[#allocation2 + $0x34] sm:$0xf] }
 0x242   :  { %4491 = vmatpush.bf16.msra.mxu3 %v7602_v4 }
 0x243   :  { %v2807_v50 = vpop.f32.mrf.mxu0  ;;  %4407 = vmatpush.bf16.msra.mxu0 %v7534_v18  ;;  %v3815_v24 = vrot.slane %v7262_v17, 1  ;;  %v7511_v18 = vld [vmem:[%s11824_s1 + $0xa38] sm:$0xf0] }
 0x244   :  { %3662 = vmatmul.bf16.gmra.mxu2 %v7094_v29  ;;  %4032 = vmatpush.bf16.msrb.mxu1 %v7358_v36  ;;  %v8346_v50 = vld [vmem:[#allocation2 + $0x24] sm:$0xf0]  ;;  %v7263_v36 = vld [vmem:[#allocation2 + $0x18] sm:$0xf0] }
 0x245   :  { %v7270_v48 = vor.u32 %v8346_v50, %v7269_v6  ;;  %v7266_v38 = vor.u32 %v8343_v28, %v7263_v36  ;;  %v7581_v6 = vld [vmem:[%s11824_s1 + $0xac0] sm:$0xf] }
 0x246   :  { %3606 = vmatmul.bf16.gmra.mxu0 %v7094_v29  ;;  %v2888_v60 = vpop.f32.mrf.mxu3 }
 0x247   :  { %v2835_v35 = vpop.f32.mrf.mxu1  ;;  %v2863_v26 = vpop.f32.mrf.mxu2  ;;  %v7527_v60 = vld [vmem:[%s11824_s1 + $0xa58] sm:$0xf0]  ;;  %v10999_v37 = vrot.slane %v7270_v48, 1  ;;  %v8397_v48 = vld [vmem:[%s11824_s1 + $0xa34] sm:$0xf] }
 0x248   :  { %4434 = vmatpush.bf16.msra.mxu1 %v7606_v58  ;;  %v8345_v35 = vld [vmem:[#allocation2 + $0x24] sm:$0xf]  ;;  %v7271_v26 = vld [vmem:[#allocation2 + $0x28] sm:$0xf0]  ;;  %v3818_v58 = vrot.slane %v7266_v38, 1 }
 0x249   :  { %v7274_v21 = vor.u32 %v8345_v35, %v7271_v26  ;;  %v3817_v8 = vsel %vm576_vm14, %v3815_v24, %v10999_v37 }
 0x24a   :  { %3634 = vmatmul.bf16.gmra.mxu1 %v7098_v7 }
 0x24b   :  { %v2809_v53 = vpop.f32.mrf.mxu0  ;;  %3690 = vmatmul.bf16.gmra.mxu3 %v7098_v7  ;;  %v7530_v7 = vor.u32 %v8401_v27, %v7527_v60 }
 0x24e   :  { %v2891_v42 = vpop.f32.mrf.mxu3 }
 0x24f   :  { %v2837_v45 = vpop.f32.mrf.mxu1  ;;  %v2865_v9 = vpop.f32.mrf.mxu2  ;;  %v7525_v42 = vld [vmem:[%s11824_s1 + $0xa50] sm:$0xf] }
 0x250   :  { %v2838_v32 = vadd.f32 %v2837_v45, %v2809_v53  ;;  %v8402_v45 = vld [vmem:[%s11824_s1 + $0xa54] sm:$0xf0] }
 0x252   :  { %v10943_v51 = vadd.f32 %v2838_v32, %v10723_v63  ;;  %v8403_v63 = vld [vmem:[%s11824_s1 + $0xa64] sm:$0xf] }
 0x253   :  { %v2812_v34 = vpop.f32.mrf.mxu0  ;;  %v7538_v43 = vor.u32 %v8403_v63, %v7535_v41  ;;  %v7583_v63 = vld [vmem:[%s11824_s1 + $0xac8] sm:$0xf0] }
 0x254   :  { %3667 = vmatmul.bf16.gmra.mxu2 %v3418_v47  ;;  %v7586_v41 = vor.u32 %v8415_v54, %v7583_v63 }
 0x255   :  { %4463 = vmatpush.bf16.msra.mxu2 %v7538_v43  ;;  %v11030_v43 = vrot.slane %v7274_v21, 1  ;;  %v7503_v21 = vld [vmem:[%s11824_s1 + $0xa28] sm:$0xf0] }
 0x256   :  { %3611 = vmatmul.bf16.gmra.mxu0 %v3418_v47  ;;  %v2893_v0 = vpop.f32.mrf.mxu3  ;;  %v7526_v47 = vor.u32 %v8402_v45, %v7525_v42 }
 0x257   :  { %v2894_v29 = vadd.f32 %v2893_v0, %v2865_v9  ;;  %v2840_v49 = vpop.f32.mrf.mxu1  ;;  %v2868_v1 = vpop.f32.mrf.mxu2  ;;  %v7589_v9 = vld [vmem:[%s11824_s1 + $0xad0] sm:$0xf]  ;;  %v8348_v0 = vld [vmem:[#allocation2 + $0x34] sm:$0xf0]  ;;  %v3820_v4 = vsel %vm576_vm14, %v3818_v58, %v11030_v43 }
 0x258   :  { %v2841_v40 = vadd.f32 %v2840_v49, %v2812_v34  ;;  %v8418_v34 = vld [vmem:[%s11824_s1 + $0xad4] sm:$0xf0]  ;;  %4408 = vmatpush.bf16.msra.mxu0 %v7526_v47  ;;  %v7278_v39 = vor.u32 %v8348_v0, %v7277_v23  ;;  %v7567_v47 = vld [vmem:[%s11824_s1 + $0xaa8] sm:$0xf0]  ;;  %v7501_v23 = vld [vmem:[%s11824_s1 + $0xa20] sm:$0xf] }
 0x259   :  { %v10970_v2 = vadd.f32 %v2894_v29, %v10752_v61  ;;  %v8420_v61 = vld [vmem:[%s11824_s1 + $0xae4] sm:$0xf0]  ;;  %4464 = vmatpush.bf16.msra.mxu2 %v7530_v7  ;;  %v7590_v56 = vor.u32 %v8418_v34, %v7589_v9  ;;  %v8411_v9 = vld [vmem:[%s11824_s1 + $0xaa4] sm:$0xf] }
 0x25a   :  { %v10985_v22 = vadd.f32 %v2841_v40, %v10767_v12  ;;  %3639 = vmatmul.bf16.gmra.mxu1 %v3419_v55  ;;  %v7598_v15 = vor.u32 %v8420_v61, %v7597_v5  ;;  %v7591_v12 = vld [vmem:[%s11824_s1 + $0xad8] sm:$0xf0]  ;;  %v8413_v61 = vld [vmem:[%s11824_s1 + $0xab4] sm:$0xf]  ;;  %v8396_v0 = vld [vmem:[%s11824_s1 + $0xa24] sm:$0xf0] }
 0x25b   :  { %v2814_v14 = vpop.f32.mrf.mxu0  ;;  %3695 = vmatmul.bf16.gmra.mxu3 %v3419_v55  ;;  %v7594_v53 = vor.u32 %v8417_v3, %v7591_v12  ;;  %v7517_v55 = vld [vmem:[%s11824_s1 + $0xa40] sm:$0xf]  ;;  %v7279_v5 = vld [vmem:[#allocation2 + $0x38] sm:$0xf0]  ;;  %v11061_v3 = vrot.slane %v7278_v39, 1 }
 0x25c   :  { %4435 = vmatpush.bf16.msra.mxu1 %v7598_v15  ;;  %v7518_v49 = vor.u32 %v8400_v62, %v7517_v55  ;;  %v7514_v15 = vor.u32 %v8397_v48, %v7511_v18  ;;  %v7282_v28 = vor.u32 %v8347_v16, %v7279_v5  ;;  %v7287_v55 = vld [vmem:[#allocation2 + $0x48] sm:$0x10]  ;;  %v7493_v48 = vld [vmem:[%s11824_s1 + $0xa10] sm:$0xf]  ;;  %v8394_v18 = vld [vmem:[%s11824_s1 + $0xa14] sm:$0xf0] }
 0x25d   :  { %4492 = vmatpush.bf16.msra.mxu3 %v7594_v53 }
 0x25e   :  { %v2896_v33 = vpop.f32.mrf.mxu3  ;;  %4409 = vmatpush.bf16.msra.mxu0 %v7518_v49  ;;  %v11069_v24 = vrot.slane %v7282_v28, 1  ;;  %v7559_v49 = vld [vmem:[%s11824_s1 + $0xa98] sm:$0xf0]  ;;  %v8391_v28 = vld [vmem:[%s11824_s1 + $0xa04] sm:$0xf] }
 0x25f   :  { %v2897_v19 = vadd.f32 %v2896_v33, %v2868_v1  ;;  %v2842_v30 = vpop.f32.mrf.mxu1  ;;  %v2870_v31 = vpop.f32.mrf.mxu2  ;;  %v8416_v1 = vld [vmem:[%s11824_s1 + $0xac4] sm:$0xf0]  ;;  %v3822_v33 = vsel %vm576_vm14, %v10999_v37, %v11061_v3  ;;  %v8414_v37 = vld [vmem:[%s11824_s1 + $0xab4] sm:$0xf0] }
 0x260   :  { %4436 = vmatpush.bf16.msra.mxu1 %v7590_v56  ;;  %v7582_v14 = vor.u32 %v8416_v1, %v7581_v6  ;;  %v7509_v30 = vld [vmem:[%s11824_s1 + $0xa30] sm:$0xf] }
 0x261   :  { %v11011_v32 = vadd.f32 %v2897_v19, %v10793_v11  ;;  %v7522_v11 = vor.u32 %v8399_v25, %v7519_v20  ;;  %4493 = vmatpush.bf16.msra.mxu3 %v7586_v41  ;;  %v7573_v31 = vld [vmem:[%s11824_s1 + $0xab0] sm:$0xf]  ;;  %v7570_v25 = vor.u32 %v8411_v9, %v7567_v47 }
 0x262   :  { %v7574_v42 = vor.u32 %v8414_v37, %v7573_v31  ;;  %v7549_v31 = vld [vmem:[%s11824_s1 + $0xa80] sm:$0xf] }
 0x263   :  { %v3206_v57 = vpop.f32.mrf.mxu0  ;;  %4465 = vmatpush.bf16.msra.mxu2 %v7522_v11  ;;  %v3824_v11 = vsel %vm576_vm14, %v11030_v43, %v11069_v24  ;;  %v7565_v43 = vld [vmem:[%s11824_s1 + $0xaa0] sm:$0xf] }
 0x264   :  { %4061 = vmatmul.bf16.vlgmr.msrb.gmra.mxu2 %v3817_v8  ;;  %4437 = vmatpush.bf16.msra.mxu1 %v7582_v14 }
 0x266   :  { %4005 = vmatmul.bf16.vlgmr.msrb.gmra.mxu0 %v3817_v8  ;;  %v2898_v59 = vpop.f32.mrf.mxu3  ;;  %v8350_v8 = vld [vmem:[#allocation2 + $0x44] sm:$0x10] }
 0x267   :  { %v3234_v46 = vpop.f32.mrf.mxu1  ;;  %v3262_v29 = vpop.f32.mrf.mxu2  ;;  %4466 = vmatpush.bf16.msra.mxu2 %v7514_v15  ;;  %v8349_v59 = vld [vmem:[#allocation2 + $0x44] sm:$0xf] }
 0x268   :  { %v3235_v50 = vadd.f32 %v3234_v46, %v3206_v57  ;;  %v7285_v57 = vld [vmem:[#allocation2 + $0x40] sm:$0xf]  ;;  %4438 = vmatpush.bf16.msra.mxu1 %v7574_v42  ;;  %v7502_v46 = vor.u32 %v8396_v0, %v7501_v23  ;;  %v7290_v14 = vor.u32 %v8349_v59, %v7287_v55  ;;  %v7733_v23 = vld [vmem:[%s11824_s1 + $0xb70] sm:$0xf]  ;;  %v8446_v0 = vld [vmem:[%s11824_s1 + $0xb74] sm:$0xf0] }
 0x269   :  { %v7286_v58 = vor.u32 %v8350_v8, %v7285_v57  ;;  %v8461_v57 = vld [vmem:[%s11824_s1 + $0xbf4] sm:$0xf] }
 0x26a   :  { %v11047_v17 = vadd.f32 %v3235_v50, %v10823_v13  ;;  %4033 = vmatmul.bf16.vlgmr.msrb.gmra.mxu1 %v3820_v4  ;;  %v7575_v13 = vld [vmem:[%s11824_s1 + $0xab8] sm:$0xf0]  ;;  %v8409_v50 = vld [vmem:[%s11824_s1 + $0xa94] sm:$0xf] }
 0x26b   :  { %v3208_v40 = vpop.f32.mrf.mxu0  ;;  %4089 = vmatmul.bf16.vlgmr.msrb.gmra.mxu3 %v3820_v4  ;;  %v7578_v27 = vor.u32 %v8413_v61, %v7575_v13  ;;  %v8393_v4 = vld [vmem:[%s11824_s1 + $0xa14] sm:$0xf]  ;;  %v7562_v39 = vor.u32 %v8409_v50, %v7559_v49  ;;  %v7557_v61 = vld [vmem:[%s11824_s1 + $0xa90] sm:$0xf] }
 0x26c   :  { %v7453_v49 = vld [vmem:[#allocation2 + $0x10] sm:$0xc] }
 0x26d   :  { %4494 = vmatpush.bf16.msra.mxu3 %v7578_v27  ;;  %v7494_v27 = vor.u32 %v8394_v18, %v7493_v48 }
 0x26e   :  { %v3290_v60 = vpop.f32.mrf.mxu3 }
 0x26f   :  { %v3291_v7 = vadd.f32 %v3290_v60, %v3262_v29  ;;  %v3236_v12 = vpop.f32.mrf.mxu1  ;;  %v3264_v36 = vpop.f32.mrf.mxu2  ;;  %v7495_v29 = vld [vmem:[%s11824_s1 + $0xa18] sm:$0xf0]  ;;  %v8410_v60 = vld [vmem:[%s11824_s1 + $0xa94] sm:$0xf0] }
 0x270   :  { %v3237_v26 = vadd.f32 %v3236_v12, %v3208_v40  ;;  %v7498_v6 = vor.u32 %v8393_v4, %v7495_v29  ;;  %v11128_v40 = vrot.slane %v7286_v58, 1  ;;  %v7558_v12 = vor.u32 %v8410_v60, %v7557_v61  ;;  %v7727_v4 = vld [vmem:[%s11824_s1 + $0xb68] sm:$0xf0] }
 0x271   :  { %v11064_v35 = vadd.f32 %v3291_v7, %v10838_v52  ;;  %v8398_v52 = vld [vmem:[%s11824_s1 + $0xa34] sm:$0xf0]  ;;  %4495 = vmatpush.bf16.msra.mxu3 %v7570_v25  ;;  %v7487_v7 = vld [vmem:[%s11824_s1 + $0xa08] sm:$0xf0]  ;;  %v7735_v25 = vld [vmem:[%s11824_s1 + $0xb78] sm:$0xf0] }
 0x272   :  { %v11072_v19 = vadd.f32 %v3237_v26, %v10841_v10  ;;  %v7510_v38 = vor.u32 %v8398_v52, %v7509_v30  ;;  %v8395_v10 = vld [vmem:[%s11824_s1 + $0xa24] sm:$0xf]  ;;  %v3826_v13 = vsel %vm576_vm14, %v11061_v3, %v11128_v40  ;;  %v7551_v3 = vld [vmem:[%s11824_s1 + $0xa88] sm:$0xf0]  ;;  %v7485_v30 = vld [vmem:[%s11824_s1 + $0xa00] sm:$0xf] }
 0x273   :  { %v3211_v53 = vpop.f32.mrf.mxu0  ;;  %v7506_v45 = vor.u32 %v8395_v10, %v7503_v21  ;;  %v8407_v26 = vld [vmem:[%s11824_s1 + $0xa84] sm:$0xf]  ;;  %v8392_v52 = vld [vmem:[%s11824_s1 + $0xa04] sm:$0xf0] }
 0x274   :  { %4066 = vmatmul.bf16.gmra.mxu2 %v3822_v33  ;;  %4410 = vmatpush.bf16.msra.mxu0 %v7510_v38  ;;  %v11157_v53 = vrot.slane %v7290_v14, 1  ;;  %v7486_v37 = vor.u32 %v8392_v52, %v7485_v30  ;;  %v8408_v10 = vld [vmem:[%s11824_s1 + $0xa84] sm:$0xf0]  ;;  %v8457_v30 = vld [vmem:[%s11824_s1 + $0xbd4] sm:$0xf] }
 0x275   :  { %4467 = vmatpush.bf16.msra.mxu2 %v7506_v45  ;;  %4496 = vmatpush.bf16.msra.mxu3 %v7562_v39  ;;  %v7550_v21 = vor.u32 %v8408_v10, %v7549_v31  ;;  %v8386_v14 = vld [vmem:[#allocation2 + $0x24] sm:$0xf0]  ;;  %v8383_v52 = vld [vmem:[#allocation2 + $0x14] sm:$0xc]  ;;  %v7455_v31 = vld [vmem:[#allocation2 + $0x18] sm:$0xf0] }
 0x276   :  { %4010 = vmatmul.bf16.gmra.mxu0 %v3822_v33  ;;  %v3292_v34 = vpop.f32.mrf.mxu3  ;;  %v7554_v33 = vor.u32 %v8407_v26, %v7551_v3  ;;  %v3828_v45 = vsel %vm576_vm14, %v11069_v24, %v11157_v53  ;;  %v7799_v24 = vld [vmem:[%s11824_s1 + $0xbf8] sm:$0xf0]  ;;  %v8441_v3 = vld [vmem:[%s11824_s1 + $0xb54] sm:$0xf] }
 0x277   :  { %v3293_v20 = vadd.f32 %v3292_v34, %v3264_v36  ;;  %v3239_v56 = vpop.f32.mrf.mxu1  ;;  %v3267_v54 = vpop.f32.mrf.mxu2  ;;  %v7490_v36 = vor.u32 %v8391_v28, %v7487_v7  ;;  %v8445_v34 = vld [vmem:[%s11824_s1 + $0xb74] sm:$0xf]  ;;  %v7802_v8 = vor.u32 %v8461_v57, %v7799_v24  ;;  %v7717_v57 = vld [vmem:[%s11824_s1 + $0xb50] sm:$0xf]  ;;  %v8442_v24 = vld [vmem:[%s11824_s1 + $0xb54] sm:$0xf0] }
 0x278   :  { %4411 = vmatpush.bf16.msra.mxu0 %v7502_v46  ;;  %v7734_v46 = vor.u32 %v8446_v0, %v7733_v23 }
 0x279   :  { %v11102_v63 = vadd.f32 %v3293_v20, %v10868_v44  ;;  %v8412_v44 = vld [vmem:[%s11824_s1 + $0xaa4] sm:$0xf0]  ;;  %4468 = vmatpush.bf16.msra.mxu2 %v7498_v6  ;;  %4497 = vmatpush.bf16.msra.mxu3 %v7554_v33  ;;  %v7738_v20 = vor.u32 %v8445_v34, %v7735_v25  ;;  %v7791_v6 = vld [vmem:[%s11824_s1 + $0xbe8] sm:$0xf0]  ;;  %v7719_v33 = vld [vmem:[%s11824_s1 + $0xb58] sm:$0xf0]  ;;  %v7458_v25 = vor.u32 %v8383_v52, %v7455_v31 }
 0x27a   :  { %4038 = vmatmul.bf16.gmra.mxu1 %v3824_v11  ;;  %v7566_v62 = vor.u32 %v8412_v44, %v7565_v43  ;;  %v7797_v43 = vld [vmem:[%s11824_s1 + $0xbf0] sm:$0xf]  ;;  %v8462_v44 = vld [vmem:[%s11824_s1 + $0xbf4] sm:$0xf0] }
 0x27b   :  { %v3213_v41 = vpop.f32.mrf.mxu0  ;;  %4094 = vmatmul.bf16.gmra.mxu3 %v3824_v11  ;;  %v7798_v29 = vor.u32 %v8462_v44, %v7797_v43  ;;  %v7775_v44 = vld [vmem:[%s11824_s1 + $0xbc8] sm:$0xf0] }
 0x27c   :  { %4439 = vmatpush.bf16.msra.mxu1 %v7566_v62  ;;  %4412 = vmatpush.bf16.msra.mxu0 %v7494_v27  ;;  %v8459_v62 = vld [vmem:[%s11824_s1 + $0xbe4] sm:$0xf]  ;;  %v7789_v27 = vld [vmem:[%s11824_s1 + $0xbe0] sm:$0xf] }
 0x27d   :  { %4469 = vmatpush.bf16.msra.mxu2 %v7490_v36  ;;  %4899 = vmatpush.bf16.msrb.mxu3 %v7802_v8  ;;  %v7781_v8 = vld [vmem:[%s11824_s1 + $0xbd0] sm:$0xf] }
 0x27e   :  { %v3295_v1 = vpop.f32.mrf.mxu3 }
 0x27f   :  { %v3241_v16 = vpop.f32.mrf.mxu1  ;;  %v3269_v5 = vpop.f32.mrf.mxu2  ;;  %v7794_v1 = vor.u32 %v8459_v62, %v7791_v6  ;;  %v7469_v62 = vld [vmem:[#allocation2 + $0x30] sm:$0xf]  ;;  %v8388_v6 = vld [vmem:[#allocation2 + $0x34] sm:$0xf0] }
 0x280   :  { %4440 = vmatpush.bf16.msra.mxu1 %v7558_v12  ;;  %4413 = vmatpush.bf16.msra.mxu0 %v7486_v37  ;;  %v8384_v16 = vld [vmem:[#allocation2 + $0x14] sm:$0xf0]  ;;  %v7461_v5 = vld [vmem:[#allocation2 + $0x20] sm:$0xf]  ;;  %v7463_v37 = vld [vmem:[#allocation2 + $0x28] sm:$0xf0] }
 0x281   :  { %4871 = vmatpush.bf16.msrb.mxu2 %v7738_v20  ;;  %4900 = vmatpush.bf16.msrb.mxu3 %v7794_v1  ;;  %v7454_v28 = vor.u32 %v8384_v16, %v7453_v49  ;;  %v7462_v7 = vor.u32 %v8386_v14, %v7461_v5  ;;  %v8440_v16 = vld [vmem:[%s11824_s1 + $0xb44] sm:$0xf0]  ;;  %v7773_v5 = vld [vmem:[%s11824_s1 + $0xbc0] sm:$0xf] }
 0x283   :  { %v3216_v15 = vpop.f32.mrf.mxu0 }
 0x284   :  { %4071 = vmatmul.bf16.gmra.mxu2 %v3826_v13  ;;  %4441 = vmatpush.bf16.msra.mxu1 %v7550_v21  ;;  %v7725_v15 = vld [vmem:[%s11824_s1 + $0xb60] sm:$0xf] }
 0x285   :  { %4815 = vmatpush.bf16.msrb.mxu0 %v7734_v46  ;;  %v8455_v46 = vld [vmem:[%s11824_s1 + $0xbc4] sm:$0xf] }
 0x286   :  { %4015 = vmatmul.bf16.gmra.mxu0 %v3826_v13  ;;  %v3297_v38 = vpop.f32.mrf.mxu3  ;;  %v8444_v13 = vld [vmem:[%s11824_s1 + $0xb64] sm:$0xf0] }
 0x287   :  { %v3244_v42 = vpop.f32.mrf.mxu1  ;;  %v3272_v9 = vpop.f32.mrf.mxu2  ;;  %v7726_v12 = vor.u32 %v8444_v13, %v7725_v15  ;;  %v8385_v38 = vld [vmem:[#allocation2 + $0x24] sm:$0xf]  ;;  %v7470_v15 = vor.u32 %v8388_v6, %v7469_v62  ;;  %v8387_v13 = vld [vmem:[#allocation2 + $0x34] sm:$0xf]  ;;  %v7693_v62 = vld [vmem:[%s11824_s1 + $0xb20] sm:$0xf] }
 0x288   :  { %4843 = vmatpush.bf16.msrb.mxu1 %v7798_v29  ;;  %v4224_v42 = vrot.slane %v7454_v28, 2  ;;  %v7466_v20 = vor.u32 %v8385_v38, %v7463_v37  ;;  %v8436_v6 = vld [vmem:[%s11824_s1 + $0xb24] sm:$0xf0] }
 0x289   :  { %4816 = vmatpush.bf16.msrb.mxu0 %v7726_v12  ;;  %v7703_v12 = vld [vmem:[%s11824_s1 + $0xb38] sm:$0xf0] }
 0x28a   :  { %4043 = vmatmul.bf16.gmra.mxu1 %v3828_v45  ;;  %v11278_v29 = vrot.slane %v7466_v20, 2  ;;  %v7695_v20 = vld [vmem:[%s11824_s1 + $0xb28] sm:$0xf0] }
 0x28b   :  { %v3218_v47 = vpop.f32.mrf.mxu0  ;;  %4099 = vmatmul.bf16.gmra.mxu3 %v3828_v45  ;;  %v11247_v45 = vrot.slane %v7462_v7, 2  ;;  %v8437_v7 = vld [vmem:[%s11824_s1 + $0xb34] sm:$0xf] }
 0x28d   :  { %v4226_v0 = vsel %vm986_vm15, %v4224_v42, %v11247_v45 }
 0x28e   :  { %v3300_v56 = vpop.f32.mrf.mxu3 }
 0x28f   :  { %v3246_v11 = vpop.f32.mrf.mxu1  ;;  %v3274_v54 = vpop.f32.mrf.mxu2 }
 0x290   :  { %v3247_v41 = vadd.f32 %v3246_v11, %v3218_v47  ;;  %v7718_v11 = vor.u32 %v8442_v24, %v7717_v57 }
 0x292   :  { %v11187_v59 = vadd.f32 %v3247_v41, %v10943_v51  ;;  %v8443_v51 = vld [vmem:[%s11824_s1 + $0xb64] sm:$0xf]  ;;  %4817 = vmatpush.bf16.msrb.mxu0 %v7718_v11  ;;  %v7759_v11 = vld [vmem:[%s11824_s1 + $0xba8] sm:$0xf0] }
 0x293   :  { %v3221_v58 = vpop.f32.mrf.mxu0  ;;  %v7730_v55 = vor.u32 %v8443_v51, %v7727_v4  ;;  %v8439_v41 = vld [vmem:[%s11824_s1 + $0xb44] sm:$0xf]  ;;  %v7778_v51 = vor.u32 %v8455_v46, %v7775_v44  ;;  %v4227_v4 = vrot.slane %v7458_v25, 2 }
 0x294   :  { %4076 = vmatmul.bf16.gmra.mxu2 %v11128_v40 }
 0x295   :  { %4872 = vmatpush.bf16.msrb.mxu2 %v7730_v55  ;;  %v4229_v49 = vsel %vm986_vm15, %v4227_v4, %v11278_v29 }
 0x296   :  { %4020 = vmatmul.bf16.gmra.mxu0 %v11128_v40  ;;  %v3302_v50 = vpop.f32.mrf.mxu3 }
 0x297   :  { %v3303_v39 = vadd.f32 %v3302_v50, %v3274_v54  ;;  %v3249_v40 = vpop.f32.mrf.mxu1  ;;  %v3277_v48 = vpop.f32.mrf.mxu2  ;;  %v8458_v54 = vld [vmem:[%s11824_s1 + $0xbd4] sm:$0xf0] }
 0x298   :  { %v3250_v61 = vadd.f32 %v3249_v40, %v3221_v58  ;;  %v7711_v58 = vld [vmem:[%s11824_s1 + $0xb48] sm:$0xf0]  ;;  %v7782_v43 = vor.u32 %v8458_v54, %v7781_v8  ;;  %v8451_v8 = vld [vmem:[%s11824_s1 + $0xba4] sm:$0xf] }
 0x299   :  { %v11216_v18 = vadd.f32 %v3303_v39, %v10970_v2  ;;  %v8460_v2 = vld [vmem:[%s11824_s1 + $0xbe4] sm:$0xf0]  ;;  %v7709_v39 = vld [vmem:[%s11824_s1 + $0xb40] sm:$0xf] }
 0x29a   :  { %v11231_v36 = vadd.f32 %v3250_v61, %v10985_v22  ;;  %4048 = vmatmul.bf16.gmra.mxu1 %v11157_v53  ;;  %v7790_v26 = vor.u32 %v8460_v2, %v7789_v27  ;;  %v7722_v22 = vor.u32 %v8441_v3, %v7719_v33  ;;  %v7710_v40 = vor.u32 %v8440_v16, %v7709_v39  ;;  %v7471_v27 = vld [vmem:[#allocation2 + $0x38] sm:$0xf0]  ;;  %v8453_v2 = vld [vmem:[%s11824_s1 + $0xbb4] sm:$0xf]  ;;  %v7479_v39 = vld [vmem:[#allocation2 + $0x48] sm:$0x30] }
 0x29b   :  { %v3223_v60 = vpop.f32.mrf.mxu0  ;;  %4104 = vmatmul.bf16.gmra.mxu3 %v11157_v53  ;;  %v7783_v53 = vld [vmem:[%s11824_s1 + $0xbd8] sm:$0xf0]  ;;  %v7474_v52 = vor.u32 %v8387_v13, %v7471_v27 }
 0x29c   :  { %4844 = vmatpush.bf16.msrb.mxu1 %v7790_v26  ;;  %v7786_v10 = vor.u32 %v8457_v30, %v7783_v53  ;;  %4873 = vmatpush.bf16.msrb.mxu2 %v7722_v22  ;;  %v7706_v26 = vor.u32 %v8437_v7, %v7703_v12  ;;  %v11309_v30 = vrot.slane %v7470_v15, 2  ;;  %v7685_v7 = vld [vmem:[%s11824_s1 + $0xb10] sm:$0xf]  ;;  %v8434_v12 = vld [vmem:[%s11824_s1 + $0xb14] sm:$0xf0] }
 0x29d   :  { %4818 = vmatpush.bf16.msrb.mxu0 %v7710_v40  ;;  %v11317_v42 = vrot.slane %v7474_v52, 2  ;;  %v7751_v40 = vld [vmem:[%s11824_s1 + $0xb98] sm:$0xf0]  ;;  %v8431_v52 = vld [vmem:[%s11824_s1 + $0xb04] sm:$0xf] }
 0x29e   :  { %v3305_v21 = vpop.f32.mrf.mxu3  ;;  %4901 = vmatpush.bf16.msrb.mxu3 %v7786_v10 }
 0x29f   :  { %v3306_v9 = vadd.f32 %v3305_v21, %v3277_v48  ;;  %v3251_v47 = vpop.f32.mrf.mxu1  ;;  %v3279_v34 = vpop.f32.mrf.mxu2  ;;  %v8456_v48 = vld [vmem:[%s11824_s1 + $0xbc4] sm:$0xf0]  ;;  %v4231_v21 = vsel %vm986_vm15, %v11247_v45, %v11309_v30  ;;  %v8454_v45 = vld [vmem:[%s11824_s1 + $0xbb4] sm:$0xf0] }
 0x2a0   :  { %4845 = vmatpush.bf16.msrb.mxu1 %v7782_v43  ;;  %v7774_v60 = vor.u32 %v8456_v48, %v7773_v5  ;;  %v7701_v47 = vld [vmem:[%s11824_s1 + $0xb30] sm:$0xf] }
 0x2a1   :  { %v11259_v56 = vadd.f32 %v3306_v9, %v11011_v32  ;;  %v7714_v32 = vor.u32 %v8439_v41, %v7711_v58  ;;  %v7765_v34 = vld [vmem:[%s11824_s1 + $0xbb0] sm:$0xf]  ;;  %v7762_v41 = vor.u32 %v8451_v8, %v7759_v11 }
 0x2a2   :  { %4902 = vmatpush.bf16.msrb.mxu3 %v7778_v51  ;;  %v7766_v57 = vor.u32 %v8454_v45, %v7765_v34  ;;  %v7741_v34 = vld [vmem:[%s11824_s1 + $0xb80] sm:$0xf] }
 0x2a3   :  { %v3597_v23 = vpop.f32.mrf.mxu0  ;;  %4874 = vmatpush.bf16.msrb.mxu2 %v7714_v32  ;;  %v4233_v32 = vsel %vm986_vm15, %v11278_v29, %v11317_v42  ;;  %v7757_v29 = vld [vmem:[%s11824_s1 + $0xba0] sm:$0xf] }
 0x2a4   :  { %4470 = vmatmul.bf16.vlgmr.msra.gmra.mxu2 %v4226_v0  ;;  %4846 = vmatpush.bf16.msrb.mxu1 %v7774_v60 }
 0x2a6   :  { %4414 = vmatmul.bf16.vlgmr.msra.gmra.mxu0 %v4226_v0  ;;  %v3307_v55 = vpop.f32.mrf.mxu3  ;;  %v8390_v0 = vld [vmem:[#allocation2 + $0x44] sm:$0x30] }
 0x2a7   :  { %v3625_v50 = vpop.f32.mrf.mxu1  ;;  %v3653_v1 = vpop.f32.mrf.mxu2  ;;  %4875 = vmatpush.bf16.msrb.mxu2 %v7706_v26  ;;  %v8389_v55 = vld [vmem:[#allocation2 + $0x44] sm:$0xf] }
 0x2a8   :  { %v3626_v14 = vadd.f32 %v3625_v50, %v3597_v23  ;;  %v7477_v23 = vld [vmem:[#allocation2 + $0x40] sm:$0xf]  ;;  %4847 = vmatpush.bf16.msrb.mxu1 %v7766_v57  ;;  %v7694_v50 = vor.u32 %v8436_v6, %v7693_v62  ;;  %v7482_v60 = vor.u32 %v8389_v55, %v7479_v39  ;;  %v7917_v62 = vld [vmem:[%s11824_s1 + $0xc70] sm:$0xf]  ;;  %v8484_v6 = vld [vmem:[%s11824_s1 + $0xc74] sm:$0xf0] }
 0x2a9   :  { %v7478_v4 = vor.u32 %v8390_v0, %v7477_v23  ;;  %v8499_v23 = vld [vmem:[%s11824_s1 + $0xcf4] sm:$0xf] }
 0x2aa   :  { %v11295_v28 = vadd.f32 %v3626_v14, %v11047_v17  ;;  %4442 = vmatmul.bf16.vlgmr.msra.gmra.mxu1 %v4229_v49  ;;  %v7767_v17 = vld [vmem:[%s11824_s1 + $0xbb8] sm:$0xf0]  ;;  %v8449_v14 = vld [vmem:[%s11824_s1 + $0xb94] sm:$0xf] }
 0x2ab   :  { %v3599_v61 = vpop.f32.mrf.mxu0  ;;  %4498 = vmatmul.bf16.vlgmr.msra.gmra.mxu3 %v4229_v49  ;;  %v7770_v3 = vor.u32 %v8453_v2, %v7767_v17  ;;  %v8433_v49 = vld [vmem:[%s11824_s1 + $0xb14] sm:$0xf]  ;;  %v7754_v15 = vor.u32 %v8449_v14, %v7751_v40  ;;  %v7749_v2 = vld [vmem:[%s11824_s1 + $0xb90] sm:$0xf] }
 0x2ac   :  { %v7645_v40 = vld [vmem:[#allocation2 + $0x10] sm:$0x8] }
 0x2ad   :  { %4903 = vmatpush.bf16.msrb.mxu3 %v7770_v3  ;;  %v7686_v3 = vor.u32 %v8434_v12, %v7685_v7 }
 0x2ae   :  { %v3681_v33 = vpop.f32.mrf.mxu3 }
 0x2af   :  { %v3682_v22 = vadd.f32 %v3681_v33, %v3653_v1  ;;  %v3627_v53 = vpop.f32.mrf.mxu1  ;;  %v3655_v31 = vpop.f32.mrf.mxu2  ;;  %v7687_v1 = vld [vmem:[%s11824_s1 + $0xb18] sm:$0xf0]  ;;  %v8450_v33 = vld [vmem:[%s11824_s1 + $0xb94] sm:$0xf0] }
 0x2b0   :  { %v3628_v37 = vadd.f32 %v3627_v53, %v3599_v61  ;;  %v7690_v5 = vor.u32 %v8433_v49, %v7687_v1  ;;  %v11376_v61 = vrot.slane %v7478_v4, 2  ;;  %v7750_v53 = vor.u32 %v8450_v33, %v7749_v2  ;;  %v7911_v49 = vld [vmem:[%s11824_s1 + $0xc68] sm:$0xf0] }
 0x2b1   :  { %v11312_v38 = vadd.f32 %v3682_v22, %v11064_v35  ;;  %v8438_v35 = vld [vmem:[%s11824_s1 + $0xb34] sm:$0xf0]  ;;  %4904 = vmatpush.bf16.msrb.mxu3 %v7762_v41  ;;  %v7679_v22 = vld [vmem:[%s11824_s1 + $0xb08] sm:$0xf0]  ;;  %v7919_v41 = vld [vmem:[%s11824_s1 + $0xc78] sm:$0xf0] }
 0x2b2   :  { %v11320_v9 = vadd.f32 %v3628_v37, %v11072_v19  ;;  %v7702_v25 = vor.u32 %v8438_v35, %v7701_v47  ;;  %v8435_v19 = vld [vmem:[%s11824_s1 + $0xb24] sm:$0xf]  ;;  %v4235_v17 = vsel %vm986_vm15, %v11309_v30, %v11376_v61  ;;  %v7743_v30 = vld [vmem:[%s11824_s1 + $0xb88] sm:$0xf0]  ;;  %v7677_v47 = vld [vmem:[%s11824_s1 + $0xb00] sm:$0xf] }
 0x2b3   :  { %v3602_v10 = vpop.f32.mrf.mxu0  ;;  %v7698_v24 = vor.u32 %v8435_v19, %v7695_v20  ;;  %v8447_v37 = vld [vmem:[%s11824_s1 + $0xb84] sm:$0xf]  ;;  %v8432_v35 = vld [vmem:[%s11824_s1 + $0xb04] sm:$0xf0] }
 0x2b4   :  { %4475 = vmatmul.bf16.gmra.mxu2 %v4231_v21  ;;  %4819 = vmatpush.bf16.msrb.mxu0 %v7702_v25  ;;  %v11405_v10 = vrot.slane %v7482_v60, 2  ;;  %v7678_v45 = vor.u32 %v8432_v35, %v7677_v47  ;;  %v8448_v19 = vld [vmem:[%s11824_s1 + $0xb84] sm:$0xf0]  ;;  %v8495_v47 = vld [vmem:[%s11824_s1 + $0xcd4] sm:$0xf] }
 0x2b5   :  { %4876 = vmatpush.bf16.msrb.mxu2 %v7698_v24  ;;  %4905 = vmatpush.bf16.msrb.mxu3 %v7754_v15  ;;  %v7742_v20 = vor.u32 %v8448_v19, %v7741_v34  ;;  %v8426_v60 = vld [vmem:[#allocation2 + $0x24] sm:$0xf0]  ;;  %v8423_v35 = vld [vmem:[#allocation2 + $0x14] sm:$0x8]  ;;  %v7647_v34 = vld [vmem:[#allocation2 + $0x18] sm:$0xf0] }
 0x2b6   :  { %4419 = vmatmul.bf16.gmra.mxu0 %v4231_v21  ;;  %v3683_v54 = vpop.f32.mrf.mxu3  ;;  %v7746_v21 = vor.u32 %v8447_v37, %v7743_v30  ;;  %v4237_v24 = vsel %vm986_vm15, %v11317_v42, %v11405_v10  ;;  %v7983_v42 = vld [vmem:[%s11824_s1 + $0xcf8] sm:$0xf0]  ;;  %v8479_v30 = vld [vmem:[%s11824_s1 + $0xc54] sm:$0xf] }
 0x2b7   :  { %v3684_v58 = vadd.f32 %v3683_v54, %v3655_v31  ;;  %v3630_v43 = vpop.f32.mrf.mxu1  ;;  %v3658_v46 = vpop.f32.mrf.mxu2  ;;  %v7682_v31 = vor.u32 %v8431_v52, %v7679_v22  ;;  %v8483_v54 = vld [vmem:[%s11824_s1 + $0xc74] sm:$0xf]  ;;  %v7986_v0 = vor.u32 %v8499_v23, %v7983_v42  ;;  %v7901_v23 = vld [vmem:[%s11824_s1 + $0xc50] sm:$0xf]  ;;  %v8480_v42 = vld [vmem:[%s11824_s1 + $0xc54] sm:$0xf0] }
 0x2b8   :  { %4820 = vmatpush.bf16.msrb.mxu0 %v7694_v50  ;;  %v7918_v50 = vor.u32 %v8484_v6, %v7917_v62 }
 0x2b9   :  { %v11350_v44 = vadd.f32 %v3684_v58, %v11102_v63  ;;  %v8452_v63 = vld [vmem:[%s11824_s1 + $0xba4] sm:$0xf0]  ;;  %4877 = vmatpush.bf16.msrb.mxu2 %v7690_v5  ;;  %4906 = vmatpush.bf16.msrb.mxu3 %v7746_v21  ;;  %v7922_v58 = vor.u32 %v8483_v54, %v7919_v41  ;;  %v7975_v5 = vld [vmem:[%s11824_s1 + $0xce8] sm:$0xf0]  ;;  %v7903_v21 = vld [vmem:[%s11824_s1 + $0xc58] sm:$0xf0]  ;;  %v7650_v41 = vor.u32 %v8423_v35, %v7647_v34 }
 0x2ba   :  { %4447 = vmatmul.bf16.gmra.mxu1 %v4233_v32  ;;  %v7758_v16 = vor.u32 %v8452_v63, %v7757_v29  ;;  %v7981_v29 = vld [vmem:[%s11824_s1 + $0xcf0] sm:$0xf]  ;;  %v8500_v63 = vld [vmem:[%s11824_s1 + $0xcf4] sm:$0xf0] }
 0x2bb   :  { %v3604_v51 = vpop.f32.mrf.mxu0  ;;  %4503 = vmatmul.bf16.gmra.mxu3 %v4233_v32  ;;  %v7982_v1 = vor.u32 %v8500_v63, %v7981_v29  ;;  %v7959_v63 = vld [vmem:[%s11824_s1 + $0xcc8] sm:$0xf0] }
 0x2bc   :  { %4848 = vmatpush.bf16.msrb.mxu1 %v7758_v16  ;;  %4821 = vmatpush.bf16.msrb.mxu0 %v7686_v3  ;;  %v8497_v16 = vld [vmem:[%s11824_s1 + $0xce4] sm:$0xf]  ;;  %v7973_v3 = vld [vmem:[%s11824_s1 + $0xce0] sm:$0xf] }
 0x2bd   :  { %4878 = vmatpush.bf16.msrb.mxu2 %v7682_v31  ;;  %5290 = vmatpush.bf16.msra.mxu3 %v7986_v0  ;;  %v7965_v0 = vld [vmem:[%s11824_s1 + $0xcd0] sm:$0xf] }
 0x2be   :  { %v3686_v48 = vpop.f32.mrf.mxu3 }
 0x2bf   :  { %v3632_v13 = vpop.f32.mrf.mxu1  ;;  %v3660_v27 = vpop.f32.mrf.mxu2  ;;  %v7978_v48 = vor.u32 %v8497_v16, %v7975_v5  ;;  %v7661_v16 = vld [vmem:[#allocation2 + $0x30] sm:$0xf]  ;;  %v8428_v5 = vld [vmem:[#allocation2 + $0x34] sm:$0xf0] }
 0x2c0   :  { %4849 = vmatpush.bf16.msrb.mxu1 %v7750_v53  ;;  %4822 = vmatpush.bf16.msrb.mxu0 %v7678_v45  ;;  %v8424_v13 = vld [vmem:[#allocation2 + $0x14] sm:$0xf0]  ;;  %v7653_v27 = vld [vmem:[#allocation2 + $0x20] sm:$0xf]  ;;  %v7655_v45 = vld [vmem:[#allocation2 + $0x28] sm:$0xf0] }
 0x2c1   :  { %5262 = vmatpush.bf16.msra.mxu2 %v7922_v58  ;;  %5291 = vmatpush.bf16.msra.mxu3 %v7978_v48  ;;  %v7646_v52 = vor.u32 %v8424_v13, %v7645_v40  ;;  %v7654_v22 = vor.u32 %v8426_v60, %v7653_v27  ;;  %v8478_v13 = vld [vmem:[%s11824_s1 + $0xc44] sm:$0xf0]  ;;  %v7957_v27 = vld [vmem:[%s11824_s1 + $0xcc0] sm:$0xf] }
 0x2c3   :  { %v3607_v26 = vpop.f32.mrf.mxu0 }
 0x2c4   :  { %4480 = vmatmul.bf16.gmra.mxu2 %v4235_v17  ;;  %4850 = vmatpush.bf16.msrb.mxu1 %v7742_v20  ;;  %v7909_v26 = vld [vmem:[%s11824_s1 + $0xc60] sm:$0xf] }
 0x2c5   :  { %5206 = vmatpush.bf16.msra.mxu0 %v7918_v50  ;;  %v8493_v50 = vld [vmem:[%s11824_s1 + $0xcc4] sm:$0xf] }
 0x2c6   :  { %4424 = vmatmul.bf16.gmra.mxu0 %v4235_v17  ;;  %v3688_v25 = vpop.f32.mrf.mxu3  ;;  %v8482_v17 = vld [vmem:[%s11824_s1 + $0xc64] sm:$0xf0] }
 0x2c7   :  { %v3635_v57 = vpop.f32.mrf.mxu1  ;;  %v3663_v8 = vpop.f32.mrf.mxu2  ;;  %v7910_v53 = vor.u32 %v8482_v17, %v7909_v26  ;;  %v8425_v25 = vld [vmem:[#allocation2 + $0x24] sm:$0xf]  ;;  %v7662_v26 = vor.u32 %v8428_v5, %v7661_v16  ;;  %v8427_v17 = vld [vmem:[#allocation2 + $0x34] sm:$0xf]  ;;  %v7877_v16 = vld [vmem:[%s11824_s1 + $0xc20] sm:$0xf] }
 0x2c8   :  { %5234 = vmatpush.bf16.msra.mxu1 %v7982_v1  ;;  %v4633_v57 = vrot.slane %v7646_v52, 3  ;;  %v7658_v58 = vor.u32 %v8425_v25, %v7655_v45  ;;  %v8474_v5 = vld [vmem:[%s11824_s1 + $0xc24] sm:$0xf0] }
 0x2c9   :  { %5207 = vmatpush.bf16.msra.mxu0 %v7910_v53  ;;  %v7887_v53 = vld [vmem:[%s11824_s1 + $0xc38] sm:$0xf0] }
 0x2ca   :  { %4452 = vmatmul.bf16.gmra.mxu1 %v4237_v24  ;;  %v11526_v1 = vrot.slane %v7658_v58, 3  ;;  %v7879_v58 = vld [vmem:[%s11824_s1 + $0xc28] sm:$0xf0] }
 0x2cb   :  { %v3609_v11 = vpop.f32.mrf.mxu0  ;;  %4508 = vmatmul.bf16.gmra.mxu3 %v4237_v24  ;;  %v11495_v24 = vrot.slane %v7654_v22, 3  ;;  %v8475_v22 = vld [vmem:[%s11824_s1 + $0xc34] sm:$0xf] }
 0x2cd   :  { %v4635_v6 = vsel %vm1396_vm0, %v4633_v57, %v11495_v24 }
 0x2ce   :  { %v3691_v43 = vpop.f32.mrf.mxu3 }
 0x2cf   :  { %v3637_v32 = vpop.f32.mrf.mxu1  ;;  %v3665_v46 = vpop.f32.mrf.mxu2 }
 0x2d0   :  { %v3638_v51 = vadd.f32 %v3637_v32, %v3609_v11  ;;  %v7902_v32 = vor.u32 %v8480_v42, %v7901_v23 }
 0x2d2   :  { %v11435_v55 = vadd.f32 %v3638_v51, %v11187_v59  ;;  %v8481_v59 = vld [vmem:[%s11824_s1 + $0xc64] sm:$0xf]  ;;  %5208 = vmatpush.bf16.msra.mxu0 %v7902_v32  ;;  %v7943_v32 = vld [vmem:[%s11824_s1 + $0xca8] sm:$0xf0] }
 0x2d3   :  { %v3612_v4 = vpop.f32.mrf.mxu0  ;;  %v7914_v39 = vor.u32 %v8481_v59, %v7911_v49  ;;  %v8477_v51 = vld [vmem:[%s11824_s1 + $0xc44] sm:$0xf]  ;;  %v7962_v59 = vor.u32 %v8493_v50, %v7959_v63  ;;  %v4636_v49 = vrot.slane %v7650_v41, 3 }
 0x2d4   :  { %4485 = vmatmul.bf16.gmra.mxu2 %v11376_v61 }
 0x2d5   :  { %5263 = vmatpush.bf16.msra.mxu2 %v7914_v39  ;;  %v4638_v40 = vsel %vm1396_vm0, %v4636_v49, %v11526_v1 }
 0x2d6   :  { %4429 = vmatmul.bf16.gmra.mxu0 %v11376_v61  ;;  %v3693_v14 = vpop.f32.mrf.mxu3 }
 0x2d7   :  { %v3694_v15 = vadd.f32 %v3693_v14, %v3665_v46  ;;  %v3640_v61 = vpop.f32.mrf.mxu1  ;;  %v3668_v7 = vpop.f32.mrf.mxu2  ;;  %v8496_v46 = vld [vmem:[%s11824_s1 + $0xcd4] sm:$0xf0] }
 0x2d8   :  { %v3641_v2 = vadd.f32 %v3640_v61, %v3612_v4  ;;  %v7895_v4 = vld [vmem:[%s11824_s1 + $0xc48] sm:$0xf0]  ;;  %v7966_v29 = vor.u32 %v8496_v46, %v7965_v0  ;;  %v8489_v0 = vld [vmem:[%s11824_s1 + $0xca4] sm:$0xf] }
 0x2d9   :  { %v11464_v12 = vadd.f32 %v3694_v15, %v11216_v18  ;;  %v8498_v18 = vld [vmem:[%s11824_s1 + $0xce4] sm:$0xf0]  ;;  %v7893_v15 = vld [vmem:[%s11824_s1 + $0xc40] sm:$0xf] }
 0x2da   :  { %v11479_v31 = vadd.f32 %v3641_v2, %v11231_v36  ;;  %4457 = vmatmul.bf16.gmra.mxu1 %v11405_v10  ;;  %v7974_v37 = vor.u32 %v8498_v18, %v7973_v3  ;;  %v7906_v36 = vor.u32 %v8479_v30, %v7903_v21  ;;  %v7894_v61 = vor.u32 %v8478_v13, %v7893_v15  ;;  %v7663_v3 = vld [vmem:[#allocation2 + $0x38] sm:$0xf0]  ;;  %v8491_v18 = vld [vmem:[%s11824_s1 + $0xcb4] sm:$0xf]  ;;  %v7671_v15 = vld [vmem:[#allocation2 + $0x48] sm:$0x70] }
 0x2db   :  { %v3614_v33 = vpop.f32.mrf.mxu0  ;;  %4513 = vmatmul.bf16.gmra.mxu3 %v11405_v10  ;;  %v7967_v10 = vld [vmem:[%s11824_s1 + $0xcd8] sm:$0xf0]  ;;  %v7666_v35 = vor.u32 %v8427_v17, %v7663_v3 }
 0x2dc   :  { %5235 = vmatpush.bf16.msra.mxu1 %v7974_v37  ;;  %v7970_v19 = vor.u32 %v8495_v47, %v7967_v10  ;;  %5264 = vmatpush.bf16.msra.mxu2 %v7906_v36  ;;  %v7890_v37 = vor.u32 %v8475_v22, %v7887_v53  ;;  %v11557_v47 = vrot.slane %v7662_v26, 3  ;;  %v7869_v22 = vld [vmem:[%s11824_s1 + $0xc10] sm:$0xf]  ;;  %v8472_v53 = vld [vmem:[%s11824_s1 + $0xc14] sm:$0xf0] }
 0x2dd   :  { %5209 = vmatpush.bf16.msra.mxu0 %v7894_v61  ;;  %v11565_v57 = vrot.slane %v7666_v35, 3  ;;  %v7935_v61 = vld [vmem:[%s11824_s1 + $0xc98] sm:$0xf0]  ;;  %v8469_v35 = vld [vmem:[%s11824_s1 + $0xc04] sm:$0xf] }
 0x2de   :  { %v3696_v20 = vpop.f32.mrf.mxu3  ;;  %5292 = vmatpush.bf16.msra.mxu3 %v7970_v19 }
 0x2df   :  { %v3697_v8 = vadd.f32 %v3696_v20, %v3668_v7  ;;  %v3642_v11 = vpop.f32.mrf.mxu1  ;;  %v3670_v54 = vpop.f32.mrf.mxu2  ;;  %v8494_v7 = vld [vmem:[%s11824_s1 + $0xcc4] sm:$0xf0]  ;;  %v4640_v20 = vsel %vm1396_vm0, %v11495_v24, %v11557_v47  ;;  %v8492_v24 = vld [vmem:[%s11824_s1 + $0xcb4] sm:$0xf0] }
 0x2e0   :  { %5236 = vmatpush.bf16.msra.mxu1 %v7966_v29  ;;  %v7958_v33 = vor.u32 %v8494_v7, %v7957_v27  ;;  %v7885_v11 = vld [vmem:[%s11824_s1 + $0xc30] sm:$0xf] }
 0x2e1   :  { %v11507_v43 = vadd.f32 %v3697_v8, %v11259_v56  ;;  %v7898_v56 = vor.u32 %v8477_v51, %v7895_v4  ;;  %v7949_v54 = vld [vmem:[%s11824_s1 + $0xcb0] sm:$0xf]  ;;  %v7946_v51 = vor.u32 %v8489_v0, %v7943_v32 }
 0x2e2   :  { %5293 = vmatpush.bf16.msra.mxu3 %v7962_v59  ;;  %v7950_v23 = vor.u32 %v8492_v24, %v7949_v54  ;;  %v7925_v54 = vld [vmem:[%s11824_s1 + $0xc80] sm:$0xf] }
 0x2e3   :  { %v4006_v62 = vpop.f32.mrf.mxu0  ;;  %5265 = vmatpush.bf16.msra.mxu2 %v7898_v56  ;;  %v4642_v56 = vsel %vm1396_vm0, %v11526_v1, %v11565_v57  ;;  %v7941_v1 = vld [vmem:[%s11824_s1 + $0xca0] sm:$0xf] }
 0x2e4   :  { %4879 = vmatmul.bf16.vlgmr.msrb.gmra.mxu2 %v4635_v6  ;;  %5237 = vmatpush.bf16.msra.mxu1 %v7958_v33 }
 0x2e6   :  { %4823 = vmatmul.bf16.vlgmr.msrb.gmra.mxu0 %v4635_v6  ;;  %v3698_v39 = vpop.f32.mrf.mxu3  ;;  %v8430_v6 = vld [vmem:[#allocation2 + $0x44] sm:$0x70] }
 0x2e7   :  { %v4034_v14 = vpop.f32.mrf.mxu1  ;;  %v4062_v48 = vpop.f32.mrf.mxu2  ;;  %5266 = vmatpush.bf16.msra.mxu2 %v7890_v37  ;;  %v8429_v39 = vld [vmem:[#allocation2 + $0x44] sm:$0xf] }
 0x2e8   :  { %v4035_v60 = vadd.f32 %v4034_v14, %v4006_v62  ;;  %v7669_v62 = vld [vmem:[#allocation2 + $0x40] sm:$0xf]  ;;  %5238 = vmatpush.bf16.msra.mxu1 %v7950_v23  ;;  %v7878_v14 = vor.u32 %v8474_v5, %v7877_v16  ;;  %v7674_v33 = vor.u32 %v8429_v39, %v7671_v15 }
 0x2e9   :  { %v7670_v49 = vor.u32 %v8430_v6, %v7669_v62 }
 0x2ea   :  { %v11543_v52 = vadd.f32 %v4035_v60, %v11295_v28  ;;  %4851 = vmatmul.bf16.vlgmr.msrb.gmra.mxu1 %v4638_v40  ;;  %v7951_v28 = vld [vmem:[%s11824_s1 + $0xcb8] sm:$0xf0]  ;;  %v8487_v60 = vld [vmem:[%s11824_s1 + $0xc94] sm:$0xf] }
 0x2eb   :  { %v4008_v2 = vpop.f32.mrf.mxu0  ;;  %4907 = vmatmul.bf16.vlgmr.msrb.gmra.mxu3 %v4638_v40  ;;  %v7954_v30 = vor.u32 %v8491_v18, %v7951_v28  ;;  %v8471_v40 = vld [vmem:[%s11824_s1 + $0xc14] sm:$0xf]  ;;  %v7938_v26 = vor.u32 %v8487_v60, %v7935_v61  ;;  %v7933_v18 = vld [vmem:[%s11824_s1 + $0xc90] sm:$0xf]  ;;  %v7839_v60 = vld [vmem:[#allocation2 + $0x20] sm:$0xf0] }
 0x2ed   :  { %5294 = vmatpush.bf16.msra.mxu3 %v7954_v30  ;;  %v7870_v30 = vor.u32 %v8472_v53, %v7869_v22 }
 0x2ee   :  { %v4090_v21 = vpop.f32.mrf.mxu3 }
 0x2ef   :  { %v4091_v36 = vadd.f32 %v4090_v21, %v4062_v48  ;;  %v4036_v10 = vpop.f32.mrf.mxu1  ;;  %v4064_v34 = vpop.f32.mrf.mxu2  ;;  %v7871_v48 = vld [vmem:[%s11824_s1 + $0xc18] sm:$0xf0]  ;;  %v8488_v21 = vld [vmem:[%s11824_s1 + $0xc94] sm:$0xf0] }
 0x2f0   :  { %v4037_v45 = vadd.f32 %v4036_v10, %v4008_v2  ;;  %v7874_v27 = vor.u32 %v8471_v40, %v7871_v48  ;;  %v4643_v2 = vrot.slane %v7670_v49, 3  ;;  %v7934_v10 = vor.u32 %v8488_v21, %v7933_v18 }
 0x2f1   :  { %v11560_v25 = vadd.f32 %v4091_v36, %v11312_v38  ;;  %v8476_v38 = vld [vmem:[%s11824_s1 + $0xc34] sm:$0xf0]  ;;  %5295 = vmatpush.bf16.msra.mxu3 %v7946_v51  ;;  %v7863_v36 = vld [vmem:[%s11824_s1 + $0xc08] sm:$0xf0] }
 0x2f2   :  { %v11568_v8 = vadd.f32 %v4037_v45, %v11320_v9  ;;  %v7886_v41 = vor.u32 %v8476_v38, %v7885_v11  ;;  %v8473_v9 = vld [vmem:[%s11824_s1 + $0xc24] sm:$0xf]  ;;  %v4644_v28 = vsel %vm1396_vm0, %v11557_v47, %v4643_v2  ;;  %v7927_v47 = vld [vmem:[%s11824_s1 + $0xc88] sm:$0xf0]  ;;  %v7861_v11 = vld [vmem:[%s11824_s1 + $0xc00] sm:$0xf] }
 0x2f3   :  { %v4011_v19 = vpop.f32.mrf.mxu0  ;;  %v7882_v42 = vor.u32 %v8473_v9, %v7879_v58  ;;  %v8485_v45 = vld [vmem:[%s11824_s1 + $0xc84] sm:$0xf]  ;;  %v8470_v38 = vld [vmem:[%s11824_s1 + $0xc04] sm:$0xf0] }
 0x2f4   :  { %4884 = vmatmul.bf16.gmra.mxu2 %v4640_v20  ;;  %5210 = vmatpush.bf16.msra.mxu0 %v7886_v41  ;;  %v4645_v19 = vrot.slane %v7674_v33, 3  ;;  %v7862_v24 = vor.u32 %v8470_v38, %v7861_v11  ;;  %v8486_v9 = vld [vmem:[%s11824_s1 + $0xc84] sm:$0xf0]  ;;  %v8466_v33 = vld [vmem:[#allocation2 + $0x2c] sm:$0xf0] }
 0x2f5   :  { %5267 = vmatpush.bf16.msra.mxu2 %v7882_v42  ;;  %5296 = vmatpush.bf16.msra.mxu3 %v7938_v26  ;;  %v7926_v58 = vor.u32 %v8486_v9, %v7925_v54  ;;  %v7853_v38 = vld [vmem:[#allocation2 + $0x38] sm:$0xf]  ;;  %v8468_v54 = vld [vmem:[#allocation2 + $0x3c] sm:$0xf0] }
 0x2f6   :  { %4828 = vmatmul.bf16.gmra.mxu0 %v4640_v20  ;;  %v4092_v46 = vpop.f32.mrf.mxu3  ;;  %v7930_v20 = vor.u32 %v8485_v45, %v7927_v47  ;;  %v4646_v42 = vsel %vm1396_vm0, %v11565_v57, %v4645_v19 }
 0x2f7   :  { %v4093_v4 = vadd.f32 %v4092_v46, %v4064_v34  ;;  %v4039_v29 = vpop.f32.mrf.mxu1  ;;  %v4067_v50 = vpop.f32.mrf.mxu2  ;;  %v7866_v34 = vor.u32 %v8469_v35, %v7863_v36  ;;  %v8465_v35 = vld [vmem:[#allocation2 + $0x2c] sm:$0xf]  ;;  %v7847_v36 = vld [vmem:[#allocation2 + $0x30] sm:$0xf0] }
 0x2f8   :  { %5211 = vmatpush.bf16.msra.mxu0 %v7878_v14  ;;  %v7837_v14 = vld [vmem:[#allocation2 + $0x18] sm:$0xf]  ;;  %v7850_v45 = vor.u32 %v8465_v35, %v7847_v36 }
 0x2f9   :  { %v11598_v63 = vadd.f32 %v4093_v4, %v11350_v44  ;;  %v8490_v44 = vld [vmem:[%s11824_s1 + $0xca4] sm:$0xf0]  ;;  %5268 = vmatpush.bf16.msra.mxu2 %v7874_v27  ;;  %5297 = vmatpush.bf16.msra.mxu3 %v7930_v20 }
 0x2fa   :  { %4856 = vmatmul.bf16.gmra.mxu1 %v4642_v56  ;;  %v7942_v13 = vor.u32 %v8490_v44, %v7941_v1 }
 0x2fb   :  { %v4013_v59 = vpop.f32.mrf.mxu0  ;;  %4912 = vmatmul.bf16.gmra.mxu3 %v4642_v56 }
 0x2fc   :  { %5239 = vmatpush.bf16.msra.mxu1 %v7942_v13  ;;  %5212 = vmatpush.bf16.msra.mxu0 %v7870_v30 }
 0x2fd   :  { %5269 = vmatpush.bf16.msra.mxu2 %v7866_v34 }
 0x2fe   :  { %v4095_v7 = vpop.f32.mrf.mxu3 }
 0x2ff   :  { %v4041_v17 = vpop.f32.mrf.mxu1  ;;  %v4069_v3 = vpop.f32.mrf.mxu2 }
 0x300   :  { %5240 = vmatpush.bf16.msra.mxu1 %v7934_v10  ;;  %5213 = vmatpush.bf16.msra.mxu0 %v7862_v24  ;;  %v7845_v3 = vld [vmem:[#allocation2 + $0x28] sm:$0xf]  ;;  %v7854_v24 = vor.u32 %v8468_v54, %v7853_v38 }
 0x303   :  { %v4016_v37 = vpop.f32.mrf.mxu0 }
 0x304   :  { %4889 = vmatmul.bf16.gmra.mxu2 %v4644_v28  ;;  %5241 = vmatpush.bf16.msra.mxu1 %v7926_v58  ;;  %v8467_v58 = vld [vmem:[#allocation2 + $0x3c] sm:$0xf] }
 0x306   :  { %4833 = vmatmul.bf16.gmra.mxu0 %v4644_v28  ;;  %v4097_v41 = vpop.f32.mrf.mxu3  ;;  %v7846_v28 = vor.u32 %v8466_v33, %v7845_v3 }
 0x307   :  { %v4044_v23 = vpop.f32.mrf.mxu1  ;;  %v4072_v0 = vpop.f32.mrf.mxu2 }
 0x308   :  { %v7855_v23 = vld [vmem:[#allocation2 + $0x40] sm:$0xf0] }
 0x309   :  { %v7858_v0 = vor.u32 %v8467_v58, %v7855_v23 }
 0x30a   :  { %4861 = vmatmul.bf16.gmra.mxu1 %v4646_v42 }
 0x30b   :  { %v4018_v32 = vpop.f32.mrf.mxu0  ;;  %4917 = vmatmul.bf16.gmra.mxu3 %v4646_v42 }
 0x30e   :  { %v4100_v46 = vpop.f32.mrf.mxu3 }
 0x30f   :  { %v4046_v51 = vpop.f32.mrf.mxu1  ;;  %v4074_v4 = vpop.f32.mrf.mxu2 }
 0x310   :  { %v4047_v62 = vadd.f32 %v4046_v51, %v4018_v32  ;;  %v8512_v51 = vld [vmem:[#allocation2] sm:$0xff] }
 0x312   :  { %v11665_v29 = vadd.f32 %v4047_v62, %v11435_v55  ;;  %v8464_v55 = vld [vmem:[#allocation2 + $0x1c] sm:$0xf0] }
 0x313   :  { %v4021_v6 = vpop.f32.mrf.mxu0  ;;  %v7838_v13 = vor.u32 %v8464_v55, %v7837_v14 }
 0x314   :  { %4894 = vmatmul.bf16.gmra.mxu2 %v4643_v2 }
 0x316   :  { %4838 = vmatmul.bf16.gmra.mxu0 %v4643_v2  ;;  %v4102_v56 = vpop.f32.mrf.mxu3 }
 0x317   :  { %v4103_v50 = vadd.f32 %v4102_v56, %v4074_v4  ;;  %v4049_v59 = vpop.f32.mrf.mxu1  ;;  %v4077_v57 = vpop.f32.mrf.mxu2  ;;  %v5028_v4 = vunpack.c.l.b16 %v8512_v51 }
 0x318   :  { %v4050_v39 = vadd.f32 %v4049_v59, %v4021_v6 }
 0x319   :  { %v11668_v49 = vadd.f32 %v4103_v50, %v11464_v12  ;;  %v8463_v12 = vld [vmem:[#allocation2 + $0x1c] sm:$0xf]  ;;  %v5036_v59 = vpack.c.b16 %v5028_v4, %v5028_v4 }
 0x31a   :  { %v11671_v5 = vadd.f32 %v4050_v39, %v11479_v31  ;;  %4866 = vmatmul.bf16.gmra.mxu1 %v4645_v19  ;;  %v7842_v61 = vor.u32 %v8463_v12, %v7839_v60 }
 0x31b   :  { %v4023_v16 = vpop.f32.mrf.mxu0  ;;  %4922 = vmatmul.bf16.gmra.mxu3 %v4645_v19 }
 0x31c   :  { %v5029_v16 = vunpack.c.h.b16 %v8512_v51 }
 0x31e   :  { %v4105_v1 = vpop.f32.mrf.mxu3  ;;  %v5037_v55 = vpack.c.b16 %v5029_v16, %v5029_v16 }
 0x31f   :  { %v4106_v44 = vadd.f32 %v4105_v1, %v4077_v57  ;;  %v4051_v40 = vpop.f32.mrf.mxu1  ;;  %v4079_v48 = vpop.f32.mrf.mxu2 }
 0x321   :  { %v11674_v15 = vadd.f32 %v4106_v44, %v11507_v43 }
 0x323   :  { %v11676_v27 = vpop.f32.mrf.mxu0 }
 0x324   :  { %5270 = vmatmul.bf16.vlgmr.msra.gmra.mxu2 %v7838_v13 }
 0x326   :  { %5214 = vmatmul.bf16.vlgmr.msra.gmra.mxu0 %v7838_v13  ;;  %v4107_v31 = vpop.f32.mrf.mxu3 }
 0x327   :  { %v11678_v7 = vpop.f32.mrf.mxu1  ;;  %v4471_v2 = vpop.f32.mrf.mxu2 }
 0x328   :  { %v4444_v3 = vadd.f32 %v11678_v7, %v11676_v27 }
 0x32a   :  { %5242 = vmatmul.bf16.vlgmr.msra.gmra.mxu1 %v7842_v61 }
 0x32b   :  { %v4417_v26 = vpop.f32.mrf.mxu0  ;;  %5298 = vmatmul.bf16.vlgmr.msra.gmra.mxu3 %v7842_v61 }
 0x32e   :  { %v4499_v17 = vpop.f32.mrf.mxu3 }
 0x32f   :  { %v4500_v43 = vadd.f32 %v4499_v17, %v4471_v2  ;;  %v4445_v22 = vpop.f32.mrf.mxu1  ;;  %v4473_v53 = vpop.f32.mrf.mxu2 }
 0x330   :  { %v4446_v37 = vadd.f32 %v4445_v22, %v4417_v26 }
 0x331   :  { %v11681_v18 = vadd.f32 %v4500_v43, %v11560_v25 }
 0x332   :  { %v11684_v21 = vadd.f32 %v4446_v37, %v11568_v8 }
 0x333   :  { %v4420_v30 = vpop.f32.mrf.mxu0 }
 0x334   :  { %5275 = vmatmul.bf16.gmra.mxu2 %v7846_v28 }
 0x336   :  { %5219 = vmatmul.bf16.gmra.mxu0 %v7846_v28  ;;  %v4501_v10 = vpop.f32.mrf.mxu3 }
 0x337   :  { %v4502_v34 = vadd.f32 %v4501_v10, %v4473_v53  ;;  %v4448_v47 = vpop.f32.mrf.mxu1  ;;  %v4476_v19 = vpop.f32.mrf.mxu2 }
 0x339   :  { %v11687_v20 = vadd.f32 %v4502_v34, %v11598_v63 }
 0x33a   :  { %5247 = vmatmul.bf16.gmra.mxu1 %v7850_v45 }
 0x33b   :  { %v4422_v25 = vpop.f32.mrf.mxu0  ;;  %5303 = vmatmul.bf16.gmra.mxu3 %v7850_v45 }
 0x33e   :  { %v4504_v11 = vpop.f32.mrf.mxu3 }
 0x33f   :  { %v4450_v8 = vpop.f32.mrf.mxu1  ;;  %v4478_v41 = vpop.f32.mrf.mxu2 }
 0x343   :  { %v4425_v9 = vpop.f32.mrf.mxu0 }
 0x344   :  { %5280 = vmatmul.bf16.gmra.mxu2 %v7854_v24 }
 0x346   :  { %5224 = vmatmul.bf16.gmra.mxu0 %v7854_v24  ;;  %v4506_v42 = vpop.f32.mrf.mxu3 }
 0x347   :  { %v4453_v32 = vpop.f32.mrf.mxu1  ;;  %v4481_v46 = vpop.f32.mrf.mxu2 }
 0x34a   :  { %5252 = vmatmul.bf16.gmra.mxu1 %v7858_v0 }
 0x34b   :  { %v4427_v63 = vpop.f32.mrf.mxu0  ;;  %5308 = vmatmul.bf16.gmra.mxu3 %v7858_v0 }
 0x34e   :  { %v4509_v62 = vpop.f32.mrf.mxu3 }
 0x34f   :  { %v4455_v6 = vpop.f32.mrf.mxu1  ;;  %v4483_v56 = vpop.f32.mrf.mxu2 }
 0x350   :  { %v4456_v50 = vadd.f32 %v4455_v6, %v4427_v63 }
 0x352   :  { %v4542_v39 = vadd.f32 %v4456_v50, %v11665_v29 }
 0x353   :  { %v4430_v57 = vpop.f32.mrf.mxu0 }
 0x354   :  { %5285 = vmatmul.bf16.gmra.mxu2 %v5036_v59 }
 0x356   :  { %5229 = vmatmul.bf16.gmra.mxu0 %v5036_v59  ;;  %v4511_v1 = vpop.f32.mrf.mxu3 }
 0x357   :  { %v4512_v14 = vadd.f32 %v4511_v1, %v4483_v56  ;;  %v4458_v44 = vpop.f32.mrf.mxu1  ;;  %v4486_v40 = vpop.f32.mrf.mxu2 }
 0x358   :  { %v4459_v13 = vadd.f32 %v4458_v44, %v4430_v57  ;;  %v5425_v44 = vld [vmem:[%s11826_s3 + $0x70] sm:$0xff] }
 0x359   :  { %v4543_v48 = vadd.f32 %v4512_v14, %v11668_v49  ;;  %v4532_v49 = vadd.f32 %v4444_v3, %v11543_v52  ;;  %v5420_v3 = vld [vmem:[%s11826_s3 + $0x48] sm:$0xff] }
 0x35a   :  { %v4544_v60 = vadd.f32 %v4459_v13, %v11671_v5  ;;  %5257 = vmatmul.bf16.gmra.mxu1 %v5037_v55  ;;  %v5424_v13 = vld [vmem:[%s11826_s3 + $0x68] sm:$0xff] }
 0x35b   :  { %v4432_v12 = vpop.f32.mrf.mxu0  ;;  %5313 = vmatmul.bf16.gmra.mxu3 %v5037_v55 }
 0x35e   :  { %v4514_v31 = vpop.f32.mrf.mxu3 }
 0x35f   :  { %v4515_v61 = vadd.f32 %v4514_v31, %v4486_v40  ;;  %v4460_v2 = vpop.f32.mrf.mxu1  ;;  %v4488_v29 = vpop.f32.mrf.mxu2  ;;  %v5422_v31 = vld [vmem:[%s11826_s3 + $0x58] sm:$0xff] }
 0x360   :  { %v5421_v2 = vld [vmem:[%s11826_s3 + $0x50] sm:$0xff] }
 0x361   :  { %v4545_v26 = vadd.f32 %v4515_v61, %v11674_v15 }
 0x363   :  { %v4824_v17 = vpop.f32.mrf.mxu0 }
 0x366   :  { %v4516_v33 = vpop.f32.mrf.mxu3 }
 0x367   :  { %v4852_v43 = vpop.f32.mrf.mxu1  ;;  %v4880_v22 = vpop.f32.mrf.mxu2  ;;  %v5419_v33 = vld [vmem:[%s11826_s3 + $0x40] sm:$0xff] }
 0x368   :  { %v4853_v53 = vadd.f32 %v4852_v43, %v4824_v17 }
 0x36a   :  { %v11696_v5 = vadd.f32 %v4853_v53, %v4532_v49 }
 0x36b   :  { %v4826_v37 = vpop.f32.mrf.mxu0 }
 0x36e   :  { %v4908_v28 = vpop.f32.mrf.mxu3 }
 0x36f   :  { %v4909_v30 = vadd.f32 %v4908_v28, %v4880_v22  ;;  %v4854_v35 = vpop.f32.mrf.mxu1  ;;  %v4882_v36 = vpop.f32.mrf.mxu2  ;;  %v5417_v28 = vld [vmem:[%s11826_s3 + $0x30] sm:$0xff] }
 0x370   :  { %v4855_v15 = vadd.f32 %v4854_v35, %v4826_v37  ;;  %v5418_v37 = vld [vmem:[%s11826_s3 + $0x38] sm:$0xff] }
 0x371   :  { %v11699_v10 = vadd.f32 %v4909_v30, %v11681_v18 }
 0x372   :  { %v11702_v27 = vadd.f32 %v4855_v15, %v11684_v21 }
 0x373   :  { %v4829_v34 = vpop.f32.mrf.mxu0 }
 0x376   :  { %v4910_v7 = vpop.f32.mrf.mxu3 }
 0x377   :  { %v4911_v45 = vadd.f32 %v4910_v7, %v4882_v36  ;;  %v4857_v47 = vpop.f32.mrf.mxu1  ;;  %v4885_v52 = vpop.f32.mrf.mxu2 }
 0x379   :  { %v11705_v19 = vadd.f32 %v4911_v45, %v11687_v20 }
 0x37b   :  { %v4831_v25 = vpop.f32.mrf.mxu0 }
 0x37e   :  { %v4913_v11 = vpop.f32.mrf.mxu3 }
 0x37f   :  { %v4859_v38 = vpop.f32.mrf.mxu1  ;;  %v4887_v54 = vpop.f32.mrf.mxu2 }
 0x380   :  { %v5416_v38 = vld [vmem:[%s11826_s3 + $0x28] sm:$0xff] }
 0x383   :  { %v4834_v8 = vpop.f32.mrf.mxu0 }
 0x386   :  { %v4915_v41 = vpop.f32.mrf.mxu3 }
 0x387   :  { %v4862_v18 = vpop.f32.mrf.mxu1  ;;  %v4890_v24 = vpop.f32.mrf.mxu2  ;;  %v5360_v41 = vld [vmem:[%s11825_s2] sm:$0x3] }
 0x388   :  { %v5415_v24 = vld [vmem:[%s11826_s3 + $0x20] sm:$0xff] }
 0x38b   :  { %v4836_v9 = vpop.f32.mrf.mxu0 }
 0x38e   :  { %v4918_v58 = vpop.f32.mrf.mxu3 }
 0x38f   :  { %v4864_v23 = vpop.f32.mrf.mxu1  ;;  %v4892_v21 = vpop.f32.mrf.mxu2  ;;  %v11756_v58 = vperm.slane %v5360_v41, 1 }
 0x390   :  { %v4865_v42 = vadd.f32 %v4864_v23, %v4836_v9 }
 0x392   :  { %v11707_v32 = vadd.f32 %v4865_v42, %v4542_v39  ;;  %v5426_v39 = vld [vmem:[%s11826_s3 + $0x78] sm:$0xff] }
 0x393   :  { %v4839_v0 = vpop.f32.mrf.mxu0  ;;  %5427 = vmatpush.msrb.mxu0 %v5426_v39  ;;  %v5454_v39 = vld [vmem:[%s11827_s4 + $0x30] sm:$0xff] }
 0x394   :  { %5472 = vmatpush.msrb.mxu1 %v5454_v39 }
 0x395   :  { %5428 = vmatpush.msrb.mxu0 %v5425_v44  ;;  %v5453_v44 = vld [vmem:[%s11827_s4 + $0x28] sm:$0xff] }
 0x396   :  { %v4920_v46 = vpop.f32.mrf.mxu3 }
 0x397   :  { %v4921_v63 = vadd.f32 %v4920_v46, %v4892_v21  ;;  %v4867_v20 = vpop.f32.mrf.mxu1  ;;  %v4895_v51 = vpop.f32.mrf.mxu2  ;;  %5429 = vmatpush.msrb.mxu0 %v5424_v13  ;;  %v8540_v13 = vmov 16.0  }
 0x398   :  { %v4868_v62 = vadd.f32 %v4867_v20, %v4839_v0  ;;  %v5413_v0 = vld [vmem:[%s11826_s3 + $0x10] sm:$0xff]  ;;  %8506 = vrcp.f32 %v8540_v13 }
 0x399   :  { %v11709_v4 = vadd.f32 %v4921_v63, %v4543_v48  ;;  %v5366_v63 = vperm.slane %v5360_v41, 0 }
 0x39a   :  { %v11711_v56 = vadd.f32 %v4868_v62, %v4544_v60  ;;  %v5423_v60 = vld [vmem:[%s11826_s3 + $0x60] sm:$0xff] }
 0x39b   :  { %v4841_v6 = vpop.f32.mrf.mxu0  ;;  %5430 = vmatpush.msrb.mxu0 %v5423_v60 }
 0x39d   :  { %5431 = vmatpush.msrb.mxu0 %v5422_v31  ;;  %v5451_v31 = vld [vmem:[%s11827_s4 + $0x18] sm:$0xff] }
 0x39e   :  { %v4923_v50 = vpop.f32.mrf.mxu3 }
 0x39f   :  { %v4924_v59 = vadd.f32 %v4923_v50, %v4895_v51  ;;  %v4869_v57 = vpop.f32.mrf.mxu1  ;;  %v4897_v16 = vpop.f32.mrf.mxu2  ;;  %5432 = vmatpush.msrb.mxu0 %v5421_v2 }
 0x3a1   :  { %v11713_v1 = vadd.f32 %v4924_v59, %v4545_v26  ;;  %5433 = vmatpush.msrb.mxu0 %v5420_v3 }
 0x3a3   :  { %v5215_v14 = vpop.f32.mrf.mxu0  ;;  %5434 = vmatpush.msrb.mxu0 %v5419_v33 }
 0x3a5   :  { %5435 = vmatpush.msrb.mxu0 %v5418_v37 }
 0x3a6   :  { %v4925_v55 = vpop.f32.mrf.mxu3 }
 0x3a7   :  { %v5243_v40 = vpop.f32.mrf.mxu1  ;;  %v5271_v48 = vpop.f32.mrf.mxu2  ;;  %5436 = vmatpush.msrb.mxu0 %v5417_v28  ;;  %v5455_v55 = vld [vmem:[%s11827_s4 + $0x38] sm:$0xff] }
 0x3a8   :  { %v5244_v54 = vadd.f32 %v5243_v40, %v5215_v14  ;;  %5492 = vmatpush.msrb.mxu2 %v5455_v55 }
 0x3a9   :  { %5437 = vmatpush.msrb.mxu0 %v5416_v38 }
 0x3aa   :  { %v5332_v46 = vadd.f32 %v5244_v54, %v11696_v5  ;;  %v5411_v5 = vld [vmem:[%s11826_s3] sm:$0xff]  ;;  %5493 = vmatpush.msrb.mxu2 %v5453_v44 }
 0x3ab   :  { %v5217_v12 = vpop.f32.mrf.mxu0  ;;  %5438 = vmatpush.msrb.mxu0 %v5415_v24 }
 0x3ac   :  { %v11780_v6 = vadd.f32 %v5366_v63, %v5332_v46  ;;  %5494 = vmatpush.msrb.mxu2 %v5451_v31 }
 0x3ae   :  { %v5299_v61 = vpop.f32.mrf.mxu3 }
 0x3af   :  { %v5245_v29 = vpop.f32.mrf.mxu1  ;;  %v5273_v26 = vpop.f32.mrf.mxu2  ;;  %v5300_v25 = vadd.f32 %v5299_v61, %v5271_v48  ;;  %v5450_v61 = vld [vmem:[%s11827_s4 + $0x10] sm:$0xff] }
 0x3b0   :  { %v5246_v11 = vadd.f32 %v5245_v29, %v5217_v12  ;;  %v5452_v12 = vld [vmem:[%s11827_s4 + $0x20] sm:$0xff] }
 0x3b1   :  { %v5333_v9 = vadd.f32 %v5300_v25, %v11699_v10  ;;  %5473 = vmatpush.msrb.mxu1 %v5452_v12 }
 0x3b2   :  { %v5334_v23 = vadd.f32 %v5246_v11, %v11702_v27  ;;  %v5412_v27 = vld [vmem:[%s11826_s3 + $0x8] sm:$0xff] }
 0x3b3   :  { %v5220_v17 = vpop.f32.mrf.mxu0  ;;  %v11773_v51 = vadd.f32 %v11756_v58, %v5333_v9  ;;  %5474 = vmatpush.msrb.mxu1 %v5450_v61 }
 0x3b4   :  { %v11775_v62 = vadd.f32 %v5366_v63, %v5334_v23  ;;  %v5448_v17 = vld [vmem:[%s11827_s4] sm:$0xff] }
 0x3b5   :  { %v5374_v57 = vadd.f32 %v11773_v51, %v11780_v6  ;;  %5475 = vmatpush.msrb.mxu1 %v5448_v17 }
 0x3b6   :  { %v5301_v43 = vpop.f32.mrf.mxu3 }
 0x3b7   :  { %v5248_v22 = vpop.f32.mrf.mxu1  ;;  %v5276_v49 = vpop.f32.mrf.mxu2  ;;  %v5302_v47 = vadd.f32 %v5301_v43, %v5273_v26  ;;  %v5449_v26 = vld [vmem:[%s11827_s4 + $0x8] sm:$0xff]  ;;  %s8541_s4 = smov [#allocation4]  }
 0x3b8   :  { %v8507_v22 = vpop.eup %8506  ;;  %5495 = vmatpush.msrb.mxu2 %v5449_v26  ;;  %s5539_s0 = sshll.u32 %s8541_s4, 4  ;;  %s5540_s0 = int_to_ptr.vmem [resolvable:$true] %s5539_s0 }
 0x3b9   :  { %v5335_v8 = vadd.f32 %v5302_v47, %v11705_v19  ;;  %v5414_v19 = vld [vmem:[%s11826_s3 + $0x18] sm:$0xff]  ;;  %vm5388_vm1 = vweird.f32 %v8507_v22 }
 0x3ba   :  { %5439 = vmatpush.msrb.mxu0 %v5414_v19 }
 0x3bb   :  { %v5222_v53 = vpop.f32.mrf.mxu0  ;;  %v11767_v10 = vadd.f32 %v11756_v58, %v5335_v8 }
 0x3bc   :  { %5440 = vmatpush.msrb.mxu0 %v5413_v0 }
 0x3bd   :  { %v5375_v50 = vadd.f32 %v11767_v10, %v11775_v62 }
 0x3be   :  { %v5304_v30 = vpop.f32.mrf.mxu3  ;;  %5441 = vmatpush.msrb.mxu0 %v5412_v27 }
 0x3bf   :  { %v5250_v35 = vpop.f32.mrf.mxu1  ;;  %v5278_v36 = vpop.f32.mrf.mxu2  ;;  %v5376_v40 = vadd.f32 %v5375_v50, %v5374_v57 }
 0x3c0   :  { %5442 = vmatpush.msrb.mxu0 %v5411_v5 }
 0x3c1   :  { %v5377_v3 = vrot.slane %v5376_v40, 4 }
 0x3c3   :  { %v5225_v15 = vpop.f32.mrf.mxu0  ;;  %v5378_v35 = vadd.f32 %v5377_v3, %v5376_v40 }
 0x3c5   :  { %v5379_v47 = vrot.slane %v5378_v35, 2 }
 0x3c6   :  { %v5306_v34 = vpop.f32.mrf.mxu3 }
 0x3c7   :  { %v5253_v7 = vpop.f32.mrf.mxu1  ;;  %v5281_v45 = vpop.f32.mrf.mxu2  ;;  %v5384_v34 = vmul.f32 16.0, %v8507_v22  ;;  %v5380_v38 = vadd.f32 %v5379_v47, %v5378_v35 }
 0x3c9   :  { %v5381_v24 = vrot.slane %v5380_v38, 1 }
 0x3cb   :  { %v5227_v52 = vpop.f32.mrf.mxu0 }
 0x3ce   :  { %v5309_v18 = vpop.f32.mrf.mxu3 }
 0x3cf   :  { %v5255_v21 = vpop.f32.mrf.mxu1  ;;  %v5283_v42 = vpop.f32.mrf.mxu2 }
 0x3d0   :  { %v5256_v2 = vadd.f32 %v5255_v21, %v5227_v52 }
 0x3d2   :  { %v5342_v49 = vadd.f32 %v5256_v2, %v11707_v32 }
 0x3d3   :  { %v5230_v20 = vpop.f32.mrf.mxu0 }
 0x3d6   :  { %v5311_v59 = vpop.f32.mrf.mxu3 }
 0x3d7   :  { %v5258_v16 = vpop.f32.mrf.mxu1  ;;  %v5286_v14 = vpop.f32.mrf.mxu2  ;;  %v5312_v48 = vadd.f32 %v5311_v59, %v5283_v42 }
 0x3d8   :  { %v5259_v29 = vadd.f32 %v5258_v16, %v5230_v20 }
 0x3d9   :  { %v5343_v33 = vadd.f32 %v5312_v48, %v11709_v4  ;;  %v5395_v4 = vadd.f32 %v5366_v63, %v5342_v49 }
 0x3da   :  { %v5344_v53 = vadd.f32 %v5259_v29, %v11711_v56  ;;  %v5385_v56 = vsub.f32 1.0, %v5384_v34 }
 0x3db   :  { %v5232_v60 = vpop.f32.mrf.mxu0  ;;  %v5396_v36 = vadd.f32 %v11756_v58, %v5343_v33 }
 0x3dc   :  { %v5397_v7 = vadd.f32 %v5366_v63, %v5344_v53  ;;  %v5386_v8 = vmul.f32 %v8507_v22, %v5385_v56 }
 0x3dd   :  { %v5399_v52 = vadd.f32 %v5396_v36, %v5395_v4 }
 0x3de   :  { %v5314_v43 = vpop.f32.mrf.mxu3  ;;  %v5387_v9 = vadd.f32 %v8507_v22, %v5386_v8 }
 0x3df   :  { %v5315_v37 = vadd.f32 %v5314_v43, %v5286_v14  ;;  %v5260_v28 = vpop.f32.mrf.mxu1  ;;  %v5288_v30 = vpop.f32.mrf.mxu2 }
 0x3e0   :  { %v5389_v21 = vsel %vm5388_vm1, %v8507_v22, %v5387_v9 }
 0x3e1   :  { %v5345_v15 = vadd.f32 %v5315_v37, %v11713_v1  ;;  %v5382_v1 = vadd.f32 %v5381_v24, %v5380_v38 }
 0x3e3   :  { %v5398_v45 = vadd.f32 %v11756_v58, %v5345_v15  ;;  %v5390_v58 = vmul.f32 %v5389_v21, %v5382_v1 }
 0x3e5   :  { %v5400_v32 = vadd.f32 %v5398_v45, %v5397_v7 }
 0x3e6   :  { %v5316_v25 = vpop.f32.mrf.mxu3 }
 0x3e7   :  { %v5401_v11 = vadd.f32 %v5400_v32, %v5399_v52 }
 0x3e9   :  { %v5402_v54 = vrot.slane %v5401_v11, 4 }
 0x3eb   :  { %v5403_v41 = vadd.f32 %v5402_v54, %v5401_v11 }
 0x3ed   :  { %v5404_v18 = vrot.slane %v5403_v41, 2 }
 0x3ef   :  { %v5405_v23 = vadd.f32 %v5404_v18, %v5403_v41 }
 0x3f1   :  { %v5406_v19 = vrot.slane %v5405_v23, 1 }
 0x3f3   :  { %v5407_v42 = vadd.f32 %v5406_v19, %v5405_v23 }
 0x3f5   :  { %v5408_v0 = vmul.f32 %v5407_v42, %v5389_v21 }
 0x3f7   :  { %v5410_v46 = vsel %vm5409_vm2, %v5390_v58, %v5408_v0 }
 0x3f8   :  { %5443 = vmatmul.f32.vlgmr.msrb.gmra.mxu0 %v5410_v46 }
 0x475   :  { %v5444_v63 = vpop.f32.mrf.mxu0 }
 0x476   :  { %v5447_v20 = vmax.f32 %v5444_v63, 0.0 }
 0x478   :  { %7987 = vmatmul.msk.f32.vlgmr.msrb.gmra.mxu1 %vm5456_vm3, %v5447_v20  ;;  %7988 = vmatmul.msk.f32.vlgmr.msrb.gmra.mxu2 %vm5456_vm3, %v5447_v20 }
 0x4f5   :  { %v5477_v27 = vpop.f32.mrf.mxu1 }
 0x4fb   :  { %v5497_v5 = vpop.f32.mrf.mxu2 }
 0x4fc   :  { %v5500_v50 = vsub.f32 %v5497_v5, %v5477_v27 }
 0x4fe   :  { %v5501_v59 = vmul.f32 1.442695, %v5500_v50 }
 0x500   :  { %8508 = vpow2.f32 %v5501_v59 }
 0x506   :  { %v8509_v57 = vpop.eup %8508 }
 0x507   :  { %v5503_v16 = vadd.f32 1.0, %v8509_v57 }
 0x509   :  { %8510 = vrcp.f32 %v5503_v16 }
 0x50f   :  { %v8511_v14 = vpop.eup %8510 }
 0x510   :  { %v5505_v55 = vsub.f32 1.0, %v8511_v14  ;;  %v5506_v39 = vperm.slane %v8511_v14, 0  ;;  %v5524_v44 = vperm.slane %v8511_v14, 1 }
 0x512   :  { %v5509_v40 = vperm.slane %v5505_v55, 0  ;;  %v5527_v48 = vperm.slane %v5505_v55, 1  ;;  %v5507_v13 = vmul.f32 %v5506_v39, %v11780_v6  ;;  %v5508_v12 = vmul.f32 %v5506_v39, %v11775_v62 }
 0x513   :  { %v5525_v61 = vmul.f32 %v5524_v44, %v5395_v4  ;;  %v5526_v2 = vmul.f32 %v5524_v44, %v5397_v7 }
 0x514   :  { %v5510_v60 = vmul.f32 %v5509_v40, %v11773_v51  ;;  %v5511_v31 = vmul.f32 %v5509_v40, %v11767_v10  ;;  %v5528_v29 = vmul.f32 %v5527_v48, %v5396_v36  ;;  %v5529_v26 = vmul.f32 %v5527_v48, %v5398_v45 }
 0x516   :  { %v5512_v17 = vadd.f32 %v5510_v60, %v5507_v13  ;;  %v5513_v3 = vadd.f32 %v5511_v31, %v5508_v12  ;;  %v5530_v33 = vadd.f32 %v5528_v29, %v5525_v61  ;;  %v5531_v6 = vadd.f32 %v5529_v26, %v5526_v2 }
 0x518   :  { %5514 = vst [vmem:[#allocation4] sm:$0xff] %v5512_v17 }
 0x519   :  { %5515 = vst [vmem:[#allocation4 + $0x8] sm:$0xff] %v5513_v3 }
 0x51a   :  { %5533 = vst [vmem:[#allocation4 + $0x10] sm:$0xff] %v5530_v33 }
 0x51b   :  { %5534 = vst [vmem:[#allocation4 + $0x18] sm:$0xff] %v5531_v6 }
 0x51c   :  { %5547 = dma.vmem_to_hbm [thread:$0]  %s5540_s0, 512, %s5542_s30, [#allocation5], %s8542_s6, %s8542_s6, %s8543_s7  }
 0x51d   :  { %8537 = dma.done.wait [#allocation5], 512  }
 0x51e   :  { %8538 = vsyncadd [#allocation5], 4294966784 }
 0x51f   :  { %5552 = vsyncpa [#allocation5], 1 }

</bundles_post_ra>
